<compile_context>
chip_gen: v7x
topology: tpu7x:2x2x1
jax: 0.10.0
libtpu: 0.0.40
codegen_flags: <defaults>
</compile_context>

<pallas_src>
import math

import jax
import jax.numpy as jnp
from jax.experimental import pallas as pl
from jax.experimental.pallas import tpu as pltpu

# ----------------------------- config (small, synthetic) -----------------------------
B = 2            # batch
T_LEN = 8        # text sequence length
A_LEN = 8        # audio (frame) sequence length
S_FUSED = T_LEN + A_LEN          # 16
HIDDEN = 32      # hidden size
N_HEADS = 4
HEAD_DIM = HIDDEN // N_HEADS     # 8
FFN = 64         # intermediate size
VOCAB = 50
F_AUDIO = 24     # raw audio-frame feature dim
F_AUDIO_PAD = 32  # zero-padded to a sublane-friendly multiple of 8

SLOT_LIST = ["hotel-area", "hotel-price", "hotel-stars"]
N_SLOTS = len(SLOT_LIST)
CLASS_TYPES = ["none", "dontcare", "copy_value", "refer"]
CLASS_LABELS = len(CLASS_TYPES)          # 4
REFER_INDEX = CLASS_TYPES.index("refer")  # 3
CLASS_LOSS_RATIO = 0.8
LN_EPS = 1e-12
NEG_INF = jnp.finfo(jnp.float32).min

# packed DST-head column layout (all 9 per-slot heads fused into one matmul):
#   [token(start,end) x 3 slots | class(4) x 3 | refer(4) x 3 | zero pad -> 128 lanes]
TOKEN_OFF = 0
CLASS_OFF = 2 * N_SLOTS                               # 6
REFER_OFF = CLASS_OFF + CLASS_LABELS * N_SLOTS        # 18
HEAD_OUT = REFER_OFF + (N_SLOTS + 1) * N_SLOTS        # 30
HEAD_PAD = 128                                        # lane-dense output width

# per-layer packed parameter keys:
#   wqkv [H, 3*H] bf16   lane-packed q|k|v projection (heads concatenated on lanes)
#   bqkv [1, 3*H] f32
#   wo   [H, H]   bf16   output projection applied to lane-concatenated heads
#   w1   [H, FFN] bf16 , bf1 [1, FFN] f32
#   w2   [FFN, H] bf16
#   vec  [8, H]   f32    rows = (bo, ln1_g, ln1_b, bf2, ln2_g, ln2_b, 0, 0)
LAYER_KEYS = ("wqkv", "bqkv", "wo", "w1", "bf1", "w2", "vec")


# ----------------------------------- kernel helpers -----------------------------------
def _layer_norm(x, g, b):
    mu = jnp.mean(x, axis=-1, keepdims=True)
    var = jnp.mean((x - mu) ** 2, axis=-1, keepdims=True)
    return (x - mu) * jax.lax.rsqrt(var + LN_EPS) * g + b


def _transformer_block(x, mask_add, wqkv, bqkv, wo, w1, bf1, w2, vec):
    """One RobertaLayer over batch-flattened rows.

    x: [R, H] f32 with R = batch*seq; mask_add: [R, R] additive f32, block-diagonal
    over batch, so one flattened attention reproduces per-batch attention exactly.
    MXU operands are bf16; accumulation / softmax / LayerNorm stay f32.
    """
    bo, g1, be1 = vec[0:1, :], vec[1:2, :], vec[2:3, :]
    bf2, g2, be2 = vec[3:4, :], vec[4:5, :], vec[5:6, :]

    xb = x.astype(jnp.bfloat16)

    # fused QKV: one [R,H] x [H,3H] matmul; single bf16 cast of the whole qkv slab.
    qkv = jnp.dot(xb, wqkv, preferred_element_type=jnp.float32) + bqkv    # [R, 3H] f32
    qkv_b = qkv.astype(jnp.bfloat16)
    q = qkv_b[:, 0:HIDDEN]
    k = qkv_b[:, HIDDEN:2 * HIDDEN]
    v = qkv_b[:, 2 * HIDDEN:3 * HIDDEN]

    # multi-head attention: per-head score / context matmuls on the flattened rows.
    # NOTE: a fully-masked row would softmax to NaN (same as the reference model);
    # masks here always keep >= 1 valid position per batch block.
    scale = 1.0 / math.sqrt(HEAD_DIM)
    ctx_heads = []
    for h in range(N_HEADS):
        sl = slice(h * HEAD_DIM, (h + 1) * HEAD_DIM)
        s = jax.lax.dot_general(q[:, sl], k[:, sl], (((1,), (1,)), ((), ())),
                                preferred_element_type=jnp.float32) * scale
        s = s + mask_add
        s = s - jnp.max(s, axis=-1, keepdims=True)
        p = jnp.exp(s)
        p = p * pl.reciprocal(jnp.sum(p, axis=-1, keepdims=True), approx=True)
        ctx_heads.append(jnp.dot(p.astype(jnp.bfloat16), v[:, sl],
                                 preferred_element_type=jnp.float32))     # [R, HD]
    ctx = jnp.concatenate(ctx_heads, axis=-1).astype(jnp.bfloat16)        # [R, H]

    attn = jnp.dot(ctx, wo, preferred_element_type=jnp.float32) + bo      # [R, H]

    h1 = _layer_norm(x + attn, g1, be1)
    # TODO(synk): tanh-approx GELU vs PyTorch nn.GELU's default erf.
    inter = jax.nn.gelu(
        jnp.dot(h1.astype(jnp.bfloat16), w1, preferred_element_type=jnp.float32) + bf1,
        approximate=True)
    ffn = jnp.dot(inter.astype(jnp.bfloat16), w2,
                  preferred_element_type=jnp.float32) + bf2
    return _layer_norm(h1 + ffn, g2, be2)


def _ce_classes_last(logits, labels):
    """Cross entropy with classes on the lane axis. logits [N, C] f32, labels [N, 1]."""
    m = jnp.max(logits, axis=-1, keepdims=True)
    lse = jnp.log(jnp.sum(jnp.exp(logits - m), axis=-1, keepdims=True)) + m
    col = jax.lax.broadcasted_iota(jnp.int32, logits.shape, 1)
    picked = jnp.sum(jnp.where(col == labels, logits, 0.0), axis=-1, keepdims=True)
    return lse - picked                                                   # [N, 1]


def _ce_classes_first(logits, labels, ignore_index):
    """Cross entropy with classes on the sublane axis (rows == classes).
    logits [C, N] f32, labels [1, N] int32; label == ignore_index gives 0 loss."""
    m = jnp.max(logits, axis=0, keepdims=True)
    lse = jnp.log(jnp.sum(jnp.exp(logits - m), axis=0, keepdims=True)) + m
    row = jax.lax.broadcasted_iota(jnp.int32, logits.shape, 0)
    picked = jnp.sum(jnp.where(row == labels, logits, 0.0), axis=0, keepdims=True)
    return jnp.where(labels == ignore_index, 0.0, lse - picked)           # [1, N]


# ------------------------------------ the Pallas kernel ------------------------------------
def dst_kernel(
    # text branch
    temb_ref, tmask_ref,
    # audio branch
    aud_ref, amask_ref, apw_ref, apb_ref,
    # fusion
    tt_ref, fmask_ref,
    # three packed RobertaLayers (text, audio, fused)
    t_wqkv, t_bqkv, t_wo, t_w1, t_bf1, t_w2, t_vec,
    a_wqkv, a_bqkv, a_wo, a_w1, a_bf1, a_w2, a_vec,
    f_wqkv, f_bqkv, f_wo, f_w1, f_bf1, f_w2, f_vec,
    # packed DST heads + CE labels
    hw_ref, hb_ref, tok_lbl_ref, cls_lbl_ref, ref_lbl_ref,
    # outputs
    heads_ref, loss_ref):
    """Whole DSTModel forward in one launch: text layer, audio proj+layer, fusion layer,
    packed per-slot heads, and all 12 cross-entropy losses."""
    # ---- text encoder layer (batch flattened into matmul rows) ----
    text_out = _transformer_block(
        temb_ref[...], tmask_ref[...],
        t_wqkv[...], t_bqkv[...], t_wo[...], t_w1[...], t_bf1[...], t_w2[...], t_vec[...])

    # ---- audio encoder: frame projection folded into the layer prologue ----
    audio_in = jnp.dot(aud_ref[...].astype(jnp.bfloat16), apw_ref[...],
                       preferred_element_type=jnp.float32) + apb_ref[...]
    audio_out = _transformer_block(
        audio_in, amask_ref[...],
        a_wqkv[...], a_bqkv[...], a_wo[...], a_w1[...], a_bf1[...], a_w2[...], a_vec[...])

    # ---- fusion: per-batch [text | audio] rows + token-type embeddings ----
    tt = tt_ref[...]
    parts = []
    for b in range(B):
        parts.append(text_out[b * T_LEN:(b + 1) * T_LEN, :] + tt[0:1, :])
        parts.append(audio_out[b * A_LEN:(b + 1) * A_LEN, :] + tt[1:2, :])
    fused_in = jnp.concatenate(parts, axis=0)                             # [B*S_FUSED, H]

    fused_out = _transformer_block(
        fused_in, fmask_ref[...],
        f_wqkv[...], f_bqkv[...], f_wo[...], f_w1[...], f_bf1[...], f_w2[...], f_vec[...])

    # ---- all 9 per-slot heads: one lane-dense [R, 128] matmul (unmasked stores) ----
    heads_all = jnp.dot(fused_out.astype(jnp.bfloat16), hw_ref[...],
                        preferred_element_type=jnp.float32) + hb_ref[...]
    heads_ref[...] = heads_all

    # ---- fused cross entropies (class / start / end / refer x 3 slots) ----
    tok_lbl = tok_lbl_ref[...]            # [B, 2*N_SLOTS] clamped start/end positions
    cls_lbl = cls_lbl_ref[...]            # [B, N_SLOTS]
    ref_lbl = ref_lbl_ref[...]            # [B, N_SLOTS]

    # start/end CE: classes are the S_FUSED sequence positions (rows of the batch block);
    # per-column scalar bias cancels in CE so heads_all can be used directly.
    tok_rows = []
    for b in range(B):
        blk = heads_all[b * S_FUSED:(b + 1) * S_FUSED,
                        TOKEN_OFF:TOKEN_OFF + 2 * N_SLOTS]                # [S_FUSED, 6]
        tok_rows.append(_ce_classes_first(blk, tok_lbl[b:b + 1, :], S_FUSED))
    tok_loss = jnp.concatenate(tok_rows, axis=0)                          # [B, 6]

    # class / refer CE: pooled (CLS) row of each batch element, classes along lanes.
    pooled = jnp.concatenate(
        [heads_all[b * S_FUSED:b * S_FUSED + 1, :] for b in range(B)], axis=0)  # [B, 128]

    slot_losses = []
    for i in range(N_SLOTS):
        cls_logits = pooled[:, CLASS_OFF + CLASS_LABELS * i:
                            CLASS_OFF + CLASS_LABELS * (i + 1)]           # [B, 4]
        ref_logits = pooled[:, REFER_OFF + (N_SLOTS + 1) * i:
                            REFER_OFF + (N_SLOTS + 1) * (i + 1)]          # [B, 4]
        class_loss = _ce_classes_last(cls_logits, cls_lbl[:, i:i + 1])    # [B, 1]
        refer_loss = _ce_classes_last(ref_logits, ref_lbl[:, i:i + 1])    # [B, 1]

        start_loss = tok_loss[:, 2 * i:2 * i + 1]
        end_loss = tok_loss[:, 2 * i + 1:2 * i + 2]
        token_is_pointable = (tok_lbl[:, 2 * i:2 * i + 1] > 0).astype(jnp.float32)
        token_loss = 0.5 * (start_loss + end_loss) * token_is_pointable
        token_is_referrable = (cls_lbl[:, i:i + 1] == REFER_INDEX).astype(jnp.float32)
        refer_loss = refer_loss * token_is_referrable

        slot_losses.append(CLASS_LOSS_RATIO * class_loss
                           + (1.0 - CLASS_LOSS_RATIO) / 2.0 * token_loss
                           + (1.0 - CLASS_LOSS_RATIO) / 2.0 * refer_loss)
    loss_ref[...] = jnp.concatenate(slot_losses, axis=-1)                 # [B, N_SLOTS]


# ----------------------------------- Pallas wrapper -----------------------------------
_VMEM = pl.BlockSpec(memory_space=pltpu.MemorySpace.VMEM)


def _block_diag_additive_mask(mask, seq_len):
    """[B, S] 1/0 mask -> [B*S, B*S] additive mask, block-diagonal over batch, so one
    flattened attention matmul reproduces the reference per-batch attention."""
    rows = jnp.arange(B * seq_len, dtype=jnp.int32) // seq_len
    same_batch = (rows[:, None] == rows[None, :]).astype(jnp.float32)
    keep = same_batch * mask.astype(jnp.float32).reshape(1, B * seq_len)
    return (1.0 - keep) * NEG_INF


# ------------------------------- parameter initialization -------------------------------
def _init_layer(key):
    ks = jax.random.split(key, 4)
    w = lambda k, shape: jax.random.normal(k, shape, jnp.float32) * 0.02
    # vec rows: 0 attn-out bias, 1 ln1_gamma, 2 ln1_beta, 3 ffn-out bias, 4 ln2_gamma,
    #           5 ln2_beta, 6-7 spare
    vec = jnp.zeros((8, HIDDEN), jnp.float32).at[1].set(1.0).at[4].set(1.0)
    return dict(
        wqkv=w(ks[0], (HIDDEN, 3 * HIDDEN)).astype(jnp.bfloat16),
        bqkv=jnp.zeros((1, 3 * HIDDEN), jnp.float32),
        wo=w(ks[1], (HIDDEN, HIDDEN)).astype(jnp.bfloat16),
        w1=w(ks[2], (HIDDEN, FFN)).astype(jnp.bfloat16),
        bf1=jnp.zeros((1, FFN), jnp.float32),
        w2=w(ks[3], (FFN, HIDDEN)).astype(jnp.bfloat16),
        vec=vec,
    )


def init_params(key):
    keys = jax.random.split(key, 8)
    w = lambda k, shape: jax.random.normal(k, shape, jnp.float32) * 0.02
    # zero-pad the projection rows 24 -> 32 (padded input features are also zero).
    audio_proj_w = jnp.pad(w(keys[3], (F_AUDIO, HIDDEN)),
                           ((0, F_AUDIO_PAD - F_AUDIO), (0, 0)))
    params = dict(
        word_emb=w(keys[0], (VOCAB, HIDDEN)),
        role_emb=w(keys[1], (2, HIDDEN)),
        token_type_emb=w(keys[2], (2, HIDDEN)),
        audio_proj_w=audio_proj_w.astype(jnp.bfloat16),
        audio_proj_b=jnp.zeros((1, HIDDEN), jnp.float32),
        text_layer=_init_layer(keys[4]),
        audio_layer=_init_layer(keys[5]),
        fused_layer=_init_layer(keys[6]),
        slots={},
    )
    skeys = jax.random.split(keys[7], N_SLOTS * 3)
    for i, slot in enumerate(SLOT_LIST):
        params["slots"][slot] = dict(
            class_w=w(skeys[3 * i + 0], (HIDDEN, CLASS_LABELS)),
            class_b=jnp.zeros((1, CLASS_LABELS), jnp.float32),
            token_w=w(skeys[3 * i + 1], (HIDDEN, 2)),
            token_b=jnp.zeros((1, 2), jnp.float32),
            refer_w=w(skeys[3 * i + 2], (HIDDEN, N_SLOTS + 1)),
            refer_b=jnp.zeros((1, N_SLOTS + 1), jnp.float32),
        )
    # pack the 9 per-slot heads into one weight (token | class | refer), zero-padded to
    # 128 output lanes so the heads matmul result is a lane-dense, unmasked-store slab.
    sl = [params["slots"][s] for s in SLOT_LIST]
    head_w = jnp.concatenate([d["token_w"] for d in sl] + [d["class_w"] for d in sl]
                             + [d["refer_w"] for d in sl], axis=1)         # [H, 30]
    head_b = jnp.concatenate([d["token_b"] for d in sl] + [d["class_b"] for d in sl]
                             + [d["refer_b"] for d in sl], axis=1)
    params["head_w"] = jnp.pad(head_w, ((0, 0), (0, HEAD_PAD - HEAD_OUT))).astype(jnp.bfloat16)
    params["head_b"] = jnp.pad(head_b, ((0, 0), (0, HEAD_PAD - HEAD_OUT)))
    return params


# --------------------------------------- forward ---------------------------------------
def dst_forward(params, text_input, text_mask, role_token_id, audio_input, audio_mask,
                start_pos, end_pos, refer_id, class_label_id):
    # --- input prep (embedding gathers / padding / mask build stay in XLA) ---
    text_emb = (jnp.take(params["word_emb"], text_input, axis=0)
                + jnp.take(params["role_emb"], role_token_id, axis=0))     # [B, T, H]
    text_emb = text_emb.reshape(B * T_LEN, HIDDEN)
    audio_flat = jnp.pad(audio_input,
                         ((0, 0), (0, 0), (0, F_AUDIO_PAD - F_AUDIO))
                         ).reshape(B * A_LEN, F_AUDIO_PAD)
    tmask = _block_diag_additive_mask(text_mask, T_LEN)
    amask = _block_diag_additive_mask(audio_mask, A_LEN)
    fmask = _block_diag_additive_mask(
        jnp.concatenate([text_mask, audio_mask], axis=1), S_FUSED)

    # --- CE labels packed into three small int32 arrays ---
    tok_cols, cls_cols, ref_cols = [], [], []
    for slot in SLOT_LIST:
        # same clamp as torch `start_pos[slot].clamp_(0, ignored_index)` (== S_FUSED)
        tok_cols.append(jnp.clip(start_pos[slot], 0, S_FUSED).astype(jnp.int32))
        tok_cols.append(jnp.clip(end_pos[slot], 0, S_FUSED).astype(jnp.int32))
        cls_cols.append(class_label_id[slot].astype(jnp.int32))
        ref_cols.append(refer_id[slot].astype(jnp.int32))
    tok_lbl = jnp.stack(tok_cols, axis=1)        # [B, 2*N_SLOTS]
    cls_lbl = jnp.stack(cls_cols, axis=1)        # [B, N_SLOTS]
    ref_lbl = jnp.stack(ref_cols, axis=1)        # [B, N_SLOTS]

    lt, la, lf = params["text_layer"], params["audio_layer"], params["fused_layer"]
    inputs = (text_emb, tmask, audio_flat, amask,
              params["audio_proj_w"], params["audio_proj_b"],
              params["token_type_emb"], fmask,
              *[lt[k] for k in LAYER_KEYS],
              *[la[k] for k in LAYER_KEYS],
              *[lf[k] for k in LAYER_KEYS],
              params["head_w"], params["head_b"], tok_lbl, cls_lbl, ref_lbl)

    heads_flat, slot_loss = pl.pallas_call(
        dst_kernel,
        out_shape=(jax.ShapeDtypeStruct((B * S_FUSED, HEAD_PAD), jnp.float32),
                   jax.ShapeDtypeStruct((B, N_SLOTS), jnp.float32)),
        in_specs=[_VMEM] * len(inputs),
        out_specs=(_VMEM, _VMEM),
    )(*inputs)

    heads = heads_flat.reshape(B, S_FUSED, HEAD_PAD)

    # dropout / dropout_heads are identity at inference time
    per_slot_per_example_loss = {}
    per_slot_class_logits = {}
    per_slot_start_logits = {}
    per_slot_end_logits = {}
    per_slot_refer_logits = {}
    for i, slot in enumerate(SLOT_LIST):
        per_slot_class_logits[slot] = heads[:, 0, CLASS_OFF + CLASS_LABELS * i:
                                            CLASS_OFF + CLASS_LABELS * (i + 1)]
        per_slot_refer_logits[slot] = heads[:, 0, REFER_OFF + (N_SLOTS + 1) * i:
                                            REFER_OFF + (N_SLOTS + 1) * (i + 1)]
        per_slot_start_logits[slot] = heads[:, :, TOKEN_OFF + 2 * i]
        per_slot_end_logits[slot] = heads[:, :, TOKEN_OFF + 2 * i + 1]
        per_slot_per_example_loss[slot] = slot_loss[:, i]
    total_loss = jnp.sum(slot_loss)

    return (total_loss, per_slot_per_example_loss, per_slot_class_logits,
            per_slot_start_logits, per_slot_end_logits, per_slot_refer_logits)


# ------------------------------------------ main ------------------------------------------
if __name__ == "__main__":
    key = jax.random.PRNGKey(0)
    kp, kt, kr, ka, ks, ke, kf, kc = jax.random.split(key, 8)

    params = init_params(kp)

    text_input = jax.random.randint(kt, (B, T_LEN), 0, VOCAB, dtype=jnp.int32)
    role_token_id = jax.random.randint(kr, (B, T_LEN), 0, 2, dtype=jnp.int32)
    text_mask = jnp.ones((B, T_LEN), jnp.float32).at[1, T_LEN - 1].set(0.0)
    audio_input = jax.random.normal(ka, (B, A_LEN, F_AUDIO), jnp.float32)
    audio_mask = jnp.ones((B, A_LEN), jnp.float32).at[0, A_LEN - 1].set(0.0)

    start_pos, end_pos, refer_id, class_label_id = {}, {}, {}, {}
    sks = jax.random.split(ks, N_SLOTS)
    eks = jax.random.split(ke, N_SLOTS)
    rks = jax.random.split(kf, N_SLOTS)
    cks = jax.random.split(kc, N_SLOTS)
    for i, slot in enumerate(SLOT_LIST):
        start_pos[slot] = jax.random.randint(sks[i], (B,), 0, S_FUSED + 1, dtype=jnp.int32)
        end_pos[slot] = jax.random.randint(eks[i], (B,), 0, S_FUSED + 1, dtype=jnp.int32)
        refer_id[slot] = jax.random.randint(rks[i], (B,), 0, N_SLOTS + 1, dtype=jnp.int32)
        class_label_id[slot] = jax.random.randint(cks[i], (B,), 0, CLASS_LABELS, dtype=jnp.int32)

    dst_forward_jit = jax.jit(dst_forward)
    outputs = dst_forward_jit(params, text_input, text_mask, role_token_id,
                              audio_input, audio_mask, start_pos, end_pos,
                              refer_id, class_label_id)
    jax.block_until_ready(outputs)
    print("KERNEL_OK")
</pallas_src>

<mosaic_0001>
module attributes {stable_mosaic.version = 11 : i64} {
  func.func @dst_kernel(%arg0: memref<16x32xf32, #tpu.memory_space<vmem>>, %arg1: memref<16x16xf32, #tpu.memory_space<vmem>>, %arg2: memref<16x32xf32, #tpu.memory_space<vmem>>, %arg3: memref<16x16xf32, #tpu.memory_space<vmem>>, %arg4: memref<32x32xbf16, #tpu.memory_space<vmem>>, %arg5: memref<1x32xf32, #tpu.memory_space<vmem>>, %arg6: memref<2x32xf32, #tpu.memory_space<vmem>>, %arg7: memref<32x32xf32, #tpu.memory_space<vmem>>, %arg8: memref<32x96xbf16, #tpu.memory_space<vmem>>, %arg9: memref<1x96xf32, #tpu.memory_space<vmem>>, %arg10: memref<32x32xbf16, #tpu.memory_space<vmem>>, %arg11: memref<32x64xbf16, #tpu.memory_space<vmem>>, %arg12: memref<1x64xf32, #tpu.memory_space<vmem>>, %arg13: memref<64x32xbf16, #tpu.memory_space<vmem>>, %arg14: memref<8x32xf32, #tpu.memory_space<vmem>>, %arg15: memref<32x96xbf16, #tpu.memory_space<vmem>>, %arg16: memref<1x96xf32, #tpu.memory_space<vmem>>, %arg17: memref<32x32xbf16, #tpu.memory_space<vmem>>, %arg18: memref<32x64xbf16, #tpu.memory_space<vmem>>, %arg19: memref<1x64xf32, #tpu.memory_space<vmem>>, %arg20: memref<64x32xbf16, #tpu.memory_space<vmem>>, %arg21: memref<8x32xf32, #tpu.memory_space<vmem>>, %arg22: memref<32x96xbf16, #tpu.memory_space<vmem>>, %arg23: memref<1x96xf32, #tpu.memory_space<vmem>>, %arg24: memref<32x32xbf16, #tpu.memory_space<vmem>>, %arg25: memref<32x64xbf16, #tpu.memory_space<vmem>>, %arg26: memref<1x64xf32, #tpu.memory_space<vmem>>, %arg27: memref<64x32xbf16, #tpu.memory_space<vmem>>, %arg28: memref<8x32xf32, #tpu.memory_space<vmem>>, %arg29: memref<32x128xbf16, #tpu.memory_space<vmem>>, %arg30: memref<1x128xf32, #tpu.memory_space<vmem>>, %arg31: memref<2x6xi32, #tpu.memory_space<vmem>>, %arg32: memref<2x3xi32, #tpu.memory_space<vmem>>, %arg33: memref<2x3xi32, #tpu.memory_space<vmem>>, %arg34: memref<32x128xf32, #tpu.memory_space<vmem>>, %arg35: memref<2x3xf32, #tpu.memory_space<vmem>>) attributes {dimension_semantics = [], scalar_prefetch = 0 : i64, scratch_operands = 0 : i64, tpu.core_type = #tpu.core_type<tc>} {
    %c0 = arith.constant 0 : index
    %c0_0 = arith.constant 0 : index
    %0 = vector.load %arg0[%c0, %c0_0] : memref<16x32xf32, #tpu.memory_space<vmem>>, vector<16x32xf32>
    %c0_1 = arith.constant 0 : index
    %c0_2 = arith.constant 0 : index
    %1 = vector.load %arg1[%c0_1, %c0_2] : memref<16x16xf32, #tpu.memory_space<vmem>>, vector<16x16xf32>
    %c0_3 = arith.constant 0 : index
    %c0_4 = arith.constant 0 : index
    %2 = vector.load %arg8[%c0_3, %c0_4] : memref<32x96xbf16, #tpu.memory_space<vmem>>, vector<32x96xbf16>
    %c0_5 = arith.constant 0 : index
    %c0_6 = arith.constant 0 : index
    %3 = vector.load %arg9[%c0_5, %c0_6] : memref<1x96xf32, #tpu.memory_space<vmem>>, vector<1x96xf32>
    %c0_7 = arith.constant 0 : index
    %c0_8 = arith.constant 0 : index
    %4 = vector.load %arg10[%c0_7, %c0_8] : memref<32x32xbf16, #tpu.memory_space<vmem>>, vector<32x32xbf16>
    %c0_9 = arith.constant 0 : index
    %c0_10 = arith.constant 0 : index
    %5 = vector.load %arg11[%c0_9, %c0_10] : memref<32x64xbf16, #tpu.memory_space<vmem>>, vector<32x64xbf16>
    %c0_11 = arith.constant 0 : index
    %c0_12 = arith.constant 0 : index
    %6 = vector.load %arg12[%c0_11, %c0_12] : memref<1x64xf32, #tpu.memory_space<vmem>>, vector<1x64xf32>
    %c0_13 = arith.constant 0 : index
    %c0_14 = arith.constant 0 : index
    %7 = vector.load %arg13[%c0_13, %c0_14] : memref<64x32xbf16, #tpu.memory_space<vmem>>, vector<64x32xbf16>
    %c0_15 = arith.constant 0 : index
    %c0_16 = arith.constant 0 : index
    %8 = vector.load %arg14[%c0_15, %c0_16] : memref<8x32xf32, #tpu.memory_space<vmem>>, vector<8x32xf32>
    %9 = vector.extract_strided_slice %8 {offsets = [0, 0], sizes = [1, 32], strides = [1, 1]} : vector<8x32xf32> to vector<1x32xf32>
    %10 = vector.extract_strided_slice %8 {offsets = [1, 0], sizes = [1, 32], strides = [1, 1]} : vector<8x32xf32> to vector<1x32xf32>
    %11 = vector.extract_strided_slice %8 {offsets = [2, 0], sizes = [1, 32], strides = [1, 1]} : vector<8x32xf32> to vector<1x32xf32>
    %12 = vector.extract_strided_slice %8 {offsets = [3, 0], sizes = [1, 32], strides = [1, 1]} : vector<8x32xf32> to vector<1x32xf32>
    %13 = vector.extract_strided_slice %8 {offsets = [4, 0], sizes = [1, 32], strides = [1, 1]} : vector<8x32xf32> to vector<1x32xf32>
    %14 = vector.extract_strided_slice %8 {offsets = [5, 0], sizes = [1, 32], strides = [1, 1]} : vector<8x32xf32> to vector<1x32xf32>
    %15 = arith.truncf %0 : vector<16x32xf32> to vector<16x32xbf16>
    %cst = arith.constant dense<0.000000e+00> : vector<16x96xf32>
    %16 = tpu.matmul %15, %2, %cst {dimension_numbers = #tpu.dot_dimension_numbers<[1], [0], [0], [1], [0, 0, 1, 1], [], []>} : vector<16x32xbf16>, vector<32x96xbf16>, vector<16x96xf32> -> vector<16x96xf32>
    %17 = vector.broadcast %3 : vector<1x96xf32> to vector<16x96xf32>
    %18 = arith.addf %16, %17 : vector<16x96xf32>
    %19 = arith.truncf %18 : vector<16x96xf32> to vector<16x96xbf16>
    %20 = vector.extract_strided_slice %19 {offsets = [0, 0], sizes = [16, 32], strides = [1, 1]} : vector<16x96xbf16> to vector<16x32xbf16>
    %21 = vector.extract_strided_slice %19 {offsets = [0, 32], sizes = [16, 32], strides = [1, 1]} : vector<16x96xbf16> to vector<16x32xbf16>
    %22 = vector.extract_strided_slice %19 {offsets = [0, 64], sizes = [16, 32], strides = [1, 1]} : vector<16x96xbf16> to vector<16x32xbf16>
    %23 = vector.extract_strided_slice %20 {offsets = [0, 0], sizes = [16, 8], strides = [1, 1]} : vector<16x32xbf16> to vector<16x8xbf16>
    %24 = vector.extract_strided_slice %21 {offsets = [0, 0], sizes = [16, 8], strides = [1, 1]} : vector<16x32xbf16> to vector<16x8xbf16>
    %cst_17 = arith.constant dense<0.000000e+00> : vector<16x16xf32>
    %25 = tpu.matmul %23, %24, %cst_17 {dimension_numbers = #tpu.dot_dimension_numbers<[1], [1], [0], [0], [0, 0, 1, 0], [], []>} : vector<16x8xbf16>, vector<16x8xbf16>, vector<16x16xf32> -> vector<16x16xf32>
    %cst_18 = arith.constant 0.353553385 : f32
    %26 = vector.broadcast %cst_18 : f32 to vector<16x16xf32>
    %27 = arith.mulf %25, %26 : vector<16x16xf32>
    %28 = arith.addf %27, %1 : vector<16x16xf32>
    %cst_19 = arith.constant dense<0xFF800000> : vector<16xf32>
    %29 = vector.multi_reduction <maximumf>, %28, %cst_19 [1] : vector<16x16xf32> to vector<16xf32>
    %30 = vector.shape_cast %29 : vector<16xf32> to vector<16x1xf32>
    %31 = vector.broadcast %30 : vector<16x1xf32> to vector<16x16xf32>
    %32 = arith.subf %28, %31 : vector<16x16xf32>
    %33 = math.exp %32 : vector<16x16xf32>
    %cst_20 = arith.constant dense<0.000000e+00> : vector<16xf32>
    %34 = vector.multi_reduction <add>, %33, %cst_20 [1] : vector<16x16xf32> to vector<16xf32>
    %35 = vector.shape_cast %34 : vector<16xf32> to vector<16x1xf32>
    %36 = tpu.reciprocal %35 {approx = true} : vector<16x1xf32> -> vector<16x1xf32>
    %37 = vector.broadcast %36 : vector<16x1xf32> to vector<16x16xf32>
    %38 = arith.mulf %33, %37 : vector<16x16xf32>
    %39 = arith.truncf %38 : vector<16x16xf32> to vector<16x16xbf16>
    %40 = vector.extract_strided_slice %22 {offsets = [0, 0], sizes = [16, 8], strides = [1, 1]} : vector<16x32xbf16> to vector<16x8xbf16>
    %cst_21 = arith.constant dense<0.000000e+00> : vector<16x8xf32>
    %41 = tpu.matmul %39, %40, %cst_21 {dimension_numbers = #tpu.dot_dimension_numbers<[1], [0], [0], [1], [0, 0, 1, 1], [], []>} : vector<16x16xbf16>, vector<16x8xbf16>, vector<16x8xf32> -> vector<16x8xf32>
    %42 = vector.extract_strided_slice %20 {offsets = [0, 8], sizes = [16, 8], strides = [1, 1]} : vector<16x32xbf16> to vector<16x8xbf16>
    %43 = vector.extract_strided_slice %21 {offsets = [0, 8], sizes = [16, 8], strides = [1, 1]} : vector<16x32xbf16> to vector<16x8xbf16>
    %cst_22 = arith.constant dense<0.000000e+00> : vector<16x16xf32>
    %44 = tpu.matmul %42, %43, %cst_22 {dimension_numbers = #tpu.dot_dimension_numbers<[1], [1], [0], [0], [0, 0, 1, 0], [], []>} : vector<16x8xbf16>, vector<16x8xbf16>, vector<16x16xf32> -> vector<16x16xf32>
    %cst_23 = arith.constant 0.353553385 : f32
    %45 = vector.broadcast %cst_23 : f32 to vector<16x16xf32>
    %46 = arith.mulf %44, %45 : vector<16x16xf32>
    %47 = arith.addf %46, %1 : vector<16x16xf32>
    %cst_24 = arith.constant dense<0xFF800000> : vector<16xf32>
    %48 = vector.multi_reduction <maximumf>, %47, %cst_24 [1] : vector<16x16xf32> to vector<16xf32>
    %49 = vector.shape_cast %48 : vector<16xf32> to vector<16x1xf32>
    %50 = vector.broadcast %49 : vector<16x1xf32> to vector<16x16xf32>
    %51 = arith.subf %47, %50 : vector<16x16xf32>
    %52 = math.exp %51 : vector<16x16xf32>
    %cst_25 = arith.constant dense<0.000000e+00> : vector<16xf32>
    %53 = vector.multi_reduction <add>, %52, %cst_25 [1] : vector<16x16xf32> to vector<16xf32>
    %54 = vector.shape_cast %53 : vector<16xf32> to vector<16x1xf32>
    %55 = tpu.reciprocal %54 {approx = true} : vector<16x1xf32> -> vector<16x1xf32>
    %56 = vector.broadcast %55 : vector<16x1xf32> to vector<16x16xf32>
    %57 = arith.mulf %52, %56 : vector<16x16xf32>
    %58 = arith.truncf %57 : vector<16x16xf32> to vector<16x16xbf16>
    %59 = vector.extract_strided_slice %22 {offsets = [0, 8], sizes = [16, 8], strides = [1, 1]} : vector<16x32xbf16> to vector<16x8xbf16>
    %cst_26 = arith.constant dense<0.000000e+00> : vector<16x8xf32>
    %60 = tpu.matmul %58, %59, %cst_26 {dimension_numbers = #tpu.dot_dimension_numbers<[1], [0], [0], [1], [0, 0, 1, 1], [], []>} : vector<16x16xbf16>, vector<16x8xbf16>, vector<16x8xf32> -> vector<16x8xf32>
    %61 = vector.extract_strided_slice %20 {offsets = [0, 16], sizes = [16, 8], strides = [1, 1]} : vector<16x32xbf16> to vector<16x8xbf16>
    %62 = vector.extract_strided_slice %21 {offsets = [0, 16], sizes = [16, 8], strides = [1, 1]} : vector<16x32xbf16> to vector<16x8xbf16>
    %cst_27 = arith.constant dense<0.000000e+00> : vector<16x16xf32>
    %63 = tpu.matmul %61, %62, %cst_27 {dimension_numbers = #tpu.dot_dimension_numbers<[1], [1], [0], [0], [0, 0, 1, 0], [], []>} : vector<16x8xbf16>, vector<16x8xbf16>, vector<16x16xf32> -> vector<16x16xf32>
    %cst_28 = arith.constant 0.353553385 : f32
    %64 = vector.broadcast %cst_28 : f32 to vector<16x16xf32>
    %65 = arith.mulf %63, %64 : vector<16x16xf32>
    %66 = arith.addf %65, %1 : vector<16x16xf32>
    %cst_29 = arith.constant dense<0xFF800000> : vector<16xf32>
    %67 = vector.multi_reduction <maximumf>, %66, %cst_29 [1] : vector<16x16xf32> to vector<16xf32>
    %68 = vector.shape_cast %67 : vector<16xf32> to vector<16x1xf32>
    %69 = vector.broadcast %68 : vector<16x1xf32> to vector<16x16xf32>
    %70 = arith.subf %66, %69 : vector<16x16xf32>
    %71 = math.exp %70 : vector<16x16xf32>
    %cst_30 = arith.constant dense<0.000000e+00> : vector<16xf32>
    %72 = vector.multi_reduction <add>, %71, %cst_30 [1] : vector<16x16xf32> to vector<16xf32>
    %73 = vector.shape_cast %72 : vector<16xf32> to vector<16x1xf32>
    %74 = tpu.reciprocal %73 {approx = true} : vector<16x1xf32> -> vector<16x1xf32>
    %75 = vector.broadcast %74 : vector<16x1xf32> to vector<16x16xf32>
    %76 = arith.mulf %71, %75 : vector<16x16xf32>
    %77 = arith.truncf %76 : vector<16x16xf32> to vector<16x16xbf16>
    %78 = vector.extract_strided_slice %22 {offsets = [0, 16], sizes = [16, 8], strides = [1, 1]} : vector<16x32xbf16> to vector<16x8xbf16>
    %cst_31 = arith.constant dense<0.000000e+00> : vector<16x8xf32>
    %79 = tpu.matmul %77, %78, %cst_31 {dimension_numbers = #tpu.dot_dimension_numbers<[1], [0], [0], [1], [0, 0, 1, 1], [], []>} : vector<16x16xbf16>, vector<16x8xbf16>, vector<16x8xf32> -> vector<16x8xf32>
    %80 = vector.extract_strided_slice %20 {offsets = [0, 24], sizes = [16, 8], strides = [1, 1]} : vector<16x32xbf16> to vector<16x8xbf16>
    %81 = vector.extract_strided_slice %21 {offsets = [0, 24], sizes = [16, 8], strides = [1, 1]} : vector<16x32xbf16> to vector<16x8xbf16>
    %cst_32 = arith.constant dense<0.000000e+00> : vector<16x16xf32>
    %82 = tpu.matmul %80, %81, %cst_32 {dimension_numbers = #tpu.dot_dimension_numbers<[1], [1], [0], [0], [0, 0, 1, 0], [], []>} : vector<16x8xbf16>, vector<16x8xbf16>, vector<16x16xf32> -> vector<16x16xf32>
    %cst_33 = arith.constant 0.353553385 : f32
    %83 = vector.broadcast %cst_33 : f32 to vector<16x16xf32>
    %84 = arith.mulf %82, %83 : vector<16x16xf32>
    %85 = arith.addf %84, %1 : vector<16x16xf32>
    %cst_34 = arith.constant dense<0xFF800000> : vector<16xf32>
    %86 = vector.multi_reduction <maximumf>, %85, %cst_34 [1] : vector<16x16xf32> to vector<16xf32>
    %87 = vector.shape_cast %86 : vector<16xf32> to vector<16x1xf32>
    %88 = vector.broadcast %87 : vector<16x1xf32> to vector<16x16xf32>
    %89 = arith.subf %85, %88 : vector<16x16xf32>
    %90 = math.exp %89 : vector<16x16xf32>
    %cst_35 = arith.constant dense<0.000000e+00> : vector<16xf32>
    %91 = vector.multi_reduction <add>, %90, %cst_35 [1] : vector<16x16xf32> to vector<16xf32>
    %92 = vector.shape_cast %91 : vector<16xf32> to vector<16x1xf32>
    %93 = tpu.reciprocal %92 {approx = true} : vector<16x1xf32> -> vector<16x1xf32>
    %94 = vector.broadcast %93 : vector<16x1xf32> to vector<16x16xf32>
    %95 = arith.mulf %90, %94 : vector<16x16xf32>
    %96 = arith.truncf %95 : vector<16x16xf32> to vector<16x16xbf16>
    %97 = vector.extract_strided_slice %22 {offsets = [0, 24], sizes = [16, 8], strides = [1, 1]} : vector<16x32xbf16> to vector<16x8xbf16>
    %cst_36 = arith.constant dense<0.000000e+00> : vector<16x8xf32>
    %98 = tpu.matmul %96, %97, %cst_36 {dimension_numbers = #tpu.dot_dimension_numbers<[1], [0], [0], [1], [0, 0, 1, 1], [], []>} : vector<16x16xbf16>, vector<16x8xbf16>, vector<16x8xf32> -> vector<16x8xf32>
    %99 = tpu.concatenate %41, %60, %79, %98 in 1 : vector<16x8xf32>, vector<16x8xf32>, vector<16x8xf32>, vector<16x8xf32> -> vector<16x32xf32>
    %100 = arith.truncf %99 : vector<16x32xf32> to vector<16x32xbf16>
    %cst_37 = arith.constant dense<0.000000e+00> : vector<16x32xf32>
    %101 = tpu.matmul %100, %4, %cst_37 {dimension_numbers = #tpu.dot_dimension_numbers<[1], [0], [0], [1], [0, 0, 1, 1], [], []>} : vector<16x32xbf16>, vector<32x32xbf16>, vector<16x32xf32> -> vector<16x32xf32>
    %102 = vector.broadcast %9 : vector<1x32xf32> to vector<16x32xf32>
    %103 = arith.addf %101, %102 : vector<16x32xf32>
    %104 = arith.addf %0, %103 : vector<16x32xf32>
    %cst_38 = arith.constant dense<0.000000e+00> : vector<16xf32>
    %105 = vector.multi_reduction <add>, %104, %cst_38 [1] : vector<16x32xf32> to vector<16xf32>
    %106 = vector.shape_cast %105 : vector<16xf32> to vector<16x1xf32>
    %cst_39 = arith.constant 3.200000e+01 : f32
    %107 = vector.broadcast %cst_39 : f32 to vector<16x1xf32>
    %108 = arith.divf %106, %107 : vector<16x1xf32>
    %109 = vector.broadcast %108 : vector<16x1xf32> to vector<16x32xf32>
    %110 = arith.subf %104, %109 : vector<16x32xf32>
    %111 = arith.mulf %110, %110 : vector<16x32xf32>
    %cst_40 = arith.constant dense<0.000000e+00> : vector<16xf32>
    %112 = vector.multi_reduction <add>, %111, %cst_40 [1] : vector<16x32xf32> to vector<16xf32>
    %113 = vector.shape_cast %112 : vector<16xf32> to vector<16x1xf32>
    %cst_41 = arith.constant 3.200000e+01 : f32
    %114 = vector.broadcast %cst_41 : f32 to vector<16x1xf32>
    %115 = arith.divf %113, %114 : vector<16x1xf32>
    %116 = vector.broadcast %108 : vector<16x1xf32> to vector<16x32xf32>
    %117 = arith.subf %104, %116 : vector<16x32xf32>
    %cst_42 = arith.constant 9.99999996E-13 : f32
    %118 = vector.broadcast %cst_42 : f32 to vector<16x1xf32>
    %119 = arith.addf %115, %118 : vector<16x1xf32>
    %120 = math.rsqrt %119 : vector<16x1xf32>
    %121 = vector.broadcast %120 : vector<16x1xf32> to vector<16x32xf32>
    %122 = arith.mulf %117, %121 : vector<16x32xf32>
    %123 = vector.broadcast %10 : vector<1x32xf32> to vector<16x32xf32>
    %124 = arith.mulf %122, %123 : vector<16x32xf32>
    %125 = vector.broadcast %11 : vector<1x32xf32> to vector<16x32xf32>
    %126 = arith.addf %124, %125 : vector<16x32xf32>
    %127 = arith.truncf %126 : vector<16x32xf32> to vector<16x32xbf16>
    %cst_43 = arith.constant dense<0.000000e+00> : vector<16x64xf32>
    %128 = tpu.matmul %127, %5, %cst_43 {dimension_numbers = #tpu.dot_dimension_numbers<[1], [0], [0], [1], [0, 0, 1, 1], [], []>} : vector<16x32xbf16>, vector<32x64xbf16>, vector<16x64xf32> -> vector<16x64xf32>
    %129 = vector.broadcast %6 : vector<1x64xf32> to vector<16x64xf32>
    %130 = arith.addf %128, %129 : vector<16x64xf32>
    %131 = arith.mulf %130, %130 : vector<16x64xf32>
    %132 = arith.mulf %130, %131 : vector<16x64xf32>
    %cst_44 = arith.constant 4.471500e-02 : f32
    %133 = vector.broadcast %cst_44 : f32 to vector<16x64xf32>
    %134 = arith.mulf %133, %132 : vector<16x64xf32>
    %135 = arith.addf %130, %134 : vector<16x64xf32>
    %cst_45 = arith.constant 0.797884583 : f32
    %136 = vector.broadcast %cst_45 : f32 to vector<16x64xf32>
    %137 = arith.mulf %136, %135 : vector<16x64xf32>
    %138 = math.tanh %137 : vector<16x64xf32>
    %cst_46 = arith.constant 1.000000e+00 : f32
    %139 = vector.broadcast %cst_46 : f32 to vector<16x64xf32>
    %140 = arith.addf %139, %138 : vector<16x64xf32>
    %cst_47 = arith.constant 5.000000e-01 : f32
    %141 = vector.broadcast %cst_47 : f32 to vector<16x64xf32>
    %142 = arith.mulf %141, %140 : vector<16x64xf32>
    %143 = arith.mulf %130, %142 : vector<16x64xf32>
    %144 = arith.truncf %143 : vector<16x64xf32> to vector<16x64xbf16>
    %cst_48 = arith.constant dense<0.000000e+00> : vector<16x32xf32>
    %145 = tpu.matmul %144, %7, %cst_48 {dimension_numbers = #tpu.dot_dimension_numbers<[1], [0], [0], [1], [0, 0, 1, 1], [], []>} : vector<16x64xbf16>, vector<64x32xbf16>, vector<16x32xf32> -> vector<16x32xf32>
    %146 = vector.broadcast %12 : vector<1x32xf32> to vector<16x32xf32>
    %147 = arith.addf %145, %146 : vector<16x32xf32>
    %148 = arith.addf %126, %147 : vector<16x32xf32>
    %cst_49 = arith.constant dense<0.000000e+00> : vector<16xf32>
    %149 = vector.multi_reduction <add>, %148, %cst_49 [1] : vector<16x32xf32> to vector<16xf32>
    %150 = vector.shape_cast %149 : vector<16xf32> to vector<16x1xf32>
    %cst_50 = arith.constant 3.200000e+01 : f32
    %151 = vector.broadcast %cst_50 : f32 to vector<16x1xf32>
    %152 = arith.divf %150, %151 : vector<16x1xf32>
    %153 = vector.broadcast %152 : vector<16x1xf32> to vector<16x32xf32>
    %154 = arith.subf %148, %153 : vector<16x32xf32>
    %155 = arith.mulf %154, %154 : vector<16x32xf32>
    %cst_51 = arith.constant dense<0.000000e+00> : vector<16xf32>
    %156 = vector.multi_reduction <add>, %155, %cst_51 [1] : vector<16x32xf32> to vector<16xf32>
    %157 = vector.shape_cast %156 : vector<16xf32> to vector<16x1xf32>
    %cst_52 = arith.constant 3.200000e+01 : f32
    %158 = vector.broadcast %cst_52 : f32 to vector<16x1xf32>
    %159 = arith.divf %157, %158 : vector<16x1xf32>
    %160 = vector.broadcast %152 : vector<16x1xf32> to vector<16x32xf32>
    %161 = arith.subf %148, %160 : vector<16x32xf32>
    %cst_53 = arith.constant 9.99999996E-13 : f32
    %162 = vector.broadcast %cst_53 : f32 to vector<16x1xf32>
    %163 = arith.addf %159, %162 : vector<16x1xf32>
    %164 = math.rsqrt %163 : vector<16x1xf32>
    %165 = vector.broadcast %164 : vector<16x1xf32> to vector<16x32xf32>
    %166 = arith.mulf %161, %165 : vector<16x32xf32>
    %167 = vector.broadcast %13 : vector<1x32xf32> to vector<16x32xf32>
    %168 = arith.mulf %166, %167 : vector<16x32xf32>
    %169 = vector.broadcast %14 : vector<1x32xf32> to vector<16x32xf32>
    %170 = arith.addf %168, %169 : vector<16x32xf32>
    %c0_54 = arith.constant 0 : index
    %c0_55 = arith.constant 0 : index
    %171 = vector.load %arg2[%c0_54, %c0_55] : memref<16x32xf32, #tpu.memory_space<vmem>>, vector<16x32xf32>
    %172 = arith.truncf %171 : vector<16x32xf32> to vector<16x32xbf16>
    %c0_56 = arith.constant 0 : index
    %c0_57 = arith.constant 0 : index
    %173 = vector.load %arg4[%c0_56, %c0_57] : memref<32x32xbf16, #tpu.memory_space<vmem>>, vector<32x32xbf16>
    %cst_58 = arith.constant dense<0.000000e+00> : vector<16x32xf32>
    %174 = tpu.matmul %172, %173, %cst_58 {dimension_numbers = #tpu.dot_dimension_numbers<[1], [0], [0], [1], [0, 0, 1, 1], [], []>} : vector<16x32xbf16>, vector<32x32xbf16>, vector<16x32xf32> -> vector<16x32xf32>
    %c0_59 = arith.constant 0 : index
    %c0_60 = arith.constant 0 : index
    %175 = vector.load %arg5[%c0_59, %c0_60] : memref<1x32xf32, #tpu.memory_space<vmem>>, vector<1x32xf32>
    %176 = vector.broadcast %175 : vector<1x32xf32> to vector<16x32xf32>
    %177 = arith.addf %174, %176 : vector<16x32xf32>
    %c0_61 = arith.constant 0 : index
    %c0_62 = arith.constant 0 : index
    %178 = vector.load %arg3[%c0_61, %c0_62] : memref<16x16xf32, #tpu.memory_space<vmem>>, vector<16x16xf32>
    %c0_63 = arith.constant 0 : index
    %c0_64 = arith.constant 0 : index
    %179 = vector.load %arg15[%c0_63, %c0_64] : memref<32x96xbf16, #tpu.memory_space<vmem>>, vector<32x96xbf16>
    %c0_65 = arith.constant 0 : index
    %c0_66 = arith.constant 0 : index
    %180 = vector.load %arg16[%c0_65, %c0_66] : memref<1x96xf32, #tpu.memory_space<vmem>>, vector<1x96xf32>
    %c0_67 = arith.constant 0 : index
    %c0_68 = arith.constant 0 : index
    %181 = vector.load %arg17[%c0_67, %c0_68] : memref<32x32xbf16, #tpu.memory_space<vmem>>, vector<32x32xbf16>
    %c0_69 = arith.constant 0 : index
    %c0_70 = arith.constant 0 : index
    %182 = vector.load %arg18[%c0_69, %c0_70] : memref<32x64xbf16, #tpu.memory_space<vmem>>, vector<32x64xbf16>
    %c0_71 = arith.constant 0 : index
    %c0_72 = arith.constant 0 : index
    %183 = vector.load %arg19[%c0_71, %c0_72] : memref<1x64xf32, #tpu.memory_space<vmem>>, vector<1x64xf32>
    %c0_73 = arith.constant 0 : index
    %c0_74 = arith.constant 0 : index
    %184 = vector.load %arg20[%c0_73, %c0_74] : memref<64x32xbf16, #tpu.memory_space<vmem>>, vector<64x32xbf16>
    %c0_75 = arith.constant 0 : index
    %c0_76 = arith.constant 0 : index
    %185 = vector.load %arg21[%c0_75, %c0_76] : memref<8x32xf32, #tpu.memory_space<vmem>>, vector<8x32xf32>
    %186 = vector.extract_strided_slice %185 {offsets = [0, 0], sizes = [1, 32], strides = [1, 1]} : vector<8x32xf32> to vector<1x32xf32>
    %187 = vector.extract_strided_slice %185 {offsets = [1, 0], sizes = [1, 32], strides = [1, 1]} : vector<8x32xf32> to vector<1x32xf32>
    %188 = vector.extract_strided_slice %185 {offsets = [2, 0], sizes = [1, 32], strides = [1, 1]} : vector<8x32xf32> to vector<1x32xf32>
    %189 = vector.extract_strided_slice %185 {offsets = [3, 0], sizes = [1, 32], strides = [1, 1]} : vector<8x32xf32> to vector<1x32xf32>
    %190 = vector.extract_strided_slice %185 {offsets = [4, 0], sizes = [1, 32], strides = [1, 1]} : vector<8x32xf32> to vector<1x32xf32>
    %191 = vector.extract_strided_slice %185 {offsets = [5, 0], sizes = [1, 32], strides = [1, 1]} : vector<8x32xf32> to vector<1x32xf32>
    %192 = arith.truncf %177 : vector<16x32xf32> to vector<16x32xbf16>
    %cst_77 = arith.constant dense<0.000000e+00> : vector<16x96xf32>
    %193 = tpu.matmul %192, %179, %cst_77 {dimension_numbers = #tpu.dot_dimension_numbers<[1], [0], [0], [1], [0, 0, 1, 1], [], []>} : vector<16x32xbf16>, vector<32x96xbf16>, vector<16x96xf32> -> vector<16x96xf32>
    %194 = vector.broadcast %180 : vector<1x96xf32> to vector<16x96xf32>
    %195 = arith.addf %193, %194 : vector<16x96xf32>
    %196 = arith.truncf %195 : vector<16x96xf32> to vector<16x96xbf16>
    %197 = vector.extract_strided_slice %196 {offsets = [0, 0], sizes = [16, 32], strides = [1, 1]} : vector<16x96xbf16> to vector<16x32xbf16>
    %198 = vector.extract_strided_slice %196 {offsets = [0, 32], sizes = [16, 32], strides = [1, 1]} : vector<16x96xbf16> to vector<16x32xbf16>
    %199 = vector.extract_strided_slice %196 {offsets = [0, 64], sizes = [16, 32], strides = [1, 1]} : vector<16x96xbf16> to vector<16x32xbf16>
    %200 = vector.extract_strided_slice %197 {offsets = [0, 0], sizes = [16, 8], strides = [1, 1]} : vector<16x32xbf16> to vector<16x8xbf16>
    %201 = vector.extract_strided_slice %198 {offsets = [0, 0], sizes = [16, 8], strides = [1, 1]} : vector<16x32xbf16> to vector<16x8xbf16>
    %cst_78 = arith.constant dense<0.000000e+00> : vector<16x16xf32>
    %202 = tpu.matmul %200, %201, %cst_78 {dimension_numbers = #tpu.dot_dimension_numbers<[1], [1], [0], [0], [0, 0, 1, 0], [], []>} : vector<16x8xbf16>, vector<16x8xbf16>, vector<16x16xf32> -> vector<16x16xf32>
    %cst_79 = arith.constant 0.353553385 : f32
    %203 = vector.broadcast %cst_79 : f32 to vector<16x16xf32>
    %204 = arith.mulf %202, %203 : vector<16x16xf32>
    %205 = arith.addf %204, %178 : vector<16x16xf32>
    %cst_80 = arith.constant dense<0xFF800000> : vector<16xf32>
    %206 = vector.multi_reduction <maximumf>, %205, %cst_80 [1] : vector<16x16xf32> to vector<16xf32>
    %207 = vector.shape_cast %206 : vector<16xf32> to vector<16x1xf32>
    %208 = vector.broadcast %207 : vector<16x1xf32> to vector<16x16xf32>
    %209 = arith.subf %205, %208 : vector<16x16xf32>
    %210 = math.exp %209 : vector<16x16xf32>
    %cst_81 = arith.constant dense<0.000000e+00> : vector<16xf32>
    %211 = vector.multi_reduction <add>, %210, %cst_81 [1] : vector<16x16xf32> to vector<16xf32>
    %212 = vector.shape_cast %211 : vector<16xf32> to vector<16x1xf32>
    %213 = tpu.reciprocal %212 {approx = true} : vector<16x1xf32> -> vector<16x1xf32>
    %214 = vector.broadcast %213 : vector<16x1xf32> to vector<16x16xf32>
    %215 = arith.mulf %210, %214 : vector<16x16xf32>
    %216 = arith.truncf %215 : vector<16x16xf32> to vector<16x16xbf16>
    %217 = vector.extract_strided_slice %199 {offsets = [0, 0], sizes = [16, 8], strides = [1, 1]} : vector<16x32xbf16> to vector<16x8xbf16>
    %cst_82 = arith.constant dense<0.000000e+00> : vector<16x8xf32>
    %218 = tpu.matmul %216, %217, %cst_82 {dimension_numbers = #tpu.dot_dimension_numbers<[1], [0], [0], [1], [0, 0, 1, 1], [], []>} : vector<16x16xbf16>, vector<16x8xbf16>, vector<16x8xf32> -> vector<16x8xf32>
    %219 = vector.extract_strided_slice %197 {offsets = [0, 8], sizes = [16, 8], strides = [1, 1]} : vector<16x32xbf16> to vector<16x8xbf16>
    %220 = vector.extract_strided_slice %198 {offsets = [0, 8], sizes = [16, 8], strides = [1, 1]} : vector<16x32xbf16> to vector<16x8xbf16>
    %cst_83 = arith.constant dense<0.000000e+00> : vector<16x16xf32>
    %221 = tpu.matmul %219, %220, %cst_83 {dimension_numbers = #tpu.dot_dimension_numbers<[1], [1], [0], [0], [0, 0, 1, 0], [], []>} : vector<16x8xbf16>, vector<16x8xbf16>, vector<16x16xf32> -> vector<16x16xf32>
    %cst_84 = arith.constant 0.353553385 : f32
    %222 = vector.broadcast %cst_84 : f32 to vector<16x16xf32>
    %223 = arith.mulf %221, %222 : vector<16x16xf32>
    %224 = arith.addf %223, %178 : vector<16x16xf32>
    %cst_85 = arith.constant dense<0xFF800000> : vector<16xf32>
    %225 = vector.multi_reduction <maximumf>, %224, %cst_85 [1] : vector<16x16xf32> to vector<16xf32>
    %226 = vector.shape_cast %225 : vector<16xf32> to vector<16x1xf32>
    %227 = vector.broadcast %226 : vector<16x1xf32> to vector<16x16xf32>
    %228 = arith.subf %224, %227 : vector<16x16xf32>
    %229 = math.exp %228 : vector<16x16xf32>
    %cst_86 = arith.constant dense<0.000000e+00> : vector<16xf32>
    %230 = vector.multi_reduction <add>, %229, %cst_86 [1] : vector<16x16xf32> to vector<16xf32>
    %231 = vector.shape_cast %230 : vector<16xf32> to vector<16x1xf32>
    %232 = tpu.reciprocal %231 {approx = true} : vector<16x1xf32> -> vector<16x1xf32>
    %233 = vector.broadcast %232 : vector<16x1xf32> to vector<16x16xf32>
    %234 = arith.mulf %229, %233 : vector<16x16xf32>
    %235 = arith.truncf %234 : vector<16x16xf32> to vector<16x16xbf16>
    %236 = vector.extract_strided_slice %199 {offsets = [0, 8], sizes = [16, 8], strides = [1, 1]} : vector<16x32xbf16> to vector<16x8xbf16>
    %cst_87 = arith.constant dense<0.000000e+00> : vector<16x8xf32>
    %237 = tpu.matmul %235, %236, %cst_87 {dimension_numbers = #tpu.dot_dimension_numbers<[1], [0], [0], [1], [0, 0, 1, 1], [], []>} : vector<16x16xbf16>, vector<16x8xbf16>, vector<16x8xf32> -> vector<16x8xf32>
    %238 = vector.extract_strided_slice %197 {offsets = [0, 16], sizes = [16, 8], strides = [1, 1]} : vector<16x32xbf16> to vector<16x8xbf16>
    %239 = vector.extract_strided_slice %198 {offsets = [0, 16], sizes = [16, 8], strides = [1, 1]} : vector<16x32xbf16> to vector<16x8xbf16>
    %cst_88 = arith.constant dense<0.000000e+00> : vector<16x16xf32>
    %240 = tpu.matmul %238, %239, %cst_88 {dimension_numbers = #tpu.dot_dimension_numbers<[1], [1], [0], [0], [0, 0, 1, 0], [], []>} : vector<16x8xbf16>, vector<16x8xbf16>, vector<16x16xf32> -> vector<16x16xf32>
    %cst_89 = arith.constant 0.353553385 : f32
    %241 = vector.broadcast %cst_89 : f32 to vector<16x16xf32>
    %242 = arith.mulf %240, %241 : vector<16x16xf32>
    %243 = arith.addf %242, %178 : vector<16x16xf32>
    %cst_90 = arith.constant dense<0xFF800000> : vector<16xf32>
    %244 = vector.multi_reduction <maximumf>, %243, %cst_90 [1] : vector<16x16xf32> to vector<16xf32>
    %245 = vector.shape_cast %244 : vector<16xf32> to vector<16x1xf32>
    %246 = vector.broadcast %245 : vector<16x1xf32> to vector<16x16xf32>
    %247 = arith.subf %243, %246 : vector<16x16xf32>
    %248 = math.exp %247 : vector<16x16xf32>
    %cst_91 = arith.constant dense<0.000000e+00> : vector<16xf32>
    %249 = vector.multi_reduction <add>, %248, %cst_91 [1] : vector<16x16xf32> to vector<16xf32>
    %250 = vector.shape_cast %249 : vector<16xf32> to vector<16x1xf32>
    %251 = tpu.reciprocal %250 {approx = true} : vector<16x1xf32> -> vector<16x1xf32>
    %252 = vector.broadcast %251 : vector<16x1xf32> to vector<16x16xf32>
    %253 = arith.mulf %248, %252 : vector<16x16xf32>
    %254 = arith.truncf %253 : vector<16x16xf32> to vector<16x16xbf16>
    %255 = vector.extract_strided_slice %199 {offsets = [0, 16], sizes = [16, 8], strides = [1, 1]} : vector<16x32xbf16> to vector<16x8xbf16>
    %cst_92 = arith.constant dense<0.000000e+00> : vector<16x8xf32>
    %256 = tpu.matmul %254, %255, %cst_92 {dimension_numbers = #tpu.dot_dimension_numbers<[1], [0], [0], [1], [0, 0, 1, 1], [], []>} : vector<16x16xbf16>, vector<16x8xbf16>, vector<16x8xf32> -> vector<16x8xf32>
    %257 = vector.extract_strided_slice %197 {offsets = [0, 24], sizes = [16, 8], strides = [1, 1]} : vector<16x32xbf16> to vector<16x8xbf16>
    %258 = vector.extract_strided_slice %198 {offsets = [0, 24], sizes = [16, 8], strides = [1, 1]} : vector<16x32xbf16> to vector<16x8xbf16>
    %cst_93 = arith.constant dense<0.000000e+00> : vector<16x16xf32>
    %259 = tpu.matmul %257, %258, %cst_93 {dimension_numbers = #tpu.dot_dimension_numbers<[1], [1], [0], [0], [0, 0, 1, 0], [], []>} : vector<16x8xbf16>, vector<16x8xbf16>, vector<16x16xf32> -> vector<16x16xf32>
    %cst_94 = arith.constant 0.353553385 : f32
    %260 = vector.broadcast %cst_94 : f32 to vector<16x16xf32>
    %261 = arith.mulf %259, %260 : vector<16x16xf32>
    %262 = arith.addf %261, %178 : vector<16x16xf32>
    %cst_95 = arith.constant dense<0xFF800000> : vector<16xf32>
    %263 = vector.multi_reduction <maximumf>, %262, %cst_95 [1] : vector<16x16xf32> to vector<16xf32>
    %264 = vector.shape_cast %263 : vector<16xf32> to vector<16x1xf32>
    %265 = vector.broadcast %264 : vector<16x1xf32> to vector<16x16xf32>
    %266 = arith.subf %262, %265 : vector<16x16xf32>
    %267 = math.exp %266 : vector<16x16xf32>
    %cst_96 = arith.constant dense<0.000000e+00> : vector<16xf32>
    %268 = vector.multi_reduction <add>, %267, %cst_96 [1] : vector<16x16xf32> to vector<16xf32>
    %269 = vector.shape_cast %268 : vector<16xf32> to vector<16x1xf32>
    %270 = tpu.reciprocal %269 {approx = true} : vector<16x1xf32> -> vector<16x1xf32>
    %271 = vector.broadcast %270 : vector<16x1xf32> to vector<16x16xf32>
    %272 = arith.mulf %267, %271 : vector<16x16xf32>
    %273 = arith.truncf %272 : vector<16x16xf32> to vector<16x16xbf16>
    %274 = vector.extract_strided_slice %199 {offsets = [0, 24], sizes = [16, 8], strides = [1, 1]} : vector<16x32xbf16> to vector<16x8xbf16>
    %cst_97 = arith.constant dense<0.000000e+00> : vector<16x8xf32>
    %275 = tpu.matmul %273, %274, %cst_97 {dimension_numbers = #tpu.dot_dimension_numbers<[1], [0], [0], [1], [0, 0, 1, 1], [], []>} : vector<16x16xbf16>, vector<16x8xbf16>, vector<16x8xf32> -> vector<16x8xf32>
    %276 = tpu.concatenate %218, %237, %256, %275 in 1 : vector<16x8xf32>, vector<16x8xf32>, vector<16x8xf32>, vector<16x8xf32> -> vector<16x32xf32>
    %277 = arith.truncf %276 : vector<16x32xf32> to vector<16x32xbf16>
    %cst_98 = arith.constant dense<0.000000e+00> : vector<16x32xf32>
    %278 = tpu.matmul %277, %181, %cst_98 {dimension_numbers = #tpu.dot_dimension_numbers<[1], [0], [0], [1], [0, 0, 1, 1], [], []>} : vector<16x32xbf16>, vector<32x32xbf16>, vector<16x32xf32> -> vector<16x32xf32>
    %279 = vector.broadcast %186 : vector<1x32xf32> to vector<16x32xf32>
    %280 = arith.addf %278, %279 : vector<16x32xf32>
    %281 = arith.addf %177, %280 : vector<16x32xf32>
    %cst_99 = arith.constant dense<0.000000e+00> : vector<16xf32>
    %282 = vector.multi_reduction <add>, %281, %cst_99 [1] : vector<16x32xf32> to vector<16xf32>
    %283 = vector.shape_cast %282 : vector<16xf32> to vector<16x1xf32>
    %cst_100 = arith.constant 3.200000e+01 : f32
    %284 = vector.broadcast %cst_100 : f32 to vector<16x1xf32>
    %285 = arith.divf %283, %284 : vector<16x1xf32>
    %286 = vector.broadcast %285 : vector<16x1xf32> to vector<16x32xf32>
    %287 = arith.subf %281, %286 : vector<16x32xf32>
    %288 = arith.mulf %287, %287 : vector<16x32xf32>
    %cst_101 = arith.constant dense<0.000000e+00> : vector<16xf32>
    %289 = vector.multi_reduction <add>, %288, %cst_101 [1] : vector<16x32xf32> to vector<16xf32>
    %290 = vector.shape_cast %289 : vector<16xf32> to vector<16x1xf32>
    %cst_102 = arith.constant 3.200000e+01 : f32
    %291 = vector.broadcast %cst_102 : f32 to vector<16x1xf32>
    %292 = arith.divf %290, %291 : vector<16x1xf32>
    %293 = vector.broadcast %285 : vector<16x1xf32> to vector<16x32xf32>
    %294 = arith.subf %281, %293 : vector<16x32xf32>
    %cst_103 = arith.constant 9.99999996E-13 : f32
    %295 = vector.broadcast %cst_103 : f32 to vector<16x1xf32>
    %296 = arith.addf %292, %295 : vector<16x1xf32>
    %297 = math.rsqrt %296 : vector<16x1xf32>
    %298 = vector.broadcast %297 : vector<16x1xf32> to vector<16x32xf32>
    %299 = arith.mulf %294, %298 : vector<16x32xf32>
    %300 = vector.broadcast %187 : vector<1x32xf32> to vector<16x32xf32>
    %301 = arith.mulf %299, %300 : vector<16x32xf32>
    %302 = vector.broadcast %188 : vector<1x32xf32> to vector<16x32xf32>
    %303 = arith.addf %301, %302 : vector<16x32xf32>
    %304 = arith.truncf %303 : vector<16x32xf32> to vector<16x32xbf16>
    %cst_104 = arith.constant dense<0.000000e+00> : vector<16x64xf32>
    %305 = tpu.matmul %304, %182, %cst_104 {dimension_numbers = #tpu.dot_dimension_numbers<[1], [0], [0], [1], [0, 0, 1, 1], [], []>} : vector<16x32xbf16>, vector<32x64xbf16>, vector<16x64xf32> -> vector<16x64xf32>
    %306 = vector.broadcast %183 : vector<1x64xf32> to vector<16x64xf32>
    %307 = arith.addf %305, %306 : vector<16x64xf32>
    %308 = arith.mulf %307, %307 : vector<16x64xf32>
    %309 = arith.mulf %307, %308 : vector<16x64xf32>
    %cst_105 = arith.constant 4.471500e-02 : f32
    %310 = vector.broadcast %cst_105 : f32 to vector<16x64xf32>
    %311 = arith.mulf %310, %309 : vector<16x64xf32>
    %312 = arith.addf %307, %311 : vector<16x64xf32>
    %cst_106 = arith.constant 0.797884583 : f32
    %313 = vector.broadcast %cst_106 : f32 to vector<16x64xf32>
    %314 = arith.mulf %313, %312 : vector<16x64xf32>
    %315 = math.tanh %314 : vector<16x64xf32>
    %cst_107 = arith.constant 1.000000e+00 : f32
    %316 = vector.broadcast %cst_107 : f32 to vector<16x64xf32>
    %317 = arith.addf %316, %315 : vector<16x64xf32>
    %cst_108 = arith.constant 5.000000e-01 : f32
    %318 = vector.broadcast %cst_108 : f32 to vector<16x64xf32>
    %319 = arith.mulf %318, %317 : vector<16x64xf32>
    %320 = arith.mulf %307, %319 : vector<16x64xf32>
    %321 = arith.truncf %320 : vector<16x64xf32> to vector<16x64xbf16>
    %cst_109 = arith.constant dense<0.000000e+00> : vector<16x32xf32>
    %322 = tpu.matmul %321, %184, %cst_109 {dimension_numbers = #tpu.dot_dimension_numbers<[1], [0], [0], [1], [0, 0, 1, 1], [], []>} : vector<16x64xbf16>, vector<64x32xbf16>, vector<16x32xf32> -> vector<16x32xf32>
    %323 = vector.broadcast %189 : vector<1x32xf32> to vector<16x32xf32>
    %324 = arith.addf %322, %323 : vector<16x32xf32>
    %325 = arith.addf %303, %324 : vector<16x32xf32>
    %cst_110 = arith.constant dense<0.000000e+00> : vector<16xf32>
    %326 = vector.multi_reduction <add>, %325, %cst_110 [1] : vector<16x32xf32> to vector<16xf32>
    %327 = vector.shape_cast %326 : vector<16xf32> to vector<16x1xf32>
    %cst_111 = arith.constant 3.200000e+01 : f32
    %328 = vector.broadcast %cst_111 : f32 to vector<16x1xf32>
    %329 = arith.divf %327, %328 : vector<16x1xf32>
    %330 = vector.broadcast %329 : vector<16x1xf32> to vector<16x32xf32>
    %331 = arith.subf %325, %330 : vector<16x32xf32>
    %332 = arith.mulf %331, %331 : vector<16x32xf32>
    %cst_112 = arith.constant dense<0.000000e+00> : vector<16xf32>
    %333 = vector.multi_reduction <add>, %332, %cst_112 [1] : vector<16x32xf32> to vector<16xf32>
    %334 = vector.shape_cast %333 : vector<16xf32> to vector<16x1xf32>
    %cst_113 = arith.constant 3.200000e+01 : f32
    %335 = vector.broadcast %cst_113 : f32 to vector<16x1xf32>
    %336 = arith.divf %334, %335 : vector<16x1xf32>
    %337 = vector.broadcast %329 : vector<16x1xf32> to vector<16x32xf32>
    %338 = arith.subf %325, %337 : vector<16x32xf32>
    %cst_114 = arith.constant 9.99999996E-13 : f32
    %339 = vector.broadcast %cst_114 : f32 to vector<16x1xf32>
    %340 = arith.addf %336, %339 : vector<16x1xf32>
    %341 = math.rsqrt %340 : vector<16x1xf32>
    %342 = vector.broadcast %341 : vector<16x1xf32> to vector<16x32xf32>
    %343 = arith.mulf %338, %342 : vector<16x32xf32>
    %344 = vector.broadcast %190 : vector<1x32xf32> to vector<16x32xf32>
    %345 = arith.mulf %343, %344 : vector<16x32xf32>
    %346 = vector.broadcast %191 : vector<1x32xf32> to vector<16x32xf32>
    %347 = arith.addf %345, %346 : vector<16x32xf32>
    %c0_115 = arith.constant 0 : index
    %c0_116 = arith.constant 0 : index
    %348 = vector.load %arg6[%c0_115, %c0_116] : memref<2x32xf32, #tpu.memory_space<vmem>>, vector<2x32xf32>
    %349 = vector.extract_strided_slice %170 {offsets = [0, 0], sizes = [8, 32], strides = [1, 1]} : vector<16x32xf32> to vector<8x32xf32>
    %350 = vector.extract_strided_slice %348 {offsets = [0, 0], sizes = [1, 32], strides = [1, 1]} : vector<2x32xf32> to vector<1x32xf32>
    %351 = vector.broadcast %350 : vector<1x32xf32> to vector<8x32xf32>
    %352 = arith.addf %349, %351 : vector<8x32xf32>
    %353 = vector.extract_strided_slice %347 {offsets = [0, 0], sizes = [8, 32], strides = [1, 1]} : vector<16x32xf32> to vector<8x32xf32>
    %354 = vector.extract_strided_slice %348 {offsets = [1, 0], sizes = [1, 32], strides = [1, 1]} : vector<2x32xf32> to vector<1x32xf32>
    %355 = vector.broadcast %354 : vector<1x32xf32> to vector<8x32xf32>
    %356 = arith.addf %353, %355 : vector<8x32xf32>
    %357 = vector.extract_strided_slice %170 {offsets = [8, 0], sizes = [8, 32], strides = [1, 1]} : vector<16x32xf32> to vector<8x32xf32>
    %358 = vector.extract_strided_slice %348 {offsets = [0, 0], sizes = [1, 32], strides = [1, 1]} : vector<2x32xf32> to vector<1x32xf32>
    %359 = vector.broadcast %358 : vector<1x32xf32> to vector<8x32xf32>
    %360 = arith.addf %357, %359 : vector<8x32xf32>
    %361 = vector.extract_strided_slice %347 {offsets = [8, 0], sizes = [8, 32], strides = [1, 1]} : vector<16x32xf32> to vector<8x32xf32>
    %362 = vector.extract_strided_slice %348 {offsets = [1, 0], sizes = [1, 32], strides = [1, 1]} : vector<2x32xf32> to vector<1x32xf32>
    %363 = vector.broadcast %362 : vector<1x32xf32> to vector<8x32xf32>
    %364 = arith.addf %361, %363 : vector<8x32xf32>
    %365 = tpu.concatenate %352, %356, %360, %364 in 0 : vector<8x32xf32>, vector<8x32xf32>, vector<8x32xf32>, vector<8x32xf32> -> vector<32x32xf32>
    %c0_117 = arith.constant 0 : index
    %c0_118 = arith.constant 0 : index
    %366 = vector.load %arg7[%c0_117, %c0_118] : memref<32x32xf32, #tpu.memory_space<vmem>>, vector<32x32xf32>
    %c0_119 = arith.constant 0 : index
    %c0_120 = arith.constant 0 : index
    %367 = vector.load %arg22[%c0_119, %c0_120] : memref<32x96xbf16, #tpu.memory_space<vmem>>, vector<32x96xbf16>
    %c0_121 = arith.constant 0 : index
    %c0_122 = arith.constant 0 : index
    %368 = vector.load %arg23[%c0_121, %c0_122] : memref<1x96xf32, #tpu.memory_space<vmem>>, vector<1x96xf32>
    %c0_123 = arith.constant 0 : index
    %c0_124 = arith.constant 0 : index
    %369 = vector.load %arg24[%c0_123, %c0_124] : memref<32x32xbf16, #tpu.memory_space<vmem>>, vector<32x32xbf16>
    %c0_125 = arith.constant 0 : index
    %c0_126 = arith.constant 0 : index
    %370 = vector.load %arg25[%c0_125, %c0_126] : memref<32x64xbf16, #tpu.memory_space<vmem>>, vector<32x64xbf16>
    %c0_127 = arith.constant 0 : index
    %c0_128 = arith.constant 0 : index
    %371 = vector.load %arg26[%c0_127, %c0_128] : memref<1x64xf32, #tpu.memory_space<vmem>>, vector<1x64xf32>
    %c0_129 = arith.constant 0 : index
    %c0_130 = arith.constant 0 : index
    %372 = vector.load %arg27[%c0_129, %c0_130] : memref<64x32xbf16, #tpu.memory_space<vmem>>, vector<64x32xbf16>
    %c0_131 = arith.constant 0 : index
    %c0_132 = arith.constant 0 : index
    %373 = vector.load %arg28[%c0_131, %c0_132] : memref<8x32xf32, #tpu.memory_space<vmem>>, vector<8x32xf32>
    %374 = vector.extract_strided_slice %373 {offsets = [0, 0], sizes = [1, 32], strides = [1, 1]} : vector<8x32xf32> to vector<1x32xf32>
    %375 = vector.extract_strided_slice %373 {offsets = [1, 0], sizes = [1, 32], strides = [1, 1]} : vector<8x32xf32> to vector<1x32xf32>
    %376 = vector.extract_strided_slice %373 {offsets = [2, 0], sizes = [1, 32], strides = [1, 1]} : vector<8x32xf32> to vector<1x32xf32>
    %377 = vector.extract_strided_slice %373 {offsets = [3, 0], sizes = [1, 32], strides = [1, 1]} : vector<8x32xf32> to vector<1x32xf32>
    %378 = vector.extract_strided_slice %373 {offsets = [4, 0], sizes = [1, 32], strides = [1, 1]} : vector<8x32xf32> to vector<1x32xf32>
    %379 = vector.extract_strided_slice %373 {offsets = [5, 0], sizes = [1, 32], strides = [1, 1]} : vector<8x32xf32> to vector<1x32xf32>
    %380 = arith.truncf %365 : vector<32x32xf32> to vector<32x32xbf16>
    %cst_133 = arith.constant dense<0.000000e+00> : vector<32x96xf32>
    %381 = tpu.matmul %380, %367, %cst_133 {dimension_numbers = #tpu.dot_dimension_numbers<[1], [0], [0], [1], [0, 0, 1, 1], [], []>} : vector<32x32xbf16>, vector<32x96xbf16>, vector<32x96xf32> -> vector<32x96xf32>
    %382 = vector.broadcast %368 : vector<1x96xf32> to vector<32x96xf32>
    %383 = arith.addf %381, %382 : vector<32x96xf32>
    %384 = arith.truncf %383 : vector<32x96xf32> to vector<32x96xbf16>
    %385 = vector.extract_strided_slice %384 {offsets = [0, 0], sizes = [32, 32], strides = [1, 1]} : vector<32x96xbf16> to vector<32x32xbf16>
    %386 = vector.extract_strided_slice %384 {offsets = [0, 32], sizes = [32, 32], strides = [1, 1]} : vector<32x96xbf16> to vector<32x32xbf16>
    %387 = vector.extract_strided_slice %384 {offsets = [0, 64], sizes = [32, 32], strides = [1, 1]} : vector<32x96xbf16> to vector<32x32xbf16>
    %388 = vector.extract_strided_slice %385 {offsets = [0, 0], sizes = [32, 8], strides = [1, 1]} : vector<32x32xbf16> to vector<32x8xbf16>
    %389 = vector.extract_strided_slice %386 {offsets = [0, 0], sizes = [32, 8], strides = [1, 1]} : vector<32x32xbf16> to vector<32x8xbf16>
    %cst_134 = arith.constant dense<0.000000e+00> : vector<32x32xf32>
    %390 = tpu.matmul %388, %389, %cst_134 {dimension_numbers = #tpu.dot_dimension_numbers<[1], [1], [0], [0], [0, 0, 1, 0], [], []>} : vector<32x8xbf16>, vector<32x8xbf16>, vector<32x32xf32> -> vector<32x32xf32>
    %cst_135 = arith.constant 0.353553385 : f32
    %391 = vector.broadcast %cst_135 : f32 to vector<32x32xf32>
    %392 = arith.mulf %390, %391 : vector<32x32xf32>
    %393 = arith.addf %392, %366 : vector<32x32xf32>
    %cst_136 = arith.constant dense<0xFF800000> : vector<32xf32>
    %394 = vector.multi_reduction <maximumf>, %393, %cst_136 [1] : vector<32x32xf32> to vector<32xf32>
    %395 = vector.shape_cast %394 : vector<32xf32> to vector<32x1xf32>
    %396 = vector.broadcast %395 : vector<32x1xf32> to vector<32x32xf32>
    %397 = arith.subf %393, %396 : vector<32x32xf32>
    %398 = math.exp %397 : vector<32x32xf32>
    %cst_137 = arith.constant dense<0.000000e+00> : vector<32xf32>
    %399 = vector.multi_reduction <add>, %398, %cst_137 [1] : vector<32x32xf32> to vector<32xf32>
    %400 = vector.shape_cast %399 : vector<32xf32> to vector<32x1xf32>
    %401 = tpu.reciprocal %400 {approx = true} : vector<32x1xf32> -> vector<32x1xf32>
    %402 = vector.broadcast %401 : vector<32x1xf32> to vector<32x32xf32>
    %403 = arith.mulf %398, %402 : vector<32x32xf32>
    %404 = arith.truncf %403 : vector<32x32xf32> to vector<32x32xbf16>
    %405 = vector.extract_strided_slice %387 {offsets = [0, 0], sizes = [32, 8], strides = [1, 1]} : vector<32x32xbf16> to vector<32x8xbf16>
    %cst_138 = arith.constant dense<0.000000e+00> : vector<32x8xf32>
    %406 = tpu.matmul %404, %405, %cst_138 {dimension_numbers = #tpu.dot_dimension_numbers<[1], [0], [0], [1], [0, 0, 1, 1], [], []>} : vector<32x32xbf16>, vector<32x8xbf16>, vector<32x8xf32> -> vector<32x8xf32>
    %407 = vector.extract_strided_slice %385 {offsets = [0, 8], sizes = [32, 8], strides = [1, 1]} : vector<32x32xbf16> to vector<32x8xbf16>
    %408 = vector.extract_strided_slice %386 {offsets = [0, 8], sizes = [32, 8], strides = [1, 1]} : vector<32x32xbf16> to vector<32x8xbf16>
    %cst_139 = arith.constant dense<0.000000e+00> : vector<32x32xf32>
    %409 = tpu.matmul %407, %408, %cst_139 {dimension_numbers = #tpu.dot_dimension_numbers<[1], [1], [0], [0], [0, 0, 1, 0], [], []>} : vector<32x8xbf16>, vector<32x8xbf16>, vector<32x32xf32> -> vector<32x32xf32>
    %cst_140 = arith.constant 0.353553385 : f32
    %410 = vector.broadcast %cst_140 : f32 to vector<32x32xf32>
    %411 = arith.mulf %409, %410 : vector<32x32xf32>
    %412 = arith.addf %411, %366 : vector<32x32xf32>
    %cst_141 = arith.constant dense<0xFF800000> : vector<32xf32>
    %413 = vector.multi_reduction <maximumf>, %412, %cst_141 [1] : vector<32x32xf32> to vector<32xf32>
    %414 = vector.shape_cast %413 : vector<32xf32> to vector<32x1xf32>
    %415 = vector.broadcast %414 : vector<32x1xf32> to vector<32x32xf32>
    %416 = arith.subf %412, %415 : vector<32x32xf32>
    %417 = math.exp %416 : vector<32x32xf32>
    %cst_142 = arith.constant dense<0.000000e+00> : vector<32xf32>
    %418 = vector.multi_reduction <add>, %417, %cst_142 [1] : vector<32x32xf32> to vector<32xf32>
    %419 = vector.shape_cast %418 : vector<32xf32> to vector<32x1xf32>
    %420 = tpu.reciprocal %419 {approx = true} : vector<32x1xf32> -> vector<32x1xf32>
    %421 = vector.broadcast %420 : vector<32x1xf32> to vector<32x32xf32>
    %422 = arith.mulf %417, %421 : vector<32x32xf32>
    %423 = arith.truncf %422 : vector<32x32xf32> to vector<32x32xbf16>
    %424 = vector.extract_strided_slice %387 {offsets = [0, 8], sizes = [32, 8], strides = [1, 1]} : vector<32x32xbf16> to vector<32x8xbf16>
    %cst_143 = arith.constant dense<0.000000e+00> : vector<32x8xf32>
    %425 = tpu.matmul %423, %424, %cst_143 {dimension_numbers = #tpu.dot_dimension_numbers<[1], [0], [0], [1], [0, 0, 1, 1], [], []>} : vector<32x32xbf16>, vector<32x8xbf16>, vector<32x8xf32> -> vector<32x8xf32>
    %426 = vector.extract_strided_slice %385 {offsets = [0, 16], sizes = [32, 8], strides = [1, 1]} : vector<32x32xbf16> to vector<32x8xbf16>
    %427 = vector.extract_strided_slice %386 {offsets = [0, 16], sizes = [32, 8], strides = [1, 1]} : vector<32x32xbf16> to vector<32x8xbf16>
    %cst_144 = arith.constant dense<0.000000e+00> : vector<32x32xf32>
    %428 = tpu.matmul %426, %427, %cst_144 {dimension_numbers = #tpu.dot_dimension_numbers<[1], [1], [0], [0], [0, 0, 1, 0], [], []>} : vector<32x8xbf16>, vector<32x8xbf16>, vector<32x32xf32> -> vector<32x32xf32>
    %cst_145 = arith.constant 0.353553385 : f32
    %429 = vector.broadcast %cst_145 : f32 to vector<32x32xf32>
    %430 = arith.mulf %428, %429 : vector<32x32xf32>
    %431 = arith.addf %430, %366 : vector<32x32xf32>
    %cst_146 = arith.constant dense<0xFF800000> : vector<32xf32>
    %432 = vector.multi_reduction <maximumf>, %431, %cst_146 [1] : vector<32x32xf32> to vector<32xf32>
    %433 = vector.shape_cast %432 : vector<32xf32> to vector<32x1xf32>
    %434 = vector.broadcast %433 : vector<32x1xf32> to vector<32x32xf32>
    %435 = arith.subf %431, %434 : vector<32x32xf32>
    %436 = math.exp %435 : vector<32x32xf32>
    %cst_147 = arith.constant dense<0.000000e+00> : vector<32xf32>
    %437 = vector.multi_reduction <add>, %436, %cst_147 [1] : vector<32x32xf32> to vector<32xf32>
    %438 = vector.shape_cast %437 : vector<32xf32> to vector<32x1xf32>
    %439 = tpu.reciprocal %438 {approx = true} : vector<32x1xf32> -> vector<32x1xf32>
    %440 = vector.broadcast %439 : vector<32x1xf32> to vector<32x32xf32>
    %441 = arith.mulf %436, %440 : vector<32x32xf32>
    %442 = arith.truncf %441 : vector<32x32xf32> to vector<32x32xbf16>
    %443 = vector.extract_strided_slice %387 {offsets = [0, 16], sizes = [32, 8], strides = [1, 1]} : vector<32x32xbf16> to vector<32x8xbf16>
    %cst_148 = arith.constant dense<0.000000e+00> : vector<32x8xf32>
    %444 = tpu.matmul %442, %443, %cst_148 {dimension_numbers = #tpu.dot_dimension_numbers<[1], [0], [0], [1], [0, 0, 1, 1], [], []>} : vector<32x32xbf16>, vector<32x8xbf16>, vector<32x8xf32> -> vector<32x8xf32>
    %445 = vector.extract_strided_slice %385 {offsets = [0, 24], sizes = [32, 8], strides = [1, 1]} : vector<32x32xbf16> to vector<32x8xbf16>
    %446 = vector.extract_strided_slice %386 {offsets = [0, 24], sizes = [32, 8], strides = [1, 1]} : vector<32x32xbf16> to vector<32x8xbf16>
    %cst_149 = arith.constant dense<0.000000e+00> : vector<32x32xf32>
    %447 = tpu.matmul %445, %446, %cst_149 {dimension_numbers = #tpu.dot_dimension_numbers<[1], [1], [0], [0], [0, 0, 1, 0], [], []>} : vector<32x8xbf16>, vector<32x8xbf16>, vector<32x32xf32> -> vector<32x32xf32>
    %cst_150 = arith.constant 0.353553385 : f32
    %448 = vector.broadcast %cst_150 : f32 to vector<32x32xf32>
    %449 = arith.mulf %447, %448 : vector<32x32xf32>
    %450 = arith.addf %449, %366 : vector<32x32xf32>
    %cst_151 = arith.constant dense<0xFF800000> : vector<32xf32>
    %451 = vector.multi_reduction <maximumf>, %450, %cst_151 [1] : vector<32x32xf32> to vector<32xf32>
    %452 = vector.shape_cast %451 : vector<32xf32> to vector<32x1xf32>
    %453 = vector.broadcast %452 : vector<32x1xf32> to vector<32x32xf32>
    %454 = arith.subf %450, %453 : vector<32x32xf32>
    %455 = math.exp %454 : vector<32x32xf32>
    %cst_152 = arith.constant dense<0.000000e+00> : vector<32xf32>
    %456 = vector.multi_reduction <add>, %455, %cst_152 [1] : vector<32x32xf32> to vector<32xf32>
    %457 = vector.shape_cast %456 : vector<32xf32> to vector<32x1xf32>
    %458 = tpu.reciprocal %457 {approx = true} : vector<32x1xf32> -> vector<32x1xf32>
    %459 = vector.broadcast %458 : vector<32x1xf32> to vector<32x32xf32>
    %460 = arith.mulf %455, %459 : vector<32x32xf32>
    %461 = arith.truncf %460 : vector<32x32xf32> to vector<32x32xbf16>
    %462 = vector.extract_strided_slice %387 {offsets = [0, 24], sizes = [32, 8], strides = [1, 1]} : vector<32x32xbf16> to vector<32x8xbf16>
    %cst_153 = arith.constant dense<0.000000e+00> : vector<32x8xf32>
    %463 = tpu.matmul %461, %462, %cst_153 {dimension_numbers = #tpu.dot_dimension_numbers<[1], [0], [0], [1], [0, 0, 1, 1], [], []>} : vector<32x32xbf16>, vector<32x8xbf16>, vector<32x8xf32> -> vector<32x8xf32>
    %464 = tpu.concatenate %406, %425, %444, %463 in 1 : vector<32x8xf32>, vector<32x8xf32>, vector<32x8xf32>, vector<32x8xf32> -> vector<32x32xf32>
    %465 = arith.truncf %464 : vector<32x32xf32> to vector<32x32xbf16>
    %cst_154 = arith.constant dense<0.000000e+00> : vector<32x32xf32>
    %466 = tpu.matmul %465, %369, %cst_154 {dimension_numbers = #tpu.dot_dimension_numbers<[1], [0], [0], [1], [0, 0, 1, 1], [], []>} : vector<32x32xbf16>, vector<32x32xbf16>, vector<32x32xf32> -> vector<32x32xf32>
    %467 = vector.broadcast %374 : vector<1x32xf32> to vector<32x32xf32>
    %468 = arith.addf %466, %467 : vector<32x32xf32>
    %469 = arith.addf %365, %468 : vector<32x32xf32>
    %cst_155 = arith.constant dense<0.000000e+00> : vector<32xf32>
    %470 = vector.multi_reduction <add>, %469, %cst_155 [1] : vector<32x32xf32> to vector<32xf32>
    %471 = vector.shape_cast %470 : vector<32xf32> to vector<32x1xf32>
    %cst_156 = arith.constant 3.200000e+01 : f32
    %472 = vector.broadcast %cst_156 : f32 to vector<32x1xf32>
    %473 = arith.divf %471, %472 : vector<32x1xf32>
    %474 = vector.broadcast %473 : vector<32x1xf32> to vector<32x32xf32>
    %475 = arith.subf %469, %474 : vector<32x32xf32>
    %476 = arith.mulf %475, %475 : vector<32x32xf32>
    %cst_157 = arith.constant dense<0.000000e+00> : vector<32xf32>
    %477 = vector.multi_reduction <add>, %476, %cst_157 [1] : vector<32x32xf32> to vector<32xf32>
    %478 = vector.shape_cast %477 : vector<32xf32> to vector<32x1xf32>
    %cst_158 = arith.constant 3.200000e+01 : f32
    %479 = vector.broadcast %cst_158 : f32 to vector<32x1xf32>
    %480 = arith.divf %478, %479 : vector<32x1xf32>
    %481 = vector.broadcast %473 : vector<32x1xf32> to vector<32x32xf32>
    %482 = arith.subf %469, %481 : vector<32x32xf32>
    %cst_159 = arith.constant 9.99999996E-13 : f32
    %483 = vector.broadcast %cst_159 : f32 to vector<32x1xf32>
    %484 = arith.addf %480, %483 : vector<32x1xf32>
    %485 = math.rsqrt %484 : vector<32x1xf32>
    %486 = vector.broadcast %485 : vector<32x1xf32> to vector<32x32xf32>
    %487 = arith.mulf %482, %486 : vector<32x32xf32>
    %488 = vector.broadcast %375 : vector<1x32xf32> to vector<32x32xf32>
    %489 = arith.mulf %487, %488 : vector<32x32xf32>
    %490 = vector.broadcast %376 : vector<1x32xf32> to vector<32x32xf32>
    %491 = arith.addf %489, %490 : vector<32x32xf32>
    %492 = arith.truncf %491 : vector<32x32xf32> to vector<32x32xbf16>
    %cst_160 = arith.constant dense<0.000000e+00> : vector<32x64xf32>
    %493 = tpu.matmul %492, %370, %cst_160 {dimension_numbers = #tpu.dot_dimension_numbers<[1], [0], [0], [1], [0, 0, 1, 1], [], []>} : vector<32x32xbf16>, vector<32x64xbf16>, vector<32x64xf32> -> vector<32x64xf32>
    %494 = vector.broadcast %371 : vector<1x64xf32> to vector<32x64xf32>
    %495 = arith.addf %493, %494 : vector<32x64xf32>
    %496 = arith.mulf %495, %495 : vector<32x64xf32>
    %497 = arith.mulf %495, %496 : vector<32x64xf32>
    %cst_161 = arith.constant 4.471500e-02 : f32
    %498 = vector.broadcast %cst_161 : f32 to vector<32x64xf32>
    %499 = arith.mulf %498, %497 : vector<32x64xf32>
    %500 = arith.addf %495, %499 : vector<32x64xf32>
    %cst_162 = arith.constant 0.797884583 : f32
    %501 = vector.broadcast %cst_162 : f32 to vector<32x64xf32>
    %502 = arith.mulf %501, %500 : vector<32x64xf32>
    %503 = math.tanh %502 : vector<32x64xf32>
    %cst_163 = arith.constant 1.000000e+00 : f32
    %504 = vector.broadcast %cst_163 : f32 to vector<32x64xf32>
    %505 = arith.addf %504, %503 : vector<32x64xf32>
    %cst_164 = arith.constant 5.000000e-01 : f32
    %506 = vector.broadcast %cst_164 : f32 to vector<32x64xf32>
    %507 = arith.mulf %506, %505 : vector<32x64xf32>
    %508 = arith.mulf %495, %507 : vector<32x64xf32>
    %509 = arith.truncf %508 : vector<32x64xf32> to vector<32x64xbf16>
    %cst_165 = arith.constant dense<0.000000e+00> : vector<32x32xf32>
    %510 = tpu.matmul %509, %372, %cst_165 {dimension_numbers = #tpu.dot_dimension_numbers<[1], [0], [0], [1], [0, 0, 1, 1], [], []>} : vector<32x64xbf16>, vector<64x32xbf16>, vector<32x32xf32> -> vector<32x32xf32>
    %511 = vector.broadcast %377 : vector<1x32xf32> to vector<32x32xf32>
    %512 = arith.addf %510, %511 : vector<32x32xf32>
    %513 = arith.addf %491, %512 : vector<32x32xf32>
    %cst_166 = arith.constant dense<0.000000e+00> : vector<32xf32>
    %514 = vector.multi_reduction <add>, %513, %cst_166 [1] : vector<32x32xf32> to vector<32xf32>
    %515 = vector.shape_cast %514 : vector<32xf32> to vector<32x1xf32>
    %cst_167 = arith.constant 3.200000e+01 : f32
    %516 = vector.broadcast %cst_167 : f32 to vector<32x1xf32>
    %517 = arith.divf %515, %516 : vector<32x1xf32>
    %518 = vector.broadcast %517 : vector<32x1xf32> to vector<32x32xf32>
    %519 = arith.subf %513, %518 : vector<32x32xf32>
    %520 = arith.mulf %519, %519 : vector<32x32xf32>
    %cst_168 = arith.constant dense<0.000000e+00> : vector<32xf32>
    %521 = vector.multi_reduction <add>, %520, %cst_168 [1] : vector<32x32xf32> to vector<32xf32>
    %522 = vector.shape_cast %521 : vector<32xf32> to vector<32x1xf32>
    %cst_169 = arith.constant 3.200000e+01 : f32
    %523 = vector.broadcast %cst_169 : f32 to vector<32x1xf32>
    %524 = arith.divf %522, %523 : vector<32x1xf32>
    %525 = vector.broadcast %517 : vector<32x1xf32> to vector<32x32xf32>
    %526 = arith.subf %513, %525 : vector<32x32xf32>
    %cst_170 = arith.constant 9.99999996E-13 : f32
    %527 = vector.broadcast %cst_170 : f32 to vector<32x1xf32>
    %528 = arith.addf %524, %527 : vector<32x1xf32>
    %529 = math.rsqrt %528 : vector<32x1xf32>
    %530 = vector.broadcast %529 : vector<32x1xf32> to vector<32x32xf32>
    %531 = arith.mulf %526, %530 : vector<32x32xf32>
    %532 = vector.broadcast %378 : vector<1x32xf32> to vector<32x32xf32>
    %533 = arith.mulf %531, %532 : vector<32x32xf32>
    %534 = vector.broadcast %379 : vector<1x32xf32> to vector<32x32xf32>
    %535 = arith.addf %533, %534 : vector<32x32xf32>
    %536 = arith.truncf %535 : vector<32x32xf32> to vector<32x32xbf16>
    %c0_171 = arith.constant 0 : index
    %c0_172 = arith.constant 0 : index
    %537 = vector.load %arg29[%c0_171, %c0_172] : memref<32x128xbf16, #tpu.memory_space<vmem>>, vector<32x128xbf16>
    %cst_173 = arith.constant dense<0.000000e+00> : vector<32x128xf32>
    %538 = tpu.matmul %536, %537, %cst_173 {dimension_numbers = #tpu.dot_dimension_numbers<[1], [0], [0], [1], [0, 0, 1, 1], [], []>} : vector<32x32xbf16>, vector<32x128xbf16>, vector<32x128xf32> -> vector<32x128xf32>
    %c0_174 = arith.constant 0 : index
    %c0_175 = arith.constant 0 : index
    %539 = vector.load %arg30[%c0_174, %c0_175] : memref<1x128xf32, #tpu.memory_space<vmem>>, vector<1x128xf32>
    %540 = vector.broadcast %539 : vector<1x128xf32> to vector<32x128xf32>
    %541 = arith.addf %538, %540 : vector<32x128xf32>
    %c0_176 = arith.constant 0 : index
    %c0_177 = arith.constant 0 : index
    %542 = vector.load %arg34[%c0_176, %c0_177] : memref<32x128xf32, #tpu.memory_space<vmem>>, vector<32x128xf32>
    tpu.vector_store %arg34[%c0_176, %c0_177], %541 {strides = array<i32>} : memref<32x128xf32, #tpu.memory_space<vmem>>, vector<32x128xf32>,
    %c0_178 = arith.constant 0 : index
    %c0_179 = arith.constant 0 : index
    %543 = vector.load %arg31[%c0_178, %c0_179] : memref<2x6xi32, #tpu.memory_space<vmem>>, vector<2x6xi32>
    %c0_180 = arith.constant 0 : index
    %c0_181 = arith.constant 0 : index
    %544 = vector.load %arg32[%c0_180, %c0_181] : memref<2x3xi32, #tpu.memory_space<vmem>>, vector<2x3xi32>
    %c0_182 = arith.constant 0 : index
    %c0_183 = arith.constant 0 : index
    %545 = vector.load %arg33[%c0_182, %c0_183] : memref<2x3xi32, #tpu.memory_space<vmem>>, vector<2x3xi32>
    %546 = vector.extract_strided_slice %541 {offsets = [0, 0], sizes = [16, 6], strides = [1, 1]} : vector<32x128xf32> to vector<16x6xf32>
    %547 = vector.extract_strided_slice %543 {offsets = [0, 0], sizes = [1, 6], strides = [1, 1]} : vector<2x6xi32> to vector<1x6xi32>
    %cst_184 = arith.constant dense<0xFF800000> : vector<6xf32>
    %548 = vector.multi_reduction <maximumf>, %546, %cst_184 [0] : vector<16x6xf32> to vector<6xf32>
    %549 = vector.shape_cast %548 : vector<6xf32> to vector<1x6xf32>
    %550 = vector.broadcast %549 : vector<1x6xf32> to vector<16x6xf32>
    %551 = arith.subf %546, %550 : vector<16x6xf32>
    %552 = math.exp %551 : vector<16x6xf32>
    %cst_185 = arith.constant dense<0.000000e+00> : vector<6xf32>
    %553 = vector.multi_reduction <add>, %552, %cst_185 [0] : vector<16x6xf32> to vector<6xf32>
    %554 = vector.shape_cast %553 : vector<6xf32> to vector<1x6xf32>
    %555 = math.log %554 : vector<1x6xf32>
    %556 = arith.addf %555, %549 : vector<1x6xf32>
    %557 = tpu.iota {dimensions = array<i32: 0>} : vector<16x6xi32>
    %558 = vector.broadcast %547 : vector<1x6xi32> to vector<16x6xi32>
    %559 = arith.cmpi eq, %557, %558 : vector<16x6xi32>
    %cst_186 = arith.constant 0.000000e+00 : f32
    %560 = vector.broadcast %cst_186 : f32 to vector<16x6xf32>
    %561 = arith.select %559, %546, %560 : vector<16x6xi1>, vector<16x6xf32>
    %cst_187 = arith.constant dense<0.000000e+00> : vector<6xf32>
    %562 = vector.multi_reduction <add>, %561, %cst_187 [0] : vector<16x6xf32> to vector<6xf32>
    %563 = vector.shape_cast %562 : vector<6xf32> to vector<1x6xf32>
    %c16_i32 = arith.constant 16 : i32
    %564 = vector.broadcast %c16_i32 : i32 to vector<1x6xi32>
    %565 = arith.cmpi eq, %547, %564 : vector<1x6xi32>
    %566 = arith.subf %556, %563 : vector<1x6xf32>
    %cst_188 = arith.constant 0.000000e+00 : f32
    %567 = vector.broadcast %cst_188 : f32 to vector<1x6xf32>
    %568 = arith.select %565, %567, %566 : vector<1x6xi1>, vector<1x6xf32>
    %569 = vector.extract_strided_slice %541 {offsets = [16, 0], sizes = [16, 6], strides = [1, 1]} : vector<32x128xf32> to vector<16x6xf32>
    %570 = vector.extract_strided_slice %543 {offsets = [1, 0], sizes = [1, 6], strides = [1, 1]} : vector<2x6xi32> to vector<1x6xi32>
    %cst_189 = arith.constant dense<0xFF800000> : vector<6xf32>
    %571 = vector.multi_reduction <maximumf>, %569, %cst_189 [0] : vector<16x6xf32> to vector<6xf32>
    %572 = vector.shape_cast %571 : vector<6xf32> to vector<1x6xf32>
    %573 = vector.broadcast %572 : vector<1x6xf32> to vector<16x6xf32>
    %574 = arith.subf %569, %573 : vector<16x6xf32>
    %575 = math.exp %574 : vector<16x6xf32>
    %cst_190 = arith.constant dense<0.000000e+00> : vector<6xf32>
    %576 = vector.multi_reduction <add>, %575, %cst_190 [0] : vector<16x6xf32> to vector<6xf32>
    %577 = vector.shape_cast %576 : vector<6xf32> to vector<1x6xf32>
    %578 = math.log %577 : vector<1x6xf32>
    %579 = arith.addf %578, %572 : vector<1x6xf32>
    %580 = tpu.iota {dimensions = array<i32: 0>} : vector<16x6xi32>
    %581 = vector.broadcast %570 : vector<1x6xi32> to vector<16x6xi32>
    %582 = arith.cmpi eq, %580, %581 : vector<16x6xi32>
    %cst_191 = arith.constant 0.000000e+00 : f32
    %583 = vector.broadcast %cst_191 : f32 to vector<16x6xf32>
    %584 = arith.select %582, %569, %583 : vector<16x6xi1>, vector<16x6xf32>
    %cst_192 = arith.constant dense<0.000000e+00> : vector<6xf32>
    %585 = vector.multi_reduction <add>, %584, %cst_192 [0] : vector<16x6xf32> to vector<6xf32>
    %586 = vector.shape_cast %585 : vector<6xf32> to vector<1x6xf32>
    %c16_i32_193 = arith.constant 16 : i32
    %587 = vector.broadcast %c16_i32_193 : i32 to vector<1x6xi32>
    %588 = arith.cmpi eq, %570, %587 : vector<1x6xi32>
    %589 = arith.subf %579, %586 : vector<1x6xf32>
    %cst_194 = arith.constant 0.000000e+00 : f32
    %590 = vector.broadcast %cst_194 : f32 to vector<1x6xf32>
    %591 = arith.select %588, %590, %589 : vector<1x6xi1>, vector<1x6xf32>
    %592 = tpu.concatenate %568, %591 in 0 : vector<1x6xf32>, vector<1x6xf32> -> vector<2x6xf32>
    %593 = vector.extract_strided_slice %541 {offsets = [0, 0], sizes = [1, 128], strides = [1, 1]} : vector<32x128xf32> to vector<1x128xf32>
    %594 = vector.extract_strided_slice %541 {offsets = [16, 0], sizes = [1, 128], strides = [1, 1]} : vector<32x128xf32> to vector<1x128xf32>
    %595 = tpu.concatenate %593, %594 in 0 : vector<1x128xf32>, vector<1x128xf32> -> vector<2x128xf32>
    %596 = vector.extract_strided_slice %595 {offsets = [0, 6], sizes = [2, 4], strides = [1, 1]} : vector<2x128xf32> to vector<2x4xf32>
    %597 = vector.extract_strided_slice %595 {offsets = [0, 18], sizes = [2, 4], strides = [1, 1]} : vector<2x128xf32> to vector<2x4xf32>
    %598 = vector.extract_strided_slice %544 {offsets = [0, 0], sizes = [2, 1], strides = [1, 1]} : vector<2x3xi32> to vector<2x1xi32>
    %cst_195 = arith.constant dense<0xFF800000> : vector<2xf32>
    %599 = vector.multi_reduction <maximumf>, %596, %cst_195 [1] : vector<2x4xf32> to vector<2xf32>
    %600 = vector.shape_cast %599 : vector<2xf32> to vector<2x1xf32>
    %601 = vector.broadcast %600 : vector<2x1xf32> to vector<2x4xf32>
    %602 = arith.subf %596, %601 : vector<2x4xf32>
    %603 = math.exp %602 : vector<2x4xf32>
    %cst_196 = arith.constant dense<0.000000e+00> : vector<2xf32>
    %604 = vector.multi_reduction <add>, %603, %cst_196 [1] : vector<2x4xf32> to vector<2xf32>
    %605 = vector.shape_cast %604 : vector<2xf32> to vector<2x1xf32>
    %606 = math.log %605 : vector<2x1xf32>
    %607 = arith.addf %606, %600 : vector<2x1xf32>
    %608 = tpu.iota {dimensions = array<i32: 1>} : vector<2x4xi32>
    %609 = vector.broadcast %598 : vector<2x1xi32> to vector<2x4xi32>
    %610 = arith.cmpi eq, %608, %609 : vector<2x4xi32>
    %cst_197 = arith.constant 0.000000e+00 : f32
    %611 = vector.broadcast %cst_197 : f32 to vector<2x4xf32>
    %612 = arith.select %610, %596, %611 : vector<2x4xi1>, vector<2x4xf32>
    %cst_198 = arith.constant dense<0.000000e+00> : vector<2xf32>
    %613 = vector.multi_reduction <add>, %612, %cst_198 [1] : vector<2x4xf32> to vector<2xf32>
    %614 = vector.shape_cast %613 : vector<2xf32> to vector<2x1xf32>
    %615 = arith.subf %607, %614 : vector<2x1xf32>
    %616 = vector.extract_strided_slice %545 {offsets = [0, 0], sizes = [2, 1], strides = [1, 1]} : vector<2x3xi32> to vector<2x1xi32>
    %cst_199 = arith.constant dense<0xFF800000> : vector<2xf32>
    %617 = vector.multi_reduction <maximumf>, %597, %cst_199 [1] : vector<2x4xf32> to vector<2xf32>
    %618 = vector.shape_cast %617 : vector<2xf32> to vector<2x1xf32>
    %619 = vector.broadcast %618 : vector<2x1xf32> to vector<2x4xf32>
    %620 = arith.subf %597, %619 : vector<2x4xf32>
    %621 = math.exp %620 : vector<2x4xf32>
    %cst_200 = arith.constant dense<0.000000e+00> : vector<2xf32>
    %622 = vector.multi_reduction <add>, %621, %cst_200 [1] : vector<2x4xf32> to vector<2xf32>
    %623 = vector.shape_cast %622 : vector<2xf32> to vector<2x1xf32>
    %624 = math.log %623 : vector<2x1xf32>
    %625 = arith.addf %624, %618 : vector<2x1xf32>
    %626 = tpu.iota {dimensions = array<i32: 1>} : vector<2x4xi32>
    %627 = vector.broadcast %616 : vector<2x1xi32> to vector<2x4xi32>
    %628 = arith.cmpi eq, %626, %627 : vector<2x4xi32>
    %cst_201 = arith.constant 0.000000e+00 : f32
    %629 = vector.broadcast %cst_201 : f32 to vector<2x4xf32>
    %630 = arith.select %628, %597, %629 : vector<2x4xi1>, vector<2x4xf32>
    %cst_202 = arith.constant dense<0.000000e+00> : vector<2xf32>
    %631 = vector.multi_reduction <add>, %630, %cst_202 [1] : vector<2x4xf32> to vector<2xf32>
    %632 = vector.shape_cast %631 : vector<2xf32> to vector<2x1xf32>
    %633 = arith.subf %625, %632 : vector<2x1xf32>
    %634 = vector.extract_strided_slice %592 {offsets = [0, 0], sizes = [2, 1], strides = [1, 1]} : vector<2x6xf32> to vector<2x1xf32>
    %635 = vector.extract_strided_slice %592 {offsets = [0, 1], sizes = [2, 1], strides = [1, 1]} : vector<2x6xf32> to vector<2x1xf32>
    %636 = vector.extract_strided_slice %543 {offsets = [0, 0], sizes = [2, 1], strides = [1, 1]} : vector<2x6xi32> to vector<2x1xi32>
    %c0_i32 = arith.constant 0 : i32
    %637 = vector.broadcast %c0_i32 : i32 to vector<2x1xi32>
    %638 = arith.cmpi sgt, %636, %637 : vector<2x1xi32>
    %639 = arith.extui %638 : vector<2x1xi1> to vector<2x1xi32>
    %640 = arith.sitofp %639 : vector<2x1xi32> to vector<2x1xf32>
    %641 = arith.addf %634, %635 : vector<2x1xf32>
    %cst_203 = arith.constant 5.000000e-01 : f32
    %642 = vector.broadcast %cst_203 : f32 to vector<2x1xf32>
    %643 = arith.mulf %642, %641 : vector<2x1xf32>
    %644 = arith.mulf %643, %640 : vector<2x1xf32>
    %645 = vector.extract_strided_slice %544 {offsets = [0, 0], sizes = [2, 1], strides = [1, 1]} : vector<2x3xi32> to vector<2x1xi32>
    %c3_i32 = arith.constant 3 : i32
    %646 = vector.broadcast %c3_i32 : i32 to vector<2x1xi32>
    %647 = arith.cmpi eq, %645, %646 : vector<2x1xi32>
    %648 = arith.extui %647 : vector<2x1xi1> to vector<2x1xi32>
    %649 = arith.sitofp %648 : vector<2x1xi32> to vector<2x1xf32>
    %650 = arith.mulf %633, %649 : vector<2x1xf32>
    %cst_204 = arith.constant 8.000000e-01 : f32
    %651 = vector.broadcast %cst_204 : f32 to vector<2x1xf32>
    %652 = arith.mulf %651, %615 : vector<2x1xf32>
    %cst_205 = arith.constant 1.000000e-01 : f32
    %653 = vector.broadcast %cst_205 : f32 to vector<2x1xf32>
    %654 = arith.mulf %653, %644 : vector<2x1xf32>
    %655 = arith.addf %652, %654 : vector<2x1xf32>
    %cst_206 = arith.constant 1.000000e-01 : f32
    %656 = vector.broadcast %cst_206 : f32 to vector<2x1xf32>
    %657 = arith.mulf %656, %650 : vector<2x1xf32>
    %658 = arith.addf %655, %657 : vector<2x1xf32>
    %659 = vector.extract_strided_slice %595 {offsets = [0, 10], sizes = [2, 4], strides = [1, 1]} : vector<2x128xf32> to vector<2x4xf32>
    %660 = vector.extract_strided_slice %595 {offsets = [0, 22], sizes = [2, 4], strides = [1, 1]} : vector<2x128xf32> to vector<2x4xf32>
    %661 = vector.extract_strided_slice %544 {offsets = [0, 1], sizes = [2, 1], strides = [1, 1]} : vector<2x3xi32> to vector<2x1xi32>
    %cst_207 = arith.constant dense<0xFF800000> : vector<2xf32>
    %662 = vector.multi_reduction <maximumf>, %659, %cst_207 [1] : vector<2x4xf32> to vector<2xf32>
    %663 = vector.shape_cast %662 : vector<2xf32> to vector<2x1xf32>
    %664 = vector.broadcast %663 : vector<2x1xf32> to vector<2x4xf32>
    %665 = arith.subf %659, %664 : vector<2x4xf32>
    %666 = math.exp %665 : vector<2x4xf32>
    %cst_208 = arith.constant dense<0.000000e+00> : vector<2xf32>
    %667 = vector.multi_reduction <add>, %666, %cst_208 [1] : vector<2x4xf32> to vector<2xf32>
    %668 = vector.shape_cast %667 : vector<2xf32> to vector<2x1xf32>
    %669 = math.log %668 : vector<2x1xf32>
    %670 = arith.addf %669, %663 : vector<2x1xf32>
    %671 = tpu.iota {dimensions = array<i32: 1>} : vector<2x4xi32>
    %672 = vector.broadcast %661 : vector<2x1xi32> to vector<2x4xi32>
    %673 = arith.cmpi eq, %671, %672 : vector<2x4xi32>
    %cst_209 = arith.constant 0.000000e+00 : f32
    %674 = vector.broadcast %cst_209 : f32 to vector<2x4xf32>
    %675 = arith.select %673, %659, %674 : vector<2x4xi1>, vector<2x4xf32>
    %cst_210 = arith.constant dense<0.000000e+00> : vector<2xf32>
    %676 = vector.multi_reduction <add>, %675, %cst_210 [1] : vector<2x4xf32> to vector<2xf32>
    %677 = vector.shape_cast %676 : vector<2xf32> to vector<2x1xf32>
    %678 = arith.subf %670, %677 : vector<2x1xf32>
    %679 = vector.extract_strided_slice %545 {offsets = [0, 1], sizes = [2, 1], strides = [1, 1]} : vector<2x3xi32> to vector<2x1xi32>
    %cst_211 = arith.constant dense<0xFF800000> : vector<2xf32>
    %680 = vector.multi_reduction <maximumf>, %660, %cst_211 [1] : vector<2x4xf32> to vector<2xf32>
    %681 = vector.shape_cast %680 : vector<2xf32> to vector<2x1xf32>
    %682 = vector.broadcast %681 : vector<2x1xf32> to vector<2x4xf32>
    %683 = arith.subf %660, %682 : vector<2x4xf32>
    %684 = math.exp %683 : vector<2x4xf32>
    %cst_212 = arith.constant dense<0.000000e+00> : vector<2xf32>
    %685 = vector.multi_reduction <add>, %684, %cst_212 [1] : vector<2x4xf32> to vector<2xf32>
    %686 = vector.shape_cast %685 : vector<2xf32> to vector<2x1xf32>
    %687 = math.log %686 : vector<2x1xf32>
    %688 = arith.addf %687, %681 : vector<2x1xf32>
    %689 = tpu.iota {dimensions = array<i32: 1>} : vector<2x4xi32>
    %690 = vector.broadcast %679 : vector<2x1xi32> to vector<2x4xi32>
    %691 = arith.cmpi eq, %689, %690 : vector<2x4xi32>
    %cst_213 = arith.constant 0.000000e+00 : f32
    %692 = vector.broadcast %cst_213 : f32 to vector<2x4xf32>
    %693 = arith.select %691, %660, %692 : vector<2x4xi1>, vector<2x4xf32>
    %cst_214 = arith.constant dense<0.000000e+00> : vector<2xf32>
    %694 = vector.multi_reduction <add>, %693, %cst_214 [1] : vector<2x4xf32> to vector<2xf32>
    %695 = vector.shape_cast %694 : vector<2xf32> to vector<2x1xf32>
    %696 = arith.subf %688, %695 : vector<2x1xf32>
    %697 = vector.extract_strided_slice %592 {offsets = [0, 2], sizes = [2, 1], strides = [1, 1]} : vector<2x6xf32> to vector<2x1xf32>
    %698 = vector.extract_strided_slice %592 {offsets = [0, 3], sizes = [2, 1], strides = [1, 1]} : vector<2x6xf32> to vector<2x1xf32>
    %699 = vector.extract_strided_slice %543 {offsets = [0, 2], sizes = [2, 1], strides = [1, 1]} : vector<2x6xi32> to vector<2x1xi32>
    %c0_i32_215 = arith.constant 0 : i32
    %700 = vector.broadcast %c0_i32_215 : i32 to vector<2x1xi32>
    %701 = arith.cmpi sgt, %699, %700 : vector<2x1xi32>
    %702 = arith.extui %701 : vector<2x1xi1> to vector<2x1xi32>
    %703 = arith.sitofp %702 : vector<2x1xi32> to vector<2x1xf32>
    %704 = arith.addf %697, %698 : vector<2x1xf32>
    %cst_216 = arith.constant 5.000000e-01 : f32
    %705 = vector.broadcast %cst_216 : f32 to vector<2x1xf32>
    %706 = arith.mulf %705, %704 : vector<2x1xf32>
    %707 = arith.mulf %706, %703 : vector<2x1xf32>
    %708 = vector.extract_strided_slice %544 {offsets = [0, 1], sizes = [2, 1], strides = [1, 1]} : vector<2x3xi32> to vector<2x1xi32>
    %c3_i32_217 = arith.constant 3 : i32
    %709 = vector.broadcast %c3_i32_217 : i32 to vector<2x1xi32>
    %710 = arith.cmpi eq, %708, %709 : vector<2x1xi32>
    %711 = arith.extui %710 : vector<2x1xi1> to vector<2x1xi32>
    %712 = arith.sitofp %711 : vector<2x1xi32> to vector<2x1xf32>
    %713 = arith.mulf %696, %712 : vector<2x1xf32>
    %cst_218 = arith.constant 8.000000e-01 : f32
    %714 = vector.broadcast %cst_218 : f32 to vector<2x1xf32>
    %715 = arith.mulf %714, %678 : vector<2x1xf32>
    %cst_219 = arith.constant 1.000000e-01 : f32
    %716 = vector.broadcast %cst_219 : f32 to vector<2x1xf32>
    %717 = arith.mulf %716, %707 : vector<2x1xf32>
    %718 = arith.addf %715, %717 : vector<2x1xf32>
    %cst_220 = arith.constant 1.000000e-01 : f32
    %719 = vector.broadcast %cst_220 : f32 to vector<2x1xf32>
    %720 = arith.mulf %719, %713 : vector<2x1xf32>
    %721 = arith.addf %718, %720 : vector<2x1xf32>
    %722 = vector.extract_strided_slice %595 {offsets = [0, 14], sizes = [2, 4], strides = [1, 1]} : vector<2x128xf32> to vector<2x4xf32>
    %723 = vector.extract_strided_slice %595 {offsets = [0, 26], sizes = [2, 4], strides = [1, 1]} : vector<2x128xf32> to vector<2x4xf32>
    %724 = vector.extract_strided_slice %544 {offsets = [0, 2], sizes = [2, 1], strides = [1, 1]} : vector<2x3xi32> to vector<2x1xi32>
    %cst_221 = arith.constant dense<0xFF800000> : vector<2xf32>
    %725 = vector.multi_reduction <maximumf>, %722, %cst_221 [1] : vector<2x4xf32> to vector<2xf32>
    %726 = vector.shape_cast %725 : vector<2xf32> to vector<2x1xf32>
    %727 = vector.broadcast %726 : vector<2x1xf32> to vector<2x4xf32>
    %728 = arith.subf %722, %727 : vector<2x4xf32>
    %729 = math.exp %728 : vector<2x4xf32>
    %cst_222 = arith.constant dense<0.000000e+00> : vector<2xf32>
    %730 = vector.multi_reduction <add>, %729, %cst_222 [1] : vector<2x4xf32> to vector<2xf32>
    %731 = vector.shape_cast %730 : vector<2xf32> to vector<2x1xf32>
    %732 = math.log %731 : vector<2x1xf32>
    %733 = arith.addf %732, %726 : vector<2x1xf32>
    %734 = tpu.iota {dimensions = array<i32: 1>} : vector<2x4xi32>
    %735 = vector.broadcast %724 : vector<2x1xi32> to vector<2x4xi32>
    %736 = arith.cmpi eq, %734, %735 : vector<2x4xi32>
    %cst_223 = arith.constant 0.000000e+00 : f32
    %737 = vector.broadcast %cst_223 : f32 to vector<2x4xf32>
    %738 = arith.select %736, %722, %737 : vector<2x4xi1>, vector<2x4xf32>
    %cst_224 = arith.constant dense<0.000000e+00> : vector<2xf32>
    %739 = vector.multi_reduction <add>, %738, %cst_224 [1] : vector<2x4xf32> to vector<2xf32>
    %740 = vector.shape_cast %739 : vector<2xf32> to vector<2x1xf32>
    %741 = arith.subf %733, %740 : vector<2x1xf32>
    %742 = vector.extract_strided_slice %545 {offsets = [0, 2], sizes = [2, 1], strides = [1, 1]} : vector<2x3xi32> to vector<2x1xi32>
    %cst_225 = arith.constant dense<0xFF800000> : vector<2xf32>
    %743 = vector.multi_reduction <maximumf>, %723, %cst_225 [1] : vector<2x4xf32> to vector<2xf32>
    %744 = vector.shape_cast %743 : vector<2xf32> to vector<2x1xf32>
    %745 = vector.broadcast %744 : vector<2x1xf32> to vector<2x4xf32>
    %746 = arith.subf %723, %745 : vector<2x4xf32>
    %747 = math.exp %746 : vector<2x4xf32>
    %cst_226 = arith.constant dense<0.000000e+00> : vector<2xf32>
    %748 = vector.multi_reduction <add>, %747, %cst_226 [1] : vector<2x4xf32> to vector<2xf32>
    %749 = vector.shape_cast %748 : vector<2xf32> to vector<2x1xf32>
    %750 = math.log %749 : vector<2x1xf32>
    %751 = arith.addf %750, %744 : vector<2x1xf32>
    %752 = tpu.iota {dimensions = array<i32: 1>} : vector<2x4xi32>
    %753 = vector.broadcast %742 : vector<2x1xi32> to vector<2x4xi32>
    %754 = arith.cmpi eq, %752, %753 : vector<2x4xi32>
    %cst_227 = arith.constant 0.000000e+00 : f32
    %755 = vector.broadcast %cst_227 : f32 to vector<2x4xf32>
    %756 = arith.select %754, %723, %755 : vector<2x4xi1>, vector<2x4xf32>
    %cst_228 = arith.constant dense<0.000000e+00> : vector<2xf32>
    %757 = vector.multi_reduction <add>, %756, %cst_228 [1] : vector<2x4xf32> to vector<2xf32>
    %758 = vector.shape_cast %757 : vector<2xf32> to vector<2x1xf32>
    %759 = arith.subf %751, %758 : vector<2x1xf32>
    %760 = vector.extract_strided_slice %592 {offsets = [0, 4], sizes = [2, 1], strides = [1, 1]} : vector<2x6xf32> to vector<2x1xf32>
    %761 = vector.extract_strided_slice %592 {offsets = [0, 5], sizes = [2, 1], strides = [1, 1]} : vector<2x6xf32> to vector<2x1xf32>
    %762 = vector.extract_strided_slice %543 {offsets = [0, 4], sizes = [2, 1], strides = [1, 1]} : vector<2x6xi32> to vector<2x1xi32>
    %c0_i32_229 = arith.constant 0 : i32
    %763 = vector.broadcast %c0_i32_229 : i32 to vector<2x1xi32>
    %764 = arith.cmpi sgt, %762, %763 : vector<2x1xi32>
    %765 = arith.extui %764 : vector<2x1xi1> to vector<2x1xi32>
    %766 = arith.sitofp %765 : vector<2x1xi32> to vector<2x1xf32>
    %767 = arith.addf %760, %761 : vector<2x1xf32>
    %cst_230 = arith.constant 5.000000e-01 : f32
    %768 = vector.broadcast %cst_230 : f32 to vector<2x1xf32>
    %769 = arith.mulf %768, %767 : vector<2x1xf32>
    %770 = arith.mulf %769, %766 : vector<2x1xf32>
    %771 = vector.extract_strided_slice %544 {offsets = [0, 2], sizes = [2, 1], strides = [1, 1]} : vector<2x3xi32> to vector<2x1xi32>
    %c3_i32_231 = arith.constant 3 : i32
    %772 = vector.broadcast %c3_i32_231 : i32 to vector<2x1xi32>
    %773 = arith.cmpi eq, %771, %772 : vector<2x1xi32>
    %774 = arith.extui %773 : vector<2x1xi1> to vector<2x1xi32>
    %775 = arith.sitofp %774 : vector<2x1xi32> to vector<2x1xf32>
    %776 = arith.mulf %759, %775 : vector<2x1xf32>
    %cst_232 = arith.constant 8.000000e-01 : f32
    %777 = vector.broadcast %cst_232 : f32 to vector<2x1xf32>
    %778 = arith.mulf %777, %741 : vector<2x1xf32>
    %cst_233 = arith.constant 1.000000e-01 : f32
    %779 = vector.broadcast %cst_233 : f32 to vector<2x1xf32>
    %780 = arith.mulf %779, %770 : vector<2x1xf32>
    %781 = arith.addf %778, %780 : vector<2x1xf32>
    %cst_234 = arith.constant 1.000000e-01 : f32
    %782 = vector.broadcast %cst_234 : f32 to vector<2x1xf32>
    %783 = arith.mulf %782, %776 : vector<2x1xf32>
    %784 = arith.addf %781, %783 : vector<2x1xf32>
    %785 = tpu.concatenate %658, %721, %784 in 1 : vector<2x1xf32>, vector<2x1xf32>, vector<2x1xf32> -> vector<2x3xf32>
    %c0_235 = arith.constant 0 : index
    %c0_236 = arith.constant 0 : index
    %786 = vector.load %arg35[%c0_235, %c0_236] : memref<2x3xf32, #tpu.memory_space<vmem>>, vector<2x3xf32>
    tpu.vector_store %arg35[%c0_235, %c0_236], %785 {strides = array<i32>} : memref<2x3xf32, #tpu.memory_space<vmem>>, vector<2x3xf32>,
    return
  }
}

</mosaic_0001>

<bundles_post_ra>
// kernel: mul.18
= control target key start
LH: loop header
LB: loop body
LE: loop exit
PB: predicated region body
PF: predicated region fallthrough
CT: control target
= control target key end

     0   :  { %vm7_vm0 = vcmask 64512   ;;  %vm13_vm1 = vcmask 130112   ;;  %s39_s0 = inlined_call_operand.vmem [shape: f32[2,8], index: 0, kind: input, shape index: {}]   ;;  %s40_s1 = inlined_call_operand.vmem [shape: f32[16], index: 1, kind: output, shape index: {}]  }
   0x1   :  { %v4_v0 = vld [vmem:[%s39_s0] sm:$0x3]  ;;  %s22_s0 = smov 8  }
   0x2   :  { %5 = vst [vmem:[#allocation1] sm:$0x3] %v4_v0 }
   0x9   :  { %v10_v1 = vld [vmem:[#allocation1 + $0x1] sm:$0x1]   ;;  %v6_v2 = vld [vmem:[#allocation1] sm:$0x1]  }
   0xa   :  { %11 = vrot.lane.b32.xlu0 %v10_v1, %s22_s0  ;;  %8 = vst.msk [vmem:[#allocation0] sm:$0x1] %vm7_vm0, %v6_v2  }
  0x7c   :  { %v12_v3 = vpop.permute.xlu0 %11  }
  0x7d   :  { %14 = vst.msk [vmem:[#allocation0] sm:$0x1] %vm13_vm1, %v12_v3  }
  0x84   :  { %v18_v4 = vld [vmem:[#allocation0] sm:$0x1] }
  0x85   :  { %20 = vst [vmem:[%s40_s1] sm:$0x1] %v18_v4 }

// kernel: mul.28
= control target key start
LH: loop header
LB: loop body
LE: loop exit
PB: predicated region body
PF: predicated region fallthrough
CT: control target
= control target key end

     0   :  { %vm7_vm0 = vcmask 130048   ;;  %vm13_vm1 = vcmask 261248   ;;  %s39_s0 = inlined_call_operand.vmem [shape: f32[2,16], index: 0, kind: input, shape index: {}]   ;;  %s40_s1 = inlined_call_operand.vmem [shape: f32[32], index: 1, kind: output, shape index: {}]  }
   0x1   :  { %v4_v0 = vld [vmem:[%s39_s0] sm:$0x3]  ;;  %s22_s0 = smov 16  }
   0x2   :  { %5 = vst [vmem:[#allocation1] sm:$0x3] %v4_v0 }
   0x9   :  { %v10_v1 = vld [vmem:[#allocation1 + $0x1] sm:$0x1]   ;;  %v6_v2 = vld [vmem:[#allocation1] sm:$0x1]  }
   0xa   :  { %11 = vrot.lane.b32.xlu0 %v10_v1, %s22_s0  ;;  %8 = vst.msk [vmem:[#allocation0] sm:$0x1] %vm7_vm0, %v6_v2  }
  0x7c   :  { %v12_v3 = vpop.permute.xlu0 %11  }
  0x7d   :  { %14 = vst.msk [vmem:[#allocation0] sm:$0x1] %vm13_vm1, %v12_v3  }
  0x84   :  { %v18_v4 = vld [vmem:[#allocation0] sm:$0x1] }
  0x85   :  { %20 = vst [vmem:[%s40_s1] sm:$0x1] %v18_v4 }

// kernel: dst_forward.1
= control target key start
LH: loop header
LB: loop body
LE: loop exit
PB: predicated region body
PF: predicated region fallthrough
CT: control target
= control target key end

     0   :  { %v4710_v0 = vmov 0.0   ;;  %s4711_s3 = smov 8   ;;  %vm4712_vm0 = vmmov 0   ;;  %vm192_vm1 = vcmask 261120   ;;  %s4713_s10 = smov 9   ;;  %vm241_vm2 = vcmask 64512   ;;  %s5649_s0 = inlined_call_operand.smem [shape: u32[36], index: -1, kind: input, shape index: {}] }
   0x1   :  { %4048 = vmatprep.subr.bf16.mxu0 %v4710_v0  ;;  %s3808_s6 = sld [smem:[%s5649_s0 + %s4711_s3]]   ;;  %4052 = vmatprep.mubr.msk.bf16.mxu0 %vm4712_vm0, %v4710_v0  ;;  %s4714_s14 = smov 120   ;;  %vm293_vm3 = vcmask 130048   ;;  %vm767_vm4 = vcmask 195584   ;;  %vm982_vm5 = vcmask 523264   ;;  %vm3461_vm7 = vcmask 48128  }
   0x2   :  { %s1_s9 = sld [smem:[%s5649_s0]]   ;;  %4056 = vmatprep.subr.bf16.mxu1 %v4710_v0  ;;  %4058 = vmatprep.mubr.msk.bf16.mxu1 %vm4712_vm0, %v4710_v0  ;;  %s4715_s15 = smov 96   ;;  %vm3558_vm9 = vcmask 1040384   ;;  %vm3597_vm12 = vcmask 173200   ;;  %vm3564_vm13 = vcmask 74800   ;;  %vm3645_vm14 = vcmask 107600  }
   0x3   :  { %s3809_s13 = sld [smem:[%s5649_s0 + %s4713_s10]]   ;;  %s4716_s16 = smov 80   ;;  %vm3712_vm15 = vcmask 140400  }
   0x4   :  { %s4717_s17 = smov 88   ;;  %s4718_s18 = smov 72  }
   0x5   :  { %s4719_s19 = smov 112   ;;  %s4720_s20 = smov 104  }
   0x6   :  { %s4721_s21 = smov 1   ;;  %s4722_s25 = smov 56  }
   0x7   :  { %v4463_v1 = vld [vmem:[%s3808_s6] sm:$0xff]   ;;  %v4464_v2 = vld [vmem:[%s3808_s6 + $0x8] sm:$0xff]   ;;  %s3801_s24 = sld [smem:[%s5649_s0 + %s4721_s21]]   ;;  %s4723_s26 = smov 64  }
   0x8   :  { %4049 = vmatpush3.bf16.msra.mxu0 %v4463_v1  ;;  %v4787_v3 = vld [vmem:[%s1_s9] sm:$0xff]  ;;  %v4789_v4 = vld [vmem:[%s1_s9 + $0x8] sm:$0xff]  ;;  %s4724_s27 = smov 48   ;;  %s4725_s28 = smov 40  }
   0x9   :  { %4050 = vmatprep.subr.bf16.mxu0 %v4710_v0  ;;  %v173_v5 = vpack.c.bf16 %v4789_v4, %v4787_v3  ;;  %v3836_v6 = vld [vmem:[%s3809_s13] ss:$0 sm:$0xff]  ;;  %s4726_s29 = smov 24   ;;  %s4727_s4 = smov 10  }
   0xa   :  { %s4894_s2 = sld [smem:[%s5649_s0 + %s4726_s29]]   ;;  %s4728_s8 = smov 16  }
   0xb   :  { %s3810_s7 = sld [smem:[%s5649_s0 + %s4727_s4]]   ;;  %s4729_s9 = smov 14  }
   0xc   :  { %4051 = vmatpush3.bf16.msra.mxu0 %v4464_v2  ;;  %s4916_s12 = sld [smem:[%s5649_s0 + %s4729_s9]]   ;;  %s4730_s13 = smov 11  }
   0xd   :  { %4062 = vmatprep.subr.bf16.mxu0 %v4710_v0  ;;  %v148_v26 = vld [vmem:[%s3801_s24] sm:$0xff]  ;;  %v149_v30 = vld [vmem:[%s3801_s24 + $0x8] sm:$0xff]  ;;  %s3811_s24 = sld [smem:[%s5649_s0 + %s4730_s13]]   ;;  %s4731_s30 = smov 4  }
   0xe   :  { %s3804_s5 = sld [smem:[%s5649_s0 + %s4731_s30]]   ;;  %s4732_s6 = smov 2  }
   0xf   :  { %4053 = vmatmul.mubr.msk.bf16.vlgmr.msra.gmra.mrb[0].mxu0 %vm192_vm1, %v173_v5  ;;  %s3802_s10 = sld [smem:[%s5649_s0 + %s4732_s6]]   ;;  %s4733_s11 = smov 15  }
  0x10   :  { %4064 = vmatprep.mubr.msk.bf16.mxu0 %vm4712_vm0, %v4710_v0  ;;  %s3815_s23 = sld [smem:[%s5649_s0 + %s4733_s11]]   ;;  %s4736_s11 = smov 5  }
  0x11   :  { %s3816_s1 = sld [smem:[%s5649_s0 + %s4728_s8]]   ;;  %s4765_s13 = smov 102  }
  0xe2   :  { %v230_v7 = vpop.f32.mrb[0].mxu0 }
  0xe3   :  { %v4054_v8 = vpop.f32.mrb[1].mxu0  ;;  %v231_v10 = vadd.f32 %v3836_v6, %v230_v7 }
  0xe4   :  { %v233_v9 = vpop.f32.mrb[2].mxu0 }
  0xe5   :  { %v234_v11 = vadd.f32 %v3836_v6, %v233_v9  ;;  %v4055_v12 = vpop.f32.mrb[3].mxu0 }
  0xe7   :  { %v4801_v13 = vpack.c.bf16 %v234_v11, %v231_v10 }
  0xe9   :  { %364 = vrot.lane.b32.xlu1 %v4801_v13, %s4714_s14  ;;  %239 = vrot.lane.b32.xlu0 %v4801_v13, %s4715_s15 }
  0xed   :  { %491 = vrot.lane.b32.xlu1 %v4801_v13, %s4716_s16  ;;  %366 = vrot.lane.b32.xlu0 %v4801_v13, %s4717_s17 }
  0xf1   :  { %616 = vrot.lane.b32.xlu1 %v4801_v13, %s4718_s18  ;;  %489 = vrot.lane.b32.xlu0 %v4801_v13, %s4719_s19 }
  0xf5   :  { %614 = vrot.lane.b32.xlu0 %v4801_v13, %s4720_s20 }
 0x15b   :  { %v240_v14 = vpop.permute.xlu0 %239  ;;  %v365_v17 = vpop.permute.xlu1 %364 }
 0x15c   :  { %v246_v15 = vsel %vm241_vm2, %v240_v14, 0 }
 0x15d   :  { %4057 = vmatpush3.bf16.xpose.msra.mxu1 %v246_v15 }
 0x15e   :  { %4068 = vmatprep.subr.bf16.mxu1 %v4710_v0 }
 0x15f   :  { %v367_v16 = vpop.permute.xlu0 %366  ;;  %v492_v19 = vpop.permute.xlu1 %491 }
 0x160   :  { %v372_v18 = vsel %vm241_vm2, %v367_v16, 0  ;;  %v497_v20 = vsel %vm241_vm2, %v492_v19, 0 }
 0x163   :  { %v617_v21 = vpop.permute.xlu1 %616  ;;  %v490_v22 = vpop.permute.xlu0 %489 }
 0x164   :  { %4059 = vmatmul.mubr.msk.bf16.vlgmr.msra.gmra.mrb[0].mxu1 %vm241_vm2, %v4801_v13  ;;  %v622_v23 = vsel %vm241_vm2, %v617_v21, 0 }
 0x165   :  { %4069 = vmatpush3.bf16.xpose.msra.mxu1 %v372_v18  ;;  %4070 = vmatprep.mubr.msk.bf16.mxu1 %vm4712_vm0, %v4710_v0 }
 0x166   :  { %4080 = vmatprep.subr.bf16.mxu1 %v4710_v0 }
 0x167   :  { %v615_v24 = vpop.permute.xlu0 %614 }
 0x16c   :  { %4071 = vmatmul.mubr.msk.bf16.vlgmr.msra.gmra.mrb[4].mxu1 %vm241_vm2, %v365_v17 }
 0x16d   :  { %4081 = vmatpush3.bf16.xpose.msra.mxu1 %v497_v20  ;;  %4082 = vmatprep.mubr.msk.bf16.mxu1 %vm4712_vm0, %v4710_v0 }
 0x16e   :  { %4092 = vmatprep.subr.bf16.mxu1 %v4710_v0 }
 0x174   :  { %4083 = vmatmul.mubr.msk.bf16.vlgmr.msra.gmra.mrb[8].mxu1 %vm241_vm2, %v490_v22 }
 0x175   :  { %4093 = vmatpush3.bf16.xpose.msra.mxu1 %v622_v23  ;;  %4094 = vmatprep.mubr.msk.bf16.mxu1 %vm4712_vm0, %v4710_v0 }
 0x176   :  { %4104 = vmatprep.subr.bf16.mxu1 %v4710_v0 }
 0x17c   :  { %4095 = vmatmul.mubr.msk.bf16.vlgmr.msra.gmra.mrb[12].mxu1 %vm241_vm2, %v615_v24 }
 0x17d   :  { %4108 = vmatprep.mubr.msk.bf16.mxu1 %vm4712_vm0, %v4710_v0 }
 0x237   :  { %v282_v25 = vpop.f32.mrb[0].mxu1 }
 0x238   :  { %v289_v27 = vmul.f32 0.35355338, %v282_v25  ;;  %v4060_v28 = vpop.f32.mrb[1].mxu1 }
 0x239   :  { %v285_v29 = vpop.f32.mrb[2].mxu1 }
 0x23a   :  { %v290_v31 = vmul.f32 0.35355338, %v285_v29  ;;  %v4061_v32 = vpop.f32.mrb[3].mxu1  ;;  %v291_v33 = vadd.f32 %v289_v27, %v148_v26 }
 0x23c   :  { %v294_v34 = vsel %vm293_vm3, %v291_v33, -inf  ;;  %v292_v35 = vadd.f32 %v290_v31, %v149_v30 }
 0x23d   :  { %295 = vmax.xlane.f32.xlu1 %v294_v34 }
 0x23e   :  { %v297_v36 = vsel %vm293_vm3, %v292_v35, -inf }
 0x23f   :  { %298 = vmax.xlane.f32.xlu0 %v297_v36  ;;  %v408_v37 = vpop.f32.mrb[4].mxu1 }
 0x240   :  { %v415_v38 = vmul.f32 0.35355338, %v408_v37  ;;  %v4072_v39 = vpop.f32.mrb[5].mxu1 }
 0x241   :  { %v411_v40 = vpop.f32.mrb[6].mxu1 }
 0x242   :  { %v416_v41 = vmul.f32 0.35355338, %v411_v40  ;;  %v4073_v42 = vpop.f32.mrb[7].mxu1  ;;  %v417_v43 = vadd.f32 %v415_v38, %v148_v26 }
 0x244   :  { %v419_v44 = vsel %vm293_vm3, %v417_v43, -inf  ;;  %v418_v45 = vadd.f32 %v416_v41, %v149_v30 }
 0x245   :  { %420 = vmax.xlane.f32.xlu0 %v419_v44 }
 0x246   :  { %v422_v46 = vsel %vm293_vm3, %v418_v45, -inf }
 0x247   :  { %423 = vmax.xlane.f32.xlu1 %v422_v46  ;;  %v533_v47 = vpop.f32.mrb[8].mxu1 }
 0x248   :  { %v540_v48 = vmul.f32 0.35355338, %v533_v47  ;;  %v4084_v49 = vpop.f32.mrb[9].mxu1 }
 0x249   :  { %v536_v50 = vpop.f32.mrb[10].mxu1 }
 0x24a   :  { %v541_v51 = vmul.f32 0.35355338, %v536_v50  ;;  %v4085_v52 = vpop.f32.mrb[11].mxu1  ;;  %v542_v53 = vadd.f32 %v540_v48, %v148_v26 }
 0x24c   :  { %v544_v54 = vsel %vm293_vm3, %v542_v53, -inf  ;;  %v543_v55 = vadd.f32 %v541_v51, %v149_v30 }
 0x24d   :  { %545 = vmax.xlane.f32.xlu0 %v544_v54 }
 0x24e   :  { %v547_v56 = vsel %vm293_vm3, %v543_v55, -inf }
 0x24f   :  { %548 = vmax.xlane.f32.xlu1 %v547_v56  ;;  %v658_v57 = vpop.f32.mrb[12].mxu1 }
 0x250   :  { %v665_v58 = vmul.f32 0.35355338, %v658_v57  ;;  %v4096_v59 = vpop.f32.mrb[13].mxu1 }
 0x251   :  { %v661_v60 = vpop.f32.mrb[14].mxu1 }
 0x252   :  { %v666_v61 = vmul.f32 0.35355338, %v661_v60  ;;  %v4097_v62 = vpop.f32.mrb[15].mxu1  ;;  %v667_v63 = vadd.f32 %v665_v58, %v148_v26 }
 0x254   :  { %v669_v1 = vsel %vm293_vm3, %v667_v63, -inf  ;;  %v668_v2 = vadd.f32 %v666_v61, %v149_v30 }
 0x255   :  { %670 = vmax.xlane.f32.xlu0 %v669_v1 }
 0x256   :  { %v672_v5 = vsel %vm293_vm3, %v668_v2, -inf }
 0x257   :  { %673 = vmax.xlane.f32.xlu1 %v672_v5 }
 0x2ca   :  { %v296_v6 = vpop.xlane.xlu1 %295 }
 0x2cb   :  { %v300_v7 = vsub.f32 %v291_v33, %v296_v6 }
 0x2cc   :  { %v299_v8 = vpop.xlane.xlu0 %298 }
 0x2cd   :  { %v302_v9 = vmul.f32 1.442695, %v300_v7  ;;  %v301_v10 = vsub.f32 %v292_v35, %v299_v8 }
 0x2cf   :  { %4497 = vpow2.f32 %v302_v9  ;;  %v304_v11 = vmul.f32 1.442695, %v301_v10 }
 0x2d1   :  { %4499 = vpow2.f32 %v304_v11 }
 0x2d2   :  { %v421_v12 = vpop.xlane.xlu0 %420 }
 0x2d3   :  { %v425_v14 = vsub.f32 %v417_v43, %v421_v12 }
 0x2d4   :  { %v424_v22 = vpop.xlane.xlu1 %423 }
 0x2d5   :  { %v427_v15 = vmul.f32 1.442695, %v425_v14  ;;  %v426_v23 = vsub.f32 %v418_v45, %v424_v22 }
 0x2d7   :  { %4501 = vpow2.f32 %v427_v15  ;;  %v429_v26 = vmul.f32 1.442695, %v426_v23 }
 0x2d9   :  { %v4498_v16 = vpop.eup %4497  ;;  %4503 = vpow2.f32 %v429_v26 }
 0x2da   :  { %v306_v17 = vsel %vm293_vm3, %v4498_v16, 0.0  ;;  %v546_v25 = vpop.xlane.xlu0 %545 }
 0x2db   :  { %v4500_v18 = vpop.eup %4499  ;;  %307 = vadd.xlane.f32.xlu0 %v306_v17  ;;  %v550_v29 = vsub.f32 %v542_v53, %v546_v25 }
 0x2dc   :  { %v309_v19 = vsel %vm293_vm3, %v4500_v18, 0.0  ;;  %v549_v24 = vpop.xlane.xlu1 %548 }
 0x2dd   :  { %310 = vadd.xlane.f32.xlu1 %v309_v19  ;;  %v551_v27 = vsub.f32 %v543_v55, %v549_v24  ;;  %v552_v33 = vmul.f32 1.442695, %v550_v29 }
 0x2df   :  { %v554_v31 = vmul.f32 1.442695, %v551_v27  ;;  %v4465_v27 = vld [vmem:[%s3810_s7] sm:$0xff]  }
 0x2e0   :  { %4105 = vmatpush3.bf16.msra.mxu1 %v4465_v27 }
 0x2e1   :  { %v4852_v20 = vpop.eup %4501  ;;  %4505 = vpow2.f32 %v554_v31  ;;  %4106 = vmatprep.subr.bf16.mxu1 %v4710_v0 }
 0x2e2   :  { %v431_v21 = vsel %vm293_vm3, %v4852_v20, 0.0  ;;  %v671_v30 = vpop.xlane.xlu0 %670  ;;  %4507 = vpow2.f32 %v552_v33 }
 0x2e3   :  { %432 = vadd.xlane.f32.xlu0 %v431_v21  ;;  %v675_v34 = vsub.f32 %v667_v63, %v671_v30  ;;  %v4504_v37 = vpop.eup %4503  ;;  %v4466_v30 = vld [vmem:[%s3810_s7 + $0x8] sm:$0xff]   ;;  %s4761_s7 = smov 110  }
 0x2e4   :  { %v674_v28 = vpop.xlane.xlu1 %673  ;;  %v434_v38 = vsel %vm293_vm3, %v4504_v37, 0.0  ;;  %4107 = vmatpush3.bf16.msra.mxu1 %v4466_v30 }
 0x2e5   :  { %v676_v32 = vsub.f32 %v668_v2, %v674_v28  ;;  %v677_v36 = vmul.f32 1.442695, %v675_v34  ;;  %4120 = vmatprep.subr.bf16.mxu1 %v4710_v0 }
 0x2e7   :  { %v679_v35 = vmul.f32 1.442695, %v676_v32 }
 0x2e9   :  { %4509 = vpow2.f32 %v679_v35 }
 0x2ea   :  { %4511 = vpow2.f32 %v677_v36 }
 0x2eb   :  { %v4506_v39 = vpop.eup %4505 }
 0x2ec   :  { %v4508_v40 = vpop.eup %4507  ;;  %v559_v41 = vsel %vm293_vm3, %v4506_v39, 0.0 }
 0x2ed   :  { %v556_v43 = vsel %vm293_vm3, %v4508_v40, 0.0 }
 0x2ee   :  { %442 = vrot.lane.b32.xlu1 %v4801_v13, %s4722_s25 }
 0x2f3   :  { %v4862_v42 = vpop.eup %4509 }
 0x2f4   :  { %v4512_v44 = vpop.eup %4511  ;;  %v684_v45 = vsel %vm293_vm3, %v4862_v42, 0.0 }
 0x2f5   :  { %v681_v46 = vsel %vm293_vm3, %v4512_v44, 0.0 }
 0x2f9   :  { %317 = vrot.lane.b32.xlu0 %v4801_v13, %s4723_s26 }
 0x312   :  { %435 = vadd.xlane.f32.xlu1 %v434_v38 }
 0x316   :  { %560 = vadd.xlane.f32.xlu1 %v559_v41 }
 0x318   :  { %557 = vadd.xlane.f32.xlu0 %v556_v43 }
 0x31a   :  { %685 = vadd.xlane.f32.xlu1 %v684_v45 }
 0x31c   :  { %682 = vadd.xlane.f32.xlu0 %v681_v46 }
 0x32b   :  { %567 = vrot.lane.b32.xlu1 %v4801_v13, %s4724_s27 }
 0x332   :  { %692 = vrot.lane.b32.xlu0 %v4801_v13, %s4725_s28 }
 0x368   :  { %v308_v47 = vpop.xlane.xlu0 %307 }
 0x369   :  { %4513 = vrcp.f32 %v308_v47 }
 0x36a   :  { %v311_v48 = vpop.xlane.xlu1 %310 }
 0x36b   :  { %4515 = vrcp.f32 %v311_v48 }
 0x36e   :  { %v443_v56 = vpop.permute.xlu1 %442 }
 0x370   :  { %v433_v49 = vpop.xlane.xlu0 %432 }
 0x371   :  { %4517 = vrcp.f32 %v433_v49 }
 0x373   :  { %v4514_v50 = vpop.eup %4513 }
 0x374   :  { %v318_v51 = vpop.permute.xlu0 %317  ;;  %v314_v53 = vmul.f32 %v4514_v50, %v4498_v16 }
 0x375   :  { %v4516_v52 = vpop.eup %4515  ;;  %4063 = vmatpush3.bf16.msra.mxu0 %v318_v51 }
 0x376   :  { %v315_v54 = vmul.f32 %v4516_v52, %v4500_v18  ;;  %4074 = vmatprep.subr.bf16.mxu0 %v4710_v0 }
 0x378   :  { %v316_v55 = vpack.c.bf16 %v315_v54, %v314_v53 }
 0x37a   :  { %4065 = vmatmul.mubr.msk.bf16.vlgmr.msra.gmra.mrb[4].mxu0 %vm293_vm3, %v316_v55  ;;  %v771_v55 = vlaneseq }
 0x37b   :  { %4075 = vmatpush3.bf16.msra.mxu0 %v443_v56  ;;  %4076 = vmatprep.mubr.msk.bf16.mxu0 %vm4712_vm0, %v4710_v0  ;;  %v4518_v59 = vpop.eup %4517 }
 0x37c   :  { %4086 = vmatprep.subr.bf16.mxu0 %v4710_v0  ;;  %v439_v63 = vmul.f32 %v4518_v59, %v4852_v20  ;;  %v4919_v56 = vshrl.u32 %v771_v55, 7 }
 0x39f   :  { %v436_v13 = vpop.xlane.xlu1 %435 }
 0x3a0   :  { %4519 = vrcp.f32 %v436_v13  ;;  %v4922_v13 = vsub.s32 0, %v4919_v56 }
 0x3a3   :  { %v561_v57 = vpop.xlane.xlu1 %560 }
 0x3a4   :  { %4521 = vrcp.f32 %v561_v57  ;;  %v4925_v57 = vld [vmem:[%s4916_s12] sm:$0xff] }
 0x3a5   :  { %v558_v58 = vpop.xlane.xlu0 %557 }
 0x3a6   :  { %4523 = vrcp.f32 %v558_v58  ;;  %v774_v58 = vrot.slane %v4925_v57, %v4922_v13 }
 0x3a7   :  { %v686_v60 = vpop.xlane.xlu1 %685 }
 0x3a9   :  { %v683_v61 = vpop.xlane.xlu0 %682 }
 0x3aa   :  { %v4520_v62 = vpop.eup %4519  ;;  %4525 = vrcp.f32 %v683_v61 }
 0x3ab   :  { %v440_v1 = vmul.f32 %v4520_v62, %v4504_v37  ;;  %4527 = vrcp.f32 %v686_v60  ;;  %v568_v6 = vpop.permute.xlu1 %567 }
 0x3ad   :  { %v441_v2 = vpack.c.bf16 %v440_v1, %v439_v63  ;;  %v693_v12 = vpop.permute.xlu0 %692 }
 0x3ae   :  { %v4522_v5 = vpop.eup %4521 }
 0x3af   :  { %4077 = vmatmul.mubr.msk.bf16.vlgmr.msra.gmra.mrb[8].mxu0 %vm293_vm3, %v441_v2  ;;  %v565_v9 = vmul.f32 %v4522_v5, %v4506_v39 }
 0x3b0   :  { %v4524_v7 = vpop.eup %4523  ;;  %4087 = vmatpush3.bf16.msra.mxu0 %v568_v6  ;;  %4088 = vmatprep.mubr.msk.bf16.mxu0 %vm4712_vm0, %v4710_v0 }
 0x3b1   :  { %v564_v8 = vmul.f32 %v4524_v7, %v4508_v40  ;;  %4098 = vmatprep.subr.bf16.mxu0 %v4710_v0 }
 0x3b3   :  { %v566_v10 = vpack.c.bf16 %v565_v9, %v564_v8 }
 0x3b4   :  { %v4526_v11 = vpop.eup %4525 }
 0x3b5   :  { %v4528_v14 = vpop.eup %4527  ;;  %v689_v15 = vmul.f32 %v4526_v11, %v4512_v44 }
 0x3b6   :  { %v690_v16 = vmul.f32 %v4528_v14, %v4862_v42 }
 0x3b7   :  { %4089 = vmatmul.mubr.msk.bf16.vlgmr.msra.gmra.mrb[12].mxu0 %vm293_vm3, %v566_v10 }
 0x3b8   :  { %4099 = vmatpush3.bf16.msra.mxu0 %v693_v12  ;;  %4100 = vmatprep.mubr.msk.bf16.mxu0 %vm4712_vm0, %v4710_v0  ;;  %v691_v17 = vpack.c.bf16 %v690_v16, %v689_v15 }
 0x3b9   :  { %4112 = vmatprep.subr.bf16.mxu0 %v4710_v0 }
 0x3bf   :  { %4101 = vmatmul.mubr.msk.bf16.vlgmr.msra.gmra.mrb[16].mxu0 %vm293_vm3, %v691_v17 }
 0x3c0   :  { %4116 = vmatprep.mubr.msk.bf16.mxu0 %vm4712_vm0, %v4710_v0 }
 0x44d   :  { %v357_v18 = vpop.f32.mrb[4].mxu0 }
 0x44e   :  { %v4066_v19 = vpop.f32.mrb[5].mxu0 }
 0x44f   :  { %v360_v20 = vpop.f32.mrb[6].mxu0 }
 0x450   :  { %v4067_v21 = vpop.f32.mrb[7].mxu0 }
 0x482   :  { %v482_v22 = vpop.f32.mrb[8].mxu0 }
 0x483   :  { %v4078_v23 = vpop.f32.mrb[9].mxu0 }
 0x484   :  { %v485_v24 = vpop.f32.mrb[10].mxu0 }
 0x485   :  { %v4399_v25 = vpack.i.bf16 %v485_v24, %v482_v22  ;;  %v4079_v26 = vpop.f32.mrb[11].mxu0 }
 0x487   :  { %4400 = vrot.lane.b32.xlu1 %v4399_v25, %s4711_s3  ;;  %v4944_v25 = vsub.s32 1, %v4919_v56 }
 0x489   :  { %v863_v27 = vrot.slane %v4925_v57, %v4944_v25 }
 0x48a   :  { %v607_v28 = vpop.f32.mrb[12].mxu0 }
 0x48b   :  { %v4090_v29 = vpop.f32.mrb[13].mxu0 }
 0x48c   :  { %v610_v31 = vpop.f32.mrb[14].mxu0  ;;  %v4949_v29 = vsub.s32 2, %v4919_v56 }
 0x48d   :  { %v4404_v32 = vpack.i.bf16 %v610_v31, %v607_v28  ;;  %v4091_v33 = vpop.f32.mrb[15].mxu0 }
 0x48e   :  { %v869_v33 = vrot.slane %v4925_v57, %v4949_v29 }
 0x48f   :  { %4405 = vrot.lane.b32.xlu0 %v4404_v32, %s4728_s8 }
 0x492   :  { %v732_v34 = vpop.f32.mrb[16].mxu0 }
 0x493   :  { %v4102_v35 = vpop.f32.mrb[17].mxu0 }
 0x494   :  { %v735_v36 = vpop.f32.mrb[18].mxu0 }
 0x495   :  { %v4409_v37 = vpack.i.bf16 %v735_v36, %v732_v34  ;;  %v4103_v38 = vpop.f32.mrb[19].mxu0 }
 0x497   :  { %4410 = vrot.lane.b32.xlu1 %v4409_v37, %s4726_s29  ;;  %v4469_v37 = vld [vmem:[%s3804_s5] sm:$0xff]  }
 0x4f9   :  { %v4401_v39 = vpop.permute.xlu1 %4400 }
 0x4fa   :  { %v4403_v41 = vunpack.i.h.bf16 %v4401_v39  ;;  %v4402_v42 = vunpack.i.l.bf16 %v4401_v39  ;;  %v4470_v39 = vld [vmem:[%s3804_s5 + $0x8] sm:$0xff]   ;;  %s4735_s5 = smov 12  }
 0x4fc   :  { %v764_v46 = vsel %vm241_vm2, %v360_v20, %v4403_v41  ;;  %v763_v47 = vsel %vm241_vm2, %v357_v18, %v4402_v42  ;;  %v4468_v18 = vld [vmem:[%s3811_s24 + $0x8] sm:$0xff]  }
 0x4fd   :  { %v1068_v41 = vld [vmem:[%s3802_s10 + $0x8] sm:$0xff] }
 0x501   :  { %v4406_v40 = vpop.permute.xlu0 %4405 }
 0x502   :  { %v4408_v43 = vunpack.i.h.bf16 %v4406_v40  ;;  %v4407_v44 = vunpack.i.l.bf16 %v4406_v40  ;;  %v1067_v40 = vld [vmem:[%s3802_s10] sm:$0xff]  ;;  %s3812_s10 = sld [smem:[%s5649_s0 + %s4735_s5]]  }
 0x503   :  { %v1069_v42 = vpack.c.bf16 %v1068_v41, %v1067_v40 }
 0x504   :  { %v766_v50 = vsel %vm293_vm3, %v764_v46, %v4408_v43  ;;  %v765_v51 = vsel %vm293_vm3, %v763_v47, %v4407_v44  ;;  %v4471_v43 = vld [vmem:[%s3815_s23] sm:$0xff]   ;;  %v4472_v44 = vld [vmem:[%s3815_s23 + $0x8] sm:$0xff]   ;;  %s3805_s23 = sld [smem:[%s5649_s0 + %s4736_s11]]   ;;  %s4764_s11 = smov 114  }
 0x509   :  { %v4411_v45 = vpop.permute.xlu1 %4410 }
 0x50a   :  { %v4413_v48 = vunpack.i.h.bf16 %v4411_v45  ;;  %v4412_v49 = vunpack.i.l.bf16 %v4411_v45 }
 0x50c   :  { %v769_v52 = vsel %vm767_vm4, %v766_v50, %v4413_v48  ;;  %v768_v53 = vsel %vm767_vm4, %v765_v51, %v4412_v49  ;;  %v3851_v49 = vld [vmem:[%s3812_s10] ss:$0 sm:$0xff]  ;;  %s4738_s10 = smov 17  }
 0x50d   :  { %v770_v54 = vpack.c.bf16 %v769_v52, %v768_v53  ;;  %s3817_s22 = sld [smem:[%s5649_s0 + %s4738_s10]]   ;;  %s4741_s10 = smov 20  }
 0x50f   :  { %4109 = vmatmul.mubr.msk.bf16.vlgmr.msra.gmra.mrb[16].mxu1 %vm192_vm1, %v770_v54 }
 0x510   :  { %4128 = vmatprep.mubr.msk.bf16.mxu1 %vm4712_vm0, %v4710_v0 }
 0x5e2   :  { %v824_v59 = vpop.f32.mrb[16].mxu1 }
 0x5e3   :  { %v825_v60 = vadd.f32 %v824_v59, %v774_v58  ;;  %v4110_v61 = vpop.f32.mrb[17].mxu1 }
 0x5e4   :  { %v827_v62 = vpop.f32.mrb[18].mxu1 }
 0x5e5   :  { %v828_v63 = vadd.f32 %v827_v62, %v774_v58  ;;  %v4111_v1 = vpop.f32.mrb[19].mxu1  ;;  %v831_v2 = vadd.f32 %v825_v60, %v4787_v3 }
 0x5e6   :  { %v3860_v1 = vld [vmem:[%s3805_s23] ss:$0 sm:$0xff]  ;;  %s4739_s23 = smov 21  }
 0x5e7   :  { %v833_v5 = vsel %vm192_vm1, %v831_v2, 0.0  ;;  %v832_v6 = vadd.f32 %v828_v63, %v4789_v4  ;;  %v4467_v4 = vld [vmem:[%s3811_s24] sm:$0xff]   ;;  %s4734_s24 = smov 13  }
 0x5e8   :  { %834 = vadd.xlane.f32.xlu0 %v833_v5  ;;  %4113 = vmatpush3.bf16.msra.mxu0 %v4467_v4  ;;  %s3813_s4 = sld [smem:[%s5649_s0 + %s4734_s24]]  }
 0x5e9   :  { %v836_v7 = vsel %vm192_vm1, %v832_v6, 0.0  ;;  %4114 = vmatprep.subr.bf16.mxu0 %v4710_v0 }
 0x5ea   :  { %837 = vadd.xlane.f32.xlu1 %v836_v7 }
 0x5ec   :  { %4115 = vmatpush3.bf16.msra.mxu0 %v4468_v18 }
 0x5ed   :  { %4132 = vmatprep.subr.bf16.mxu0 %v4710_v0 }
 0x5ee   :  { %v4473_v45 = vld [vmem:[%s3813_s4] sm:$0xff]   ;;  %v4474_v46 = vld [vmem:[%s3813_s4 + $0x8] sm:$0xff]   ;;  %v4475_v47 = vld [vmem:[%s3813_s4 + $0x10] sm:$0xff]  }
 0x5ef   :  { %4121 = vmatpush3.bf16.msra.mxu1 %v4473_v45  ;;  %v4476_v48 = vld [vmem:[%s3813_s4 + $0x18] sm:$0xff]   ;;  %s4737_s4 = smov 3  }
 0x5f0   :  { %4122 = vmatprep.subr.bf16.mxu1 %v4710_v0  ;;  %s3803_s9 = sld [smem:[%s5649_s0 + %s4737_s4]]   ;;  %s4740_s4 = smov 18  }
 0x5f3   :  { %4123 = vmatpush3.bf16.msra.mxu1 %v4474_v46 }
 0x5f4   :  { %4124 = vmatprep.subr.bf16.mxu1 %v4710_v0 }
 0x5f7   :  { %4125 = vmatpush3.bf16.msra.mxu1 %v4475_v47 }
 0x5f8   :  { %4126 = vmatprep.subr.bf16.mxu1 %v4710_v0 }
 0x5fb   :  { %4127 = vmatpush3.bf16.msra.mxu1 %v4476_v48 }
 0x5fc   :  { %4148 = vmatprep.subr.bf16.mxu1 %v4710_v0 }
 0x675   :  { %v835_v8 = vpop.xlane.xlu0 %834 }
 0x676   :  { %v840_v9 = vmul.f32 0.03125, %v835_v8 }
 0x677   :  { %v838_v10 = vpop.xlane.xlu1 %837 }
 0x678   :  { %v842_v11 = vsub.f32 %v831_v2, %v840_v9  ;;  %v841_v12 = vmul.f32 0.03125, %v838_v10 }
 0x67a   :  { %v843_v14 = vsub.f32 %v832_v6, %v841_v12  ;;  %v844_v15 = vmul.f32 %v842_v11, %v842_v11 }
 0x67c   :  { %v846_v16 = vsel %vm192_vm1, %v844_v15, 0.0  ;;  %v845_v17 = vmul.f32 %v843_v14, %v843_v14 }
 0x67d   :  { %847 = vadd.xlane.f32.xlu0 %v846_v16 }
 0x67e   :  { %v849_v3 = vsel %vm192_vm1, %v845_v17, 0.0 }
 0x681   :  { %850 = vadd.xlane.f32.xlu0 %v849_v3 }
 0x70a   :  { %v848_v19 = vpop.xlane.xlu0 %847 }
 0x70b   :  { %v852_v20 = vmul.f32 0.03125, %v848_v19 }
 0x70d   :  { %v854_v21 = vadd.f32 1e-12, %v852_v20 }
 0x70e   :  { %v851_v22 = vpop.xlane.xlu0 %850 }
 0x70f   :  { %4529 = vrsqrt.f32 %v854_v21  ;;  %v853_v23 = vmul.f32 0.03125, %v851_v22 }
 0x711   :  { %v855_v24 = vadd.f32 1e-12, %v853_v23 }
 0x713   :  { %4531 = vrsqrt.f32 %v855_v24  ;;  %v3864_v24 = vld [vmem:[%s3816_s1] ss:$0 sm:$0xff]  ;;  %s3821_s1 = sld [smem:[%s5649_s0 + %s4739_s23]]   ;;  %s4742_s23 = smov 19  }
 0x719   :  { %v4530_v26 = vpop.eup %4529 }
 0x71a   :  { %v858_v28 = vmul.f32 %v4530_v26, %v842_v11 }
 0x71c   :  { %v864_v31 = vmul.f32 %v863_v27, %v858_v28 }
 0x71d   :  { %v4532_v30 = vpop.eup %4531 }
 0x71e   :  { %v859_v32 = vmul.f32 %v4532_v30, %v843_v14  ;;  %v4957_v35 = vadd.f32 %v869_v33, %v864_v31 }
 0x720   :  { %v865_v34 = vmul.f32 %v863_v27, %v859_v32 }
 0x722   :  { %v4959_v36 = vadd.f32 %v869_v33, %v865_v34 }
 0x724   :  { %v872_v38 = vpack.c.bf16 %v4959_v36, %v4957_v35 }
 0x726   :  { %4117 = vmatmul.mubr.msk.bf16.vlgmr.msra.gmra.mrb[20].mxu0 %vm192_vm1, %v872_v38 }
 0x727   :  { %4133 = vmatpush3.bf16.msra.mxu0 %v4469_v37  ;;  %4136 = vmatprep.mubr.msk.bf16.mxu0 %vm4712_vm0, %v4710_v0 }
 0x728   :  { %4134 = vmatprep.subr.bf16.mxu0 %v4710_v0 }
 0x72b   :  { %4135 = vmatpush3.bf16.msra.mxu0 %v4470_v39 }
 0x72c   :  { %4140 = vmatprep.subr.bf16.mxu0 %v4710_v0 }
 0x72e   :  { %4137 = vmatmul.mubr.msk.bf16.vlgmr.msra.gmra.mrb[24].mxu0 %vm192_vm1, %v1069_v42 }
 0x72f   :  { %4144 = vmatprep.mubr.msk.bf16.mxu0 %vm4712_vm0, %v4710_v0  ;;  %4141 = vmatpush3.bf16.msra.mxu0 %v4471_v43 }
 0x730   :  { %4142 = vmatprep.subr.bf16.mxu0 %v4710_v0 }
 0x733   :  { %4143 = vmatpush3.bf16.msra.mxu0 %v4472_v44 }
 0x734   :  { %4154 = vmatprep.subr.bf16.mxu0 %v4710_v0 }
 0x7f9   :  { %v928_v50 = vpop.f32.mrb[20].mxu0 }
 0x7fa   :  { %v929_v51 = vadd.f32 %v3851_v49, %v928_v50  ;;  %v4118_v52 = vpop.f32.mrb[21].mxu0 }
 0x7fb   :  { %v931_v53 = vpop.f32.mrb[22].mxu0  ;;  %v1137_v52 = vld [vmem:[%s3803_s9] sm:$0xff] }
 0x7fc   :  { %v935_v54 = vmul.f32 %v929_v51, %v929_v51  ;;  %v932_v58 = vadd.f32 %v3851_v49, %v931_v53  ;;  %v4119_v59 = vpop.f32.mrb[23].mxu0 }
 0x7fd   :  { %v1138_v59 = vld [vmem:[%s3803_s9 + $0x8] sm:$0xff]  ;;  %s3818_s9 = sld [smem:[%s5649_s0 + %s4740_s4]]   ;;  %s4743_s4 = smov 22  }
 0x7fe   :  { %v937_v60 = vmul.f32 %v935_v54, %v929_v51  ;;  %v936_v61 = vmul.f32 %v932_v58, %v932_v58 }
 0x800   :  { %v939_v62 = vmul.f32 0.044715, %v937_v60  ;;  %v938_v63 = vmul.f32 %v936_v61, %v932_v58 }
 0x801   :  { %v1130_v2 = vpop.f32.mrb[24].mxu0 }
 0x802   :  { %v941_v5 = vadd.f32 %v939_v62, %v929_v51  ;;  %v940_v6 = vmul.f32 0.044715, %v938_v63  ;;  %v4138_v7 = vpop.f32.mrb[25].mxu0  ;;  %v4989_v11 = vadd.f32 %v3860_v1, %v1130_v2 }
 0x803   :  { %v1133_v8 = vpop.f32.mrb[26].mxu0 }
 0x804   :  { %v943_v9 = vmul.f32 0.7978846, %v941_v5  ;;  %v942_v10 = vadd.f32 %v940_v6, %v932_v58  ;;  %v4991_v12 = vadd.f32 %v3860_v1, %v1133_v8  ;;  %v4139_v14 = vpop.f32.mrb[27].mxu0 }
 0x806   :  { %4533 = vtanh.f32 %v943_v9  ;;  %v944_v15 = vmul.f32 0.7978846, %v942_v10  ;;  %v1162_v16 = vpack.c.bf16 %v4991_v12, %v4989_v11 }
 0x808   :  { %4535 = vtanh.f32 %v944_v15  ;;  %4145 = vmatmul.mubr.msk.bf16.vlgmr.msra.gmra.mrb[28].mxu0 %vm192_vm1, %v1162_v16 }
 0x809   :  { %4156 = vmatprep.mubr.msk.bf16.mxu0 %vm4712_vm0, %v4710_v0 }
 0x810   :  { %v4534_v17 = vpop.eup %4533 }
 0x811   :  { %v947_v3 = vadd.f32 1.0, %v4534_v17 }
 0x812   :  { %v4536_v4 = vpop.eup %4535 }
 0x813   :  { %v949_v18 = vmul.f32 0.5, %v947_v3  ;;  %v948_v19 = vadd.f32 1.0, %v4536_v4 }
 0x815   :  { %v950_v20 = vmul.f32 0.5, %v948_v19  ;;  %v951_v21 = vmul.f32 %v949_v18, %v929_v51 }
 0x817   :  { %v952_v22 = vmul.f32 %v950_v20, %v932_v58 }
 0x819   :  { %v953_v23 = vpack.c.bf16 %v952_v22, %v951_v21 }
 0x81b   :  { %4129 = vmatmul.mubr.msk.bf16.vlgmr.msra.gmra.mrb[20].mxu1 %vm982_vm5, %v953_v23 }
 0x81c   :  { %4150 = vmatprep.mubr.msk.bf16.mxu1 %vm4712_vm0, %v4710_v0 }
 0x8db   :  { %v1218_v26 = vpop.f32.mrb[28].mxu0 }
 0x8dc   :  { %v4146_v27 = vpop.f32.mrb[29].mxu0  ;;  %v1219_v30 = vadd.f32 %v3864_v24, %v1218_v26 }
 0x8dd   :  { %v1221_v28 = vpop.f32.mrb[30].mxu0 }
 0x8de   :  { %v1222_v31 = vadd.f32 %v3864_v24, %v1221_v28  ;;  %v4147_v32 = vpop.f32.mrb[31].mxu0 }
 0x8e0   :  { %v5005_v33 = vpack.c.bf16 %v1222_v31, %v1219_v30 }
 0x8e2   :  { %1352 = vrot.lane.b32.xlu0 %v5005_v33, %s4717_s17  ;;  %1227 = vrot.lane.b32.xlu1 %v5005_v33, %s4715_s15 }
 0x8e6   :  { %1475 = vrot.lane.b32.xlu0 %v5005_v33, %s4719_s19  ;;  %1350 = vrot.lane.b32.xlu1 %v5005_v33, %s4714_s14 }
 0x8ea   :  { %1600 = vrot.lane.b32.xlu0 %v5005_v33, %s4720_s20  ;;  %1477 = vrot.lane.b32.xlu1 %v5005_v33, %s4716_s16 }
 0x8ee   :  { %v5019_v34 = vpop.f32.mrb[20].mxu1  ;;  %1602 = vrot.lane.b32.xlu1 %v5005_v33, %s4718_s18 }
 0x8ef   :  { %v4130_v37 = vpop.f32.mrb[21].mxu1 }
 0x8f0   :  { %v5023_v38 = vpop.f32.mrb[22].mxu1 }
 0x8f1   :  { %v4131_v39 = vpop.f32.mrb[23].mxu1 }
 0x954   :  { %v1228_v40 = vpop.permute.xlu1 %1227  ;;  %v1353_v42 = vpop.permute.xlu0 %1352 }
 0x955   :  { %v1233_v41 = vsel %vm241_vm2, %v1228_v40, 0  ;;  %v1358_v44 = vsel %vm241_vm2, %v1353_v42, 0 }
 0x956   :  { %4149 = vmatpush3.bf16.xpose.msra.mxu1 %v1233_v41 }
 0x957   :  { %4160 = vmatprep.subr.bf16.mxu1 %v4710_v0 }
 0x958   :  { %v1351_v43 = vpop.permute.xlu1 %1350  ;;  %v1476_v48 = vpop.permute.xlu0 %1475 }
 0x95c   :  { %v1478_v45 = vpop.permute.xlu1 %1477  ;;  %v1601_v50 = vpop.permute.xlu0 %1600 }
 0x95d   :  { %4151 = vmatmul.mubr.msk.bf16.vlgmr.msra.gmra.mrb[24].mxu1 %vm241_vm2, %v5005_v33  ;;  %v1483_v46 = vsel %vm241_vm2, %v1478_v45, 0 }
 0x95e   :  { %4161 = vmatpush3.bf16.xpose.msra.mxu1 %v1358_v44  ;;  %4162 = vmatprep.mubr.msk.bf16.mxu1 %vm4712_vm0, %v4710_v0 }
 0x95f   :  { %4172 = vmatprep.subr.bf16.mxu1 %v4710_v0 }
 0x960   :  { %v1603_v47 = vpop.permute.xlu1 %1602 }
 0x961   :  { %v1608_v49 = vsel %vm241_vm2, %v1603_v47, 0 }
 0x965   :  { %4163 = vmatmul.mubr.msk.bf16.vlgmr.msra.gmra.mrb[28].mxu1 %vm241_vm2, %v1351_v43 }
 0x966   :  { %4173 = vmatpush3.bf16.xpose.msra.mxu1 %v1483_v46  ;;  %4174 = vmatprep.mubr.msk.bf16.mxu1 %vm4712_vm0, %v4710_v0 }
 0x967   :  { %4184 = vmatprep.subr.bf16.mxu1 %v4710_v0 }
 0x96d   :  { %4175 = vmatmul.mubr.msk.bf16.vlgmr.msra.gmra.mrb[32].mxu1 %vm241_vm2, %v1476_v48 }
 0x96e   :  { %4185 = vmatpush3.bf16.xpose.msra.mxu1 %v1608_v49  ;;  %4186 = vmatprep.mubr.msk.bf16.mxu1 %vm4712_vm0, %v4710_v0 }
 0x96f   :  { %4196 = vmatprep.subr.bf16.mxu1 %v4710_v0 }
 0x975   :  { %4187 = vmatmul.mubr.msk.bf16.vlgmr.msra.gmra.mrb[36].mxu1 %vm241_vm2, %v1601_v50 }
 0x976   :  { %4200 = vmatprep.mubr.msk.bf16.mxu1 %vm4712_vm0, %v4710_v0 }
 0xa30   :  { %v1269_v51 = vpop.f32.mrb[24].mxu1 }
 0xa31   :  { %v1276_v53 = vmul.f32 0.35355338, %v1269_v51  ;;  %v4152_v54 = vpop.f32.mrb[25].mxu1 }
 0xa32   :  { %v1272_v58 = vpop.f32.mrb[26].mxu1 }
 0xa33   :  { %v1277_v60 = vmul.f32 0.35355338, %v1272_v58  ;;  %v4153_v61 = vpop.f32.mrb[27].mxu1  ;;  %v1278_v62 = vadd.f32 %v1276_v53, %v1137_v52 }
 0xa35   :  { %v1280_v63 = vsel %vm293_vm3, %v1278_v62, -inf  ;;  %v1279_v1 = vadd.f32 %v1277_v60, %v1138_v59 }
 0xa36   :  { %1281 = vmax.xlane.f32.xlu1 %v1280_v63 }
 0xa37   :  { %v1283_v2 = vsel %vm293_vm3, %v1279_v1, -inf }
 0xa38   :  { %1284 = vmax.xlane.f32.xlu0 %v1283_v2  ;;  %v1394_v5 = vpop.f32.mrb[28].mxu1 }
 0xa39   :  { %v1401_v6 = vmul.f32 0.35355338, %v1394_v5  ;;  %v4164_v7 = vpop.f32.mrb[29].mxu1 }
 0xa3a   :  { %v1397_v8 = vpop.f32.mrb[30].mxu1 }
 0xa3b   :  { %v1402_v9 = vmul.f32 0.35355338, %v1397_v8  ;;  %v4165_v10 = vpop.f32.mrb[31].mxu1  ;;  %v1403_v14 = vadd.f32 %v1401_v6, %v1137_v52 }
 0xa3d   :  { %v1405_v15 = vsel %vm293_vm3, %v1403_v14, -inf  ;;  %v1404_v16 = vadd.f32 %v1402_v9, %v1138_v59 }
 0xa3e   :  { %1406 = vmax.xlane.f32.xlu0 %v1405_v15 }
 0xa3f   :  { %v1408_v17 = vsel %vm293_vm3, %v1404_v16, -inf }
 0xa40   :  { %1409 = vmax.xlane.f32.xlu1 %v1408_v17  ;;  %v1519_v3 = vpop.f32.mrb[32].mxu1 }
 0xa41   :  { %v1526_v4 = vmul.f32 0.35355338, %v1519_v3  ;;  %v4176_v18 = vpop.f32.mrb[33].mxu1 }
 0xa42   :  { %v1522_v19 = vpop.f32.mrb[34].mxu1 }
 0xa43   :  { %v1527_v20 = vmul.f32 0.35355338, %v1522_v19  ;;  %v4177_v21 = vpop.f32.mrb[35].mxu1  ;;  %v1528_v22 = vadd.f32 %v1526_v4, %v1137_v52 }
 0xa45   :  { %v1530_v23 = vsel %vm293_vm3, %v1528_v22, -inf  ;;  %v1529_v24 = vadd.f32 %v1527_v20, %v1138_v59 }
 0xa46   :  { %1531 = vmax.xlane.f32.xlu0 %v1530_v23 }
 0xa47   :  { %v1533_v26 = vsel %vm293_vm3, %v1529_v24, -inf }
 0xa48   :  { %1534 = vmax.xlane.f32.xlu1 %v1533_v26  ;;  %v1644_v27 = vpop.f32.mrb[36].mxu1 }
 0xa49   :  { %v1651_v28 = vmul.f32 0.35355338, %v1644_v27  ;;  %v4188_v30 = vpop.f32.mrb[37].mxu1 }
 0xa4a   :  { %v1647_v31 = vpop.f32.mrb[38].mxu1 }
 0xa4b   :  { %v1652_v32 = vmul.f32 0.35355338, %v1647_v31  ;;  %v4189_v37 = vpop.f32.mrb[39].mxu1  ;;  %v1653_v39 = vadd.f32 %v1651_v28, %v1137_v52 }
 0xa4d   :  { %v1655_v40 = vsel %vm293_vm3, %v1653_v39, -inf  ;;  %v1654_v41 = vadd.f32 %v1652_v32, %v1138_v59 }
 0xa4e   :  { %1656 = vmax.xlane.f32.xlu0 %v1655_v40 }
 0xa4f   :  { %v1658_v42 = vsel %vm293_vm3, %v1654_v41, -inf }
 0xa50   :  { %1659 = vmax.xlane.f32.xlu1 %v1658_v42 }
 0xac3   :  { %v1282_v43 = vpop.xlane.xlu1 %1281 }
 0xac4   :  { %v1286_v44 = vsub.f32 %v1278_v62, %v1282_v43 }
 0xac5   :  { %v1285_v45 = vpop.xlane.xlu0 %1284 }
 0xac6   :  { %v1288_v46 = vmul.f32 1.442695, %v1286_v44  ;;  %v1287_v47 = vsub.f32 %v1279_v1, %v1285_v45 }
 0xac8   :  { %4537 = vpow2.f32 %v1288_v46  ;;  %v1290_v48 = vmul.f32 1.442695, %v1287_v47 }
 0xaca   :  { %4539 = vpow2.f32 %v1290_v48 }
 0xacb   :  { %v1407_v49 = vpop.xlane.xlu0 %1406 }
 0xacc   :  { %v1411_v50 = vsub.f32 %v1403_v14, %v1407_v49 }
 0xacd   :  { %v1410_v61 = vpop.xlane.xlu1 %1409 }
 0xace   :  { %v1413_v51 = vmul.f32 1.442695, %v1411_v50  ;;  %v1412_v62 = vsub.f32 %v1404_v16, %v1410_v61 }
 0xad0   :  { %4541 = vpow2.f32 %v1413_v51  ;;  %v1415_v2 = vmul.f32 1.442695, %v1412_v62 }
 0xad2   :  { %v4538_v52 = vpop.eup %4537  ;;  %4543 = vpow2.f32 %v1415_v2 }
 0xad3   :  { %v1292_v53 = vsel %vm293_vm3, %v4538_v52, 0.0  ;;  %v1532_v1 = vpop.xlane.xlu0 %1531 }
 0xad4   :  { %v4540_v54 = vpop.eup %4539  ;;  %1293 = vadd.xlane.f32.xlu0 %v1292_v53  ;;  %v1536_v7 = vsub.f32 %v1528_v22, %v1532_v1 }
 0xad5   :  { %v1295_v58 = vsel %vm293_vm3, %v4540_v54, 0.0  ;;  %v1535_v63 = vpop.xlane.xlu1 %1534 }
 0xad6   :  { %1296 = vadd.xlane.f32.xlu1 %v1295_v58  ;;  %v1537_v5 = vsub.f32 %v1529_v24, %v1535_v63  ;;  %v1538_v14 = vmul.f32 1.442695, %v1536_v7 }
 0xad8   :  { %v1540_v9 = vmul.f32 1.442695, %v1537_v5 }
 0xada   :  { %v5059_v59 = vpop.eup %4541  ;;  %4545 = vpow2.f32 %v1540_v9 }
 0xadb   :  { %v1417_v60 = vsel %vm293_vm3, %v5059_v59, 0.0  ;;  %v1657_v8 = vpop.xlane.xlu0 %1656  ;;  %4547 = vpow2.f32 %v1538_v14 }
 0xadc   :  { %1418 = vadd.xlane.f32.xlu0 %v1417_v60  ;;  %v1661_v15 = vsub.f32 %v1653_v39, %v1657_v8  ;;  %v4544_v4 = vpop.eup %4543 }
 0xadd   :  { %v1660_v6 = vpop.xlane.xlu1 %1659  ;;  %v1420_v16 = vsel %vm293_vm3, %v4544_v4, 0.0 }
 0xade   :  { %v1662_v10 = vsub.f32 %v1654_v41, %v1660_v6  ;;  %v1663_v3 = vmul.f32 1.442695, %v1661_v15 }
 0xae0   :  { %v1665_v17 = vmul.f32 1.442695, %v1662_v10 }
 0xae2   :  { %4549 = vpow2.f32 %v1665_v17 }
 0xae3   :  { %4551 = vpow2.f32 %v1663_v3 }
 0xae4   :  { %v4546_v18 = vpop.eup %4545 }
 0xae5   :  { %v4548_v19 = vpop.eup %4547  ;;  %v1545_v20 = vsel %vm293_vm3, %v4546_v18, 0.0 }
 0xae6   :  { %v1542_v22 = vsel %vm293_vm3, %v4548_v19, 0.0 }
 0xae7   :  { %1428 = vrot.lane.b32.xlu1 %v5005_v33, %s4722_s25 }
 0xaec   :  { %v5069_v21 = vpop.eup %4549 }
 0xaed   :  { %v4552_v23 = vpop.eup %4551  ;;  %v1670_v24 = vsel %vm293_vm3, %v5069_v21, 0.0 }
 0xaee   :  { %v1667_v26 = vsel %vm293_vm3, %v4552_v23, 0.0 }
 0xaf2   :  { %1303 = vrot.lane.b32.xlu0 %v5005_v33, %s4723_s26 }
 0xb0b   :  { %1421 = vadd.xlane.f32.xlu1 %v1420_v16 }
 0xb0f   :  { %1546 = vadd.xlane.f32.xlu1 %v1545_v20 }
 0xb11   :  { %1543 = vadd.xlane.f32.xlu0 %v1542_v22 }
 0xb13   :  { %1671 = vadd.xlane.f32.xlu1 %v1670_v24 }
 0xb15   :  { %1668 = vadd.xlane.f32.xlu0 %v1667_v26 }
 0xb24   :  { %1553 = vrot.lane.b32.xlu1 %v5005_v33, %s4724_s27 }
 0xb2b   :  { %1678 = vrot.lane.b32.xlu0 %v5005_v33, %s4725_s28 }
 0xb61   :  { %v1294_v27 = vpop.xlane.xlu0 %1293 }
 0xb62   :  { %4553 = vrcp.f32 %v1294_v27 }
 0xb63   :  { %v1297_v28 = vpop.xlane.xlu1 %1296 }
 0xb64   :  { %4555 = vrcp.f32 %v1297_v28 }
 0xb67   :  { %v1429_v42 = vpop.permute.xlu1 %1428 }
 0xb69   :  { %v1419_v30 = vpop.xlane.xlu0 %1418 }
 0xb6a   :  { %4557 = vrcp.f32 %v1419_v30 }
 0xb6c   :  { %v4554_v31 = vpop.eup %4553 }
 0xb6d   :  { %v1304_v32 = vpop.permute.xlu0 %1303  ;;  %v1300_v39 = vmul.f32 %v4554_v31, %v4538_v52 }
 0xb6e   :  { %v4556_v37 = vpop.eup %4555  ;;  %4155 = vmatpush3.bf16.msra.mxu0 %v1304_v32 }
 0xb6f   :  { %v1301_v40 = vmul.f32 %v4556_v37, %v4540_v54  ;;  %4166 = vmatprep.subr.bf16.mxu0 %v4710_v0 }
 0xb71   :  { %v1302_v41 = vpack.c.bf16 %v1301_v40, %v1300_v39 }
 0xb73   :  { %4157 = vmatmul.mubr.msk.bf16.vlgmr.msra.gmra.mrb[32].mxu0 %vm293_vm3, %v1302_v41 }
 0xb74   :  { %4167 = vmatpush3.bf16.msra.mxu0 %v1429_v42  ;;  %4168 = vmatprep.mubr.msk.bf16.mxu0 %vm4712_vm0, %v4710_v0  ;;  %v4558_v45 = vpop.eup %4557 }
 0xb75   :  { %4178 = vmatprep.subr.bf16.mxu0 %v4710_v0  ;;  %v1425_v49 = vmul.f32 %v4558_v45, %v5059_v59 }
 0xb98   :  { %v1422_v33 = vpop.xlane.xlu1 %1421 }
 0xb99   :  { %4559 = vrcp.f32 %v1422_v33 }
 0xb9c   :  { %v1547_v43 = vpop.xlane.xlu1 %1546 }
 0xb9d   :  { %4561 = vrcp.f32 %v1547_v43 }
 0xb9e   :  { %v1544_v44 = vpop.xlane.xlu0 %1543 }
 0xb9f   :  { %4563 = vrcp.f32 %v1544_v44 }
 0xba0   :  { %v1672_v46 = vpop.xlane.xlu1 %1671 }
 0xba2   :  { %v1669_v47 = vpop.xlane.xlu0 %1668 }
 0xba3   :  { %v4560_v48 = vpop.eup %4559  ;;  %4565 = vrcp.f32 %v1669_v47 }
 0xba4   :  { %v1426_v50 = vmul.f32 %v4560_v48, %v4544_v4  ;;  %4567 = vrcp.f32 %v1672_v46  ;;  %v1554_v53 = vpop.permute.xlu1 %1553  ;;  %v4477_v4 = vld [vmem:[%s3817_s22] sm:$0xff]  }
 0xba5   :  { %4197 = vmatpush3.bf16.msra.mxu1 %v4477_v4 }
 0xba6   :  { %v1427_v51 = vpack.c.bf16 %v1426_v50, %v1425_v49  ;;  %v1679_v59 = vpop.permute.xlu0 %1678  ;;  %4198 = vmatprep.subr.bf16.mxu1 %v4710_v0  ;;  %v5117_v50 = vld [vmem:[%s3821_s1] sm:$0xff]  ;;  %s3819_s1 = sld [smem:[%s5649_s0 + %s4742_s23]]  }
 0xba7   :  { %v4562_v52 = vpop.eup %4561 }
 0xba8   :  { %4169 = vmatmul.mubr.msk.bf16.vlgmr.msra.gmra.mrb[36].mxu0 %vm293_vm3, %v1427_v51  ;;  %v1551_v60 = vmul.f32 %v4562_v52, %v4546_v18  ;;  %v5120_v51 = vsub.s32 3, %v4919_v56  ;;  %v1759_v52 = vrot.slane %v5117_v50, %v4922_v13 }
 0xba9   :  { %v4564_v54 = vpop.eup %4563  ;;  %4179 = vmatpush3.bf16.msra.mxu0 %v1554_v53  ;;  %4180 = vmatprep.mubr.msk.bf16.mxu0 %vm4712_vm0, %v4710_v0 }
 0xbaa   :  { %v1550_v58 = vmul.f32 %v4564_v54, %v4548_v19  ;;  %4190 = vmatprep.subr.bf16.mxu0 %v4710_v0  ;;  %v4478_v19 = vld [vmem:[%s3817_s22 + $0x8] sm:$0xff]   ;;  %v957_v53 = vrot.slane %v4925_v57, %v5120_v51  ;;  %s3820_s22 = sld [smem:[%s5649_s0 + %s4741_s10]]   ;;  %s4744_s10 = smov 6  }
 0xbab   :  { %4199 = vmatpush3.bf16.msra.mxu1 %v4478_v19 }
 0xbac   :  { %v1552_v61 = vpack.c.bf16 %v1551_v60, %v1550_v58  ;;  %4212 = vmatprep.subr.bf16.mxu1 %v4710_v0 }
 0xbad   :  { %v4566_v62 = vpop.eup %4565 }
 0xbae   :  { %v4568_v63 = vpop.eup %4567  ;;  %v1675_v1 = vmul.f32 %v4566_v62, %v4552_v23  ;;  %v1021_v62 = vadd.f32 %v5019_v34, %v957_v53 }
 0xbaf   :  { %v1676_v2 = vmul.f32 %v4568_v63, %v5069_v21 }
 0xbb0   :  { %4181 = vmatmul.mubr.msk.bf16.vlgmr.msra.gmra.mrb[40].mxu0 %vm293_vm3, %v1552_v61  ;;  %v1027_v57 = vadd.f32 %v1021_v62, %v4957_v35 }
 0xbb1   :  { %4191 = vmatpush3.bf16.msra.mxu0 %v1679_v59  ;;  %4192 = vmatprep.mubr.msk.bf16.mxu0 %vm4712_vm0, %v4710_v0  ;;  %v1677_v5 = vpack.c.bf16 %v1676_v2, %v1675_v1 }
 0xbb2   :  { %4204 = vmatprep.subr.bf16.mxu0 %v4710_v0 }
 0xbb8   :  { %4193 = vmatmul.mubr.msk.bf16.vlgmr.msra.gmra.mrb[44].mxu0 %vm293_vm3, %v1677_v5 }
 0xbb9   :  { %4208 = vmatprep.mubr.msk.bf16.mxu0 %vm4712_vm0, %v4710_v0 }
 0xc46   :  { %v1343_v6 = vpop.f32.mrb[32].mxu0 }
 0xc47   :  { %v4158_v7 = vpop.f32.mrb[33].mxu0 }
 0xc48   :  { %v1346_v8 = vpop.f32.mrb[34].mxu0 }
 0xc49   :  { %v4159_v9 = vpop.f32.mrb[35].mxu0 }
 0xc7b   :  { %v1468_v10 = vpop.f32.mrb[36].mxu0 }
 0xc7c   :  { %v4170_v14 = vpop.f32.mrb[37].mxu0 }
 0xc7d   :  { %v1471_v15 = vpop.f32.mrb[38].mxu0 }
 0xc7e   :  { %v4414_v17 = vpack.i.bf16 %v1471_v15, %v1468_v10  ;;  %v4171_v3 = vpop.f32.mrb[39].mxu0 }
 0xc80   :  { %4415 = vrot.lane.b32.xlu1 %v4414_v17, %s4711_s3 }
 0xc83   :  { %v1593_v16 = vpop.f32.mrb[40].mxu0 }
 0xc84   :  { %v4182_v18 = vpop.f32.mrb[41].mxu0 }
 0xc85   :  { %v1596_v20 = vpop.f32.mrb[42].mxu0 }
 0xc86   :  { %v4419_v21 = vpack.i.bf16 %v1596_v20, %v1593_v16  ;;  %v4183_v22 = vpop.f32.mrb[43].mxu0 }
 0xc88   :  { %4420 = vrot.lane.b32.xlu0 %v4419_v21, %s4728_s8 }
 0xc8b   :  { %v1718_v23 = vpop.f32.mrb[44].mxu0 }
 0xc8c   :  { %v4194_v24 = vpop.f32.mrb[45].mxu0 }
 0xc8d   :  { %v1721_v26 = vpop.f32.mrb[46].mxu0 }
 0xc8e   :  { %v4424_v27 = vpack.i.bf16 %v1721_v26, %v1718_v23  ;;  %v4195_v28 = vpop.f32.mrb[47].mxu0 }
 0xc8f   :  { %v4480_v28 = vld [vmem:[%s3818_s9 + $0x8] sm:$0xff]  }
 0xc90   :  { %4425 = vrot.lane.b32.xlu1 %v4424_v27, %s4726_s29  ;;  %v4479_v27 = vld [vmem:[%s3818_s9] sm:$0xff]   ;;  %s3822_s9 = sld [smem:[%s5649_s0 + %s4743_s4]]  }
 0xc91   :  { %4205 = vmatpush3.bf16.msra.mxu0 %v4479_v27 }
 0xc92   :  { %4206 = vmatprep.subr.bf16.mxu0 %v4710_v0 }
 0xc95   :  { %4207 = vmatpush3.bf16.msra.mxu0 %v4480_v28 }
 0xcf2   :  { %v4416_v30 = vpop.permute.xlu1 %4415 }
 0xcf3   :  { %v4418_v32 = vunpack.i.h.bf16 %v4416_v30  ;;  %v4417_v37 = vunpack.i.l.bf16 %v4416_v30 }
 0xcf5   :  { %v1750_v42 = vsel %vm241_vm2, %v1346_v8, %v4418_v32  ;;  %v1749_v33 = vsel %vm241_vm2, %v1343_v6, %v4417_v37  ;;  %v1024_v6 = vadd.f32 %v5023_v38, %v957_v53  ;;  %v1029_v8 = vsel %vm192_vm1, %v1027_v57, 0.0  ;;  %v4481_v53 = vld [vmem:[%s3820_s22] sm:$0xff]  }
 0xcf7   :  { %v1028_v34 = vadd.f32 %v1024_v6, %v4959_v36 }
 0xcf9   :  { %v1032_v9 = vsel %vm192_vm1, %v1028_v34, 0.0 }
 0xcfa   :  { %v4421_v31 = vpop.permute.xlu0 %4420 }
 0xcfb   :  { %v4423_v39 = vunpack.i.h.bf16 %v4421_v31  ;;  %v4422_v40 = vunpack.i.l.bf16 %v4421_v31 }
 0xcfd   :  { %v1752_v45 = vsel %vm293_vm3, %v1750_v42, %v4423_v39  ;;  %v1751_v46 = vsel %vm293_vm3, %v1749_v33, %v4422_v40  ;;  %v1847_v42 = vrot.slane %v5117_v50, %v4944_v25 }
 0xd02   :  { %v4426_v41 = vpop.permute.xlu1 %4425 }
 0xd03   :  { %v4428_v43 = vunpack.i.h.bf16 %v4426_v41  ;;  %v4427_v44 = vunpack.i.l.bf16 %v4426_v41 }
 0xd05   :  { %v1754_v47 = vsel %vm767_vm4, %v1752_v45, %v4428_v43  ;;  %v1753_v48 = vsel %vm767_vm4, %v1751_v46, %v4427_v44  ;;  %v1853_v46 = vrot.slane %v5117_v50, %v4949_v29 }
 0xd06   :  { %v1755_v49 = vpack.c.bf16 %v1754_v47, %v1753_v48 }
 0xd08   :  { %4201 = vmatmul.mubr.msk.bf16.vlgmr.msra.gmra.mrb[40].mxu1 %vm192_vm1, %v1755_v49 }
 0xd09   :  { %4220 = vmatprep.mubr.msk.bf16.mxu1 %vm4712_vm0, %v4710_v0  ;;  %4213 = vmatpush3.bf16.msra.mxu1 %v4481_v53  ;;  %vm3674_vm0 = vcmask 206000  }
 0xd0a   :  { %4214 = vmatprep.subr.bf16.mxu1 %v4710_v0 }
 0xddb   :  { %v1809_v54 = vpop.f32.mrb[40].mxu1 }
 0xddc   :  { %v1810_v58 = vadd.f32 %v1809_v54, %v1759_v52  ;;  %v4202_v60 = vpop.f32.mrb[41].mxu1  ;;  %v4482_v54 = vld [vmem:[%s3820_s22 + $0x8] sm:$0xff]  }
 0xddd   :  { %v1812_v61 = vpop.f32.mrb[42].mxu1  ;;  %4215 = vmatpush3.bf16.msra.mxu1 %v4482_v54  ;;  %v4484_v60 = vld [vmem:[%s3820_s22 + $0x18] sm:$0xff]  }
 0xdde   :  { %v1813_v59 = vadd.f32 %v1812_v61, %v1759_v52  ;;  %v4203_v63 = vpop.f32.mrb[43].mxu1  ;;  %v1816_v1 = vadd.f32 %v1810_v58, %v4989_v11  ;;  %4216 = vmatprep.subr.bf16.mxu1 %v4710_v0  ;;  %v4483_v58 = vld [vmem:[%s3820_s22 + $0x10] sm:$0xff]   ;;  %v3879_v61 = vld [vmem:[%s3819_s1] ss:$0 sm:$0xff]  ;;  %s3806_s22 = sld [smem:[%s5649_s0 + %s4744_s10]]   ;;  %s4746_s1 = smov 7  }
 0xddf   :  { %s3807_s5 = sld [smem:[%s5649_s0 + %s4746_s1]]   ;;  %s4751_s10 = smov 29  }
 0xde0   :  { %v1818_v2 = vsel %vm192_vm1, %v1816_v1, 0.0  ;;  %v1817_v5 = vadd.f32 %v1813_v59, %v4991_v12  ;;  %s4755_s1 = smov 33  }
 0xde1   :  { %1819 = vadd.xlane.f32.xlu0 %v1818_v2  ;;  %4217 = vmatpush3.bf16.msra.mxu1 %v4483_v58 }
 0xde2   :  { %v1821_v7 = vsel %vm192_vm1, %v1817_v5, 0.0  ;;  %4218 = vmatprep.subr.bf16.mxu1 %v4710_v0 }
 0xde3   :  { %1822 = vadd.xlane.f32.xlu1 %v1821_v7 }
 0xde5   :  { %4219 = vmatpush3.bf16.msra.mxu1 %v4484_v60 }
 0xde7   :  { %1030 = vadd.xlane.f32.xlu1 %v1029_v8 }
 0xdeb   :  { %1033 = vadd.xlane.f32.xlu1 %v1032_v9 }
 0xe6e   :  { %v1820_v11 = vpop.xlane.xlu0 %1819 }
 0xe6f   :  { %v1824_v10 = vmul.f32 0.03125, %v1820_v11 }
 0xe70   :  { %v1823_v14 = vpop.xlane.xlu1 %1822 }
 0xe71   :  { %v1826_v12 = vsub.f32 %v1816_v1, %v1824_v10  ;;  %v1825_v15 = vmul.f32 0.03125, %v1823_v14 }
 0xe73   :  { %v1827_v17 = vsub.f32 %v1817_v5, %v1825_v15  ;;  %v1828_v38 = vmul.f32 %v1826_v12, %v1826_v12 }
 0xe74   :  { %v1031_v3 = vpop.xlane.xlu1 %1030 }
 0xe75   :  { %v1035_v4 = vmul.f32 0.03125, %v1031_v3  ;;  %v1830_v35 = vsel %vm192_vm1, %v1828_v38, 0.0  ;;  %v1829_v16 = vmul.f32 %v1827_v17, %v1827_v17 }
 0xe76   :  { %1831 = vadd.xlane.f32.xlu0 %v1830_v35 }
 0xe77   :  { %v5137_v18 = vsub.f32 %v1027_v57, %v1035_v4  ;;  %v1833_v20 = vsel %vm192_vm1, %v1829_v16, 0.0 }
 0xe78   :  { %v1034_v36 = vpop.xlane.xlu1 %1033 }
 0xe79   :  { %v1036_v19 = vmul.f32 0.03125, %v1034_v36  ;;  %v1039_v21 = vmul.f32 %v5137_v18, %v5137_v18 }
 0xe7a   :  { %1834 = vadd.xlane.f32.xlu0 %v1833_v20  ;;  %v1941_v20 = vrot.slane %v5117_v50, %v5120_v51 }
 0xe7b   :  { %v5142_v22 = vsub.f32 %v1028_v34, %v1036_v19  ;;  %v1041_v23 = vsel %vm192_vm1, %v1039_v21, 0.0 }
 0xe7c   :  { %1042 = vadd.xlane.f32.xlu1 %v1041_v23 }
 0xe7d   :  { %v1040_v24 = vmul.f32 %v5142_v22, %v5142_v22 }
 0xe7f   :  { %v1044_v26 = vsel %vm192_vm1, %v1040_v24, 0.0 }
 0xe80   :  { %1045 = vadd.xlane.f32.xlu1 %v1044_v26 }
 0xf03   :  { %v1832_v30 = vpop.xlane.xlu0 %1831 }
 0xf04   :  { %v1836_v31 = vmul.f32 0.03125, %v1832_v30 }
 0xf06   :  { %v1838_v32 = vadd.f32 1e-12, %v1836_v31 }
 0xf07   :  { %v1835_v37 = vpop.xlane.xlu0 %1834 }
 0xf08   :  { %4569 = vrsqrt.f32 %v1838_v32  ;;  %v1837_v39 = vmul.f32 0.03125, %v1835_v37 }
 0xf0a   :  { %v1839_v40 = vadd.f32 1e-12, %v1837_v39 }
 0xf0c   :  { %4571 = vrsqrt.f32 %v1839_v40 }
 0xf12   :  { %v4570_v41 = vpop.eup %4569 }
 0xf13   :  { %v1842_v33 = vmul.f32 %v4570_v41, %v1826_v12 }
 0xf15   :  { %v1848_v44 = vmul.f32 %v1847_v42, %v1842_v33 }
 0xf16   :  { %v4572_v43 = vpop.eup %4571 }
 0xf17   :  { %v1843_v45 = vmul.f32 %v4572_v43, %v1827_v17  ;;  %v1854_v48 = vadd.f32 %v1853_v46, %v1848_v44 }
 0xf19   :  { %v1849_v47 = vmul.f32 %v1847_v42, %v1843_v45 }
 0xf1b   :  { %v1855_v49 = vadd.f32 %v1853_v46, %v1849_v47 }
 0xf1d   :  { %v1856_v52 = vpack.c.bf16 %v1855_v49, %v1854_v48 }
 0xf1f   :  { %4209 = vmatmul.mubr.msk.bf16.vlgmr.msra.gmra.mrb[48].mxu0 %vm192_vm1, %v1856_v52  ;;  %v1043_v52 = vpop.xlane.xlu1 %1042 }
 0xf20   :  { %v1047_v53 = vmul.f32 0.03125, %v1043_v52 }
 0xf22   :  { %v1049_v58 = vadd.f32 1e-12, %v1047_v53 }
 0xf23   :  { %v1046_v54 = vpop.xlane.xlu1 %1045 }
 0xf24   :  { %v1048_v60 = vmul.f32 0.03125, %v1046_v54 }
 0xff2   :  { %v1912_v62 = vpop.f32.mrb[48].mxu0 }
 0xff3   :  { %v1913_v59 = vadd.f32 %v3879_v61, %v1912_v62  ;;  %v4210_v63 = vpop.f32.mrb[49].mxu0 }
 0xff4   :  { %v1915_v1 = vpop.f32.mrb[50].mxu0 }
 0xff5   :  { %v1919_v2 = vmul.f32 %v1913_v59, %v1913_v59  ;;  %v1916_v5 = vadd.f32 %v3879_v61, %v1915_v1  ;;  %v4211_v6 = vpop.f32.mrb[51].mxu0  ;;  %v1050_v61 = vadd.f32 1e-12, %v1048_v60  ;;  %v5232_v60 = vld [vmem:[%s3807_s5] sm:$0xff] }
 0xff7   :  { %v1921_v7 = vmul.f32 %v1919_v2, %v1913_v59  ;;  %v1920_v57 = vmul.f32 %v1916_v5, %v1916_v5 }
 0xff9   :  { %v1923_v8 = vmul.f32 0.044715, %v1921_v7  ;;  %v1922_v34 = vmul.f32 %v1920_v57, %v1916_v5 }
 0xffb   :  { %v1925_v9 = vadd.f32 %v1923_v8, %v1913_v59  ;;  %v1924_v11 = vmul.f32 0.044715, %v1922_v34  ;;  %v4709_v8 = vld [vmem:[%s4916_s12] sm:$0xff]  ;;  %s4745_s12 = smov 23  }
 0xffc   :  { %s3823_s30 = sld [smem:[%s5649_s0 + %s4745_s12]]   ;;  %s4754_s12 = smov 32  }
 0xffd   :  { %v1927_v10 = vmul.f32 0.7978846, %v1925_v9  ;;  %v1926_v14 = vadd.f32 %v1924_v11, %v1916_v5  ;;  %v5186_v9 = vsub.s32 5, %v4919_v56 }
 0xfff   :  { %4573 = vtanh.f32 %v1927_v10  ;;  %v1928_v12 = vmul.f32 0.7978846, %v1926_v14 }
0x1001   :  { %4575 = vtanh.f32 %v1928_v12  ;;  %v1064_v12 = vrot.slane %v4709_v8, %v5186_v9 }
0x1002   :  { %4577 = vrsqrt.f32 %v1049_v58 }
0x1003   :  { %4579 = vrsqrt.f32 %v1050_v61 }
0x1009   :  { %v4574_v15 = vpop.eup %4573 }
0x100a   :  { %v1931_v17 = vadd.f32 1.0, %v4574_v15 }
0x100b   :  { %v4576_v38 = vpop.eup %4575 }
0x100c   :  { %v1933_v3 = vmul.f32 0.5, %v1931_v17  ;;  %v1932_v4 = vadd.f32 1.0, %v4576_v38  ;;  %v4578_v6 = vpop.eup %4577  ;;  %v2050_v17 = vld [vmem:[%s3806_s22] sm:$0x3]  ;;  %s3829_s22 = sld [smem:[%s5649_s0 + %s4751_s10]]   ;;  %s4763_s10 = smov 127  }
0x100d   :  { %v1053_v57 = vmul.f32 %v4578_v6, %v5137_v18  ;;  %v4580_v11 = vpop.eup %4579  ;;  %v2047_v18 = vrot.slane %v5117_v50, %v5186_v9 }
0x100e   :  { %v1934_v35 = vmul.f32 0.5, %v1932_v4  ;;  %v1935_v16 = vmul.f32 %v1933_v3, %v1913_v59  ;;  %v1054_v10 = vmul.f32 %v4580_v11, %v5142_v22  ;;  %v2054_v4 = vrot.slane %v2050_v17, %v4922_v13 }
0x1010   :  { %v1936_v36 = vmul.f32 %v1934_v35, %v1916_v5  ;;  %v5180_v5 = vsub.s32 4, %v4919_v56 }
0x1012   :  { %v1937_v19 = vpack.c.bf16 %v1936_v36, %v1935_v16  ;;  %v1058_v34 = vrot.slane %v4709_v8, %v5180_v5  ;;  %v2041_v15 = vrot.slane %v5117_v50, %v5180_v5  ;;  %v5239_v8 = vld [vmem:[%s3807_s5 + $0x18] sm:$0xff] }
0x1014   :  { %4221 = vmatmul.mubr.msk.bf16.vlgmr.msra.gmra.mrb[44].mxu1 %vm982_vm5, %v1937_v19  ;;  %v1059_v14 = vmul.f32 %v1058_v34, %v1053_v57  ;;  %v1060_v35 = vmul.f32 %v1058_v34, %v1054_v10  ;;  %v2059_v19 = vrot.slane %v2050_v17, %v4944_v25 }
0x1016   :  { %v1065_v16 = vadd.f32 %v1064_v12, %v1059_v14 }
0x10e7   :  { %v2003_v21 = vpop.f32.mrb[44].mxu1 }
0x10e8   :  { %v2004_v23 = vadd.f32 %v2003_v21, %v1941_v20  ;;  %v4222_v24 = vpop.f32.mrb[45].mxu1 }
0x10e9   :  { %v2006_v26 = vpop.f32.mrb[46].mxu1 }
0x10ea   :  { %v2007_v27 = vadd.f32 %v2006_v26, %v1941_v20  ;;  %v4223_v28 = vpop.f32.mrb[47].mxu1  ;;  %v2010_v30 = vadd.f32 %v2004_v23, %v1854_v48  ;;  %v4485_v48 = vld [vmem:[%s3822_s9] sm:$0xff]   ;;  %v1066_v23 = vadd.f32 %v1064_v12, %v1060_v35  ;;  %v5196_v26 = vadd.f32 %v2054_v4, %v1065_v16 }
0x10eb   :  { %4224 = vmatprep.subr.bf16.mxu0 %v4485_v48 }
0x10ec   :  { %v2012_v31 = vsel %vm192_vm1, %v2010_v30, 0.0  ;;  %v2011_v32 = vadd.f32 %v2007_v27, %v1855_v49  ;;  %v4486_v49 = vld [vmem:[%s3822_s9 + $0x8] sm:$0xff]   ;;  %4225 = vmatpush3.bf16.msra.mxu0 %v4485_v48 }
0x10ed   :  { %2013 = vadd.xlane.f32.xlu0 %v2012_v31  ;;  %4226 = vmatprep.subr.bf16.mxu0 %v4486_v49 }
0x10ee   :  { %v2015_v37 = vsel %vm192_vm1, %v2011_v32, 0.0 }
0x10f0   :  { %4227 = vmatpush3.bf16.msra.mxu0 %v4486_v49 }
0x10f1   :  { %2016 = vadd.xlane.f32.xlu0 %v2015_v37 }
0x117a   :  { %v2014_v39 = vpop.xlane.xlu0 %2013 }
0x117b   :  { %v2018_v40 = vmul.f32 0.03125, %v2014_v39  ;;  %v3888_v39 = vld [vmem:[%s3823_s30] ss:$0 sm:$0xff]  ;;  %s3832_s30 = sld [smem:[%s5649_s0 + %s4754_s12]]  }
0x117d   :  { %v2020_v41 = vsub.f32 %v2010_v30, %v2018_v40  ;;  %v5202_v30 = vadd.f32 %v2054_v4, %v1066_v23 }
0x117e   :  { %v2017_v42 = vpop.xlane.xlu0 %2016 }
0x117f   :  { %v2019_v33 = vmul.f32 0.03125, %v2017_v42  ;;  %v2022_v43 = vmul.f32 %v2020_v41, %v2020_v41 }
0x1181   :  { %v2021_v44 = vsub.f32 %v2011_v32, %v2019_v33  ;;  %v2024_v45 = vsel %vm192_vm1, %v2022_v43, 0.0 }
0x1182   :  { %2025 = vadd.xlane.f32.xlu0 %v2024_v45 }
0x1183   :  { %v2023_v46 = vmul.f32 %v2021_v44, %v2021_v44 }
0x1185   :  { %v2027_v47 = vsel %vm192_vm1, %v2023_v46, 0.0 }
0x1186   :  { %2028 = vadd.xlane.f32.xlu0 %v2027_v47 }
0x120f   :  { %v2026_v62 = vpop.xlane.xlu0 %2025 }
0x1210   :  { %v2030_v59 = vmul.f32 0.03125, %v2026_v62 }
0x1212   :  { %v2032_v63 = vadd.f32 1e-12, %v2030_v59 }
0x1213   :  { %v2029_v1 = vpop.xlane.xlu0 %2028 }
0x1214   :  { %4581 = vrsqrt.f32 %v2032_v63  ;;  %v2031_v2 = vmul.f32 0.03125, %v2029_v1  ;;  %v5234_v1 = vld [vmem:[%s3807_s5 + $0x8] sm:$0xff] }
0x1216   :  { %v2033_v7 = vadd.f32 1e-12, %v2031_v2  ;;  %v5236_v2 = vld [vmem:[%s3807_s5 + $0x10] sm:$0xff]  ;;  %s3833_s5 = sld [smem:[%s5649_s0 + %s4755_s1]]  }
0x1218   :  { %4583 = vrsqrt.f32 %v2033_v7 }
0x121e   :  { %v4582_v38 = vpop.eup %4581 }
0x121f   :  { %v2036_v3 = vmul.f32 %v4582_v38, %v2020_v41 }
0x1221   :  { %v2042_v36 = vmul.f32 %v2041_v15, %v2036_v3 }
0x1222   :  { %v4584_v22 = vpop.eup %4583 }
0x1223   :  { %v2037_v20 = vmul.f32 %v4584_v22, %v2021_v44  ;;  %v2048_v21 = vadd.f32 %v2047_v18, %v2042_v36 }
0x1225   :  { %v2043_v24 = vmul.f32 %v2041_v15, %v2037_v20  ;;  %v5198_v27 = vadd.f32 %v2059_v19, %v2048_v21 }
0x1227   :  { %v2049_v28 = vadd.f32 %v2047_v18, %v2043_v24  ;;  %v2090_v50 = vpack.c.bf16 %v5198_v27, %v5196_v26 }
0x1229   :  { %v5204_v31 = vadd.f32 %v2059_v19, %v2049_v28  ;;  %4228 = vmatprep.mubr.msk.bf16.mxu0 %vm192_vm1, %v2090_v50 }
0x122b   :  { %v2091_v32 = vpack.c.bf16 %v5204_v31, %v5202_v30 }
0x122d   :  { %4229 = vmatmul.mubr.msk.bf16.vlgmr.msra.gmra.mrb[52].mxu0 %vm192_vm1, %v2091_v32 }
0x1300   :  { %v4230_v37 = vpop.f32.mrb[52].mxu0 }
0x1301   :  { %v2150_v40 = vpop.f32.mrb[53].mxu0  ;;  %v2159_v42 = vadd.f32 %v4230_v37, %v3888_v39 }
0x1302   :  { %v4231_v41 = vpop.f32.mrb[54].mxu0  ;;  %v2151_v44 = vadd.f32 %v3888_v39, %v2150_v40 }
0x1303   :  { %v2162_v33 = vadd.f32 %v4231_v41, %v3888_v39  ;;  %v2153_v43 = vpop.f32.mrb[55].mxu0 }
0x1304   :  { %v2154_v45 = vadd.f32 %v3888_v39, %v2153_v43 }
0x1305   :  { %v5213_v46 = vpack.c.bf16 %v2162_v33, %v2159_v42 }
0x1306   :  { %v5215_v47 = vpack.c.bf16 %v2154_v45, %v2151_v44 }
0x1307   :  { %2171 = vrot.lane.b32.xlu0 %v5213_v46, %s4715_s15 }
0x1308   :  { %2169 = vrot.lane.b32.xlu1 %v5215_v47, %s4715_s15  ;;  %4236 = vmatprep.mubr.msk.bf16.mxu0 %vm241_vm2, %v5215_v47 }
0x1379   :  { %v2172_v52 = vpop.permute.xlu0 %2171 }
0x137a   :  { %v2170_v48 = vpop.permute.xlu1 %2169  ;;  %v2183_v53 = vsel %vm241_vm2, %v2172_v52, 0 }
0x137b   :  { %4332 = vmatprep.subr.msk.bf16.mxu0 %vm241_vm2, %v2170_v48  ;;  %v2180_v49 = vsel %vm241_vm2, %v2170_v48, 0 }
0x137c   :  { %4233 = vmatpush3.bf16.xpose.msra.mxu0 %v2180_v49 }
0x137d   :  { %4333 = vmatprep.subr.msk.bf16.mxu0 %vm241_vm2, %v2172_v52 }
0x1384   :  { %4235 = vmatpush3.bf16.xpose.msra.mxu0 %v2183_v53 }
0x138b   :  { %4237 = vmatmul.mubr.msk.bf16.vlgmr.msra.gmra.mrb[56].mxu0 %vm241_vm2, %v5213_v46 }
0x145e   :  { %v4238_v54 = vpop.f32.mrb[56].mxu0 }
0x145f   :  { %v2219_v58 = vpop.f32.mrb[57].mxu0  ;;  %v2236_v61 = vmul.f32 0.35355338, %v4238_v54 }
0x1460   :  { %v2234_v62 = vmul.f32 0.35355338, %v2219_v58  ;;  %v4239_v59 = vpop.f32.mrb[58].mxu0 }
0x1461   :  { %v2222_v63 = vpop.f32.mrb[59].mxu0  ;;  %v2237_v6 = vmul.f32 0.35355338, %v4239_v59  ;;  %v2240_v10 = vadd.f32 %v2236_v61, %v5236_v2 }
0x1462   :  { %v2235_v7 = vmul.f32 0.35355338, %v2222_v63  ;;  %v2238_v57 = vadd.f32 %v2234_v62, %v5232_v60 }
0x1463   :  { %v2241_v12 = vadd.f32 %v2237_v6, %v5239_v8  ;;  %v2248_v15 = vsel %vm192_vm1, %v2240_v10, -inf }
0x1464   :  { %v2242_v34 = vsel %vm192_vm1, %v2238_v57, -inf  ;;  %v2239_v11 = vadd.f32 %v2235_v7, %v5234_v1 }
0x1465   :  { %2243 = vmax.xlane.f32.xlu1 %v2242_v34  ;;  %v2251_v17 = vsel %vm192_vm1, %v2241_v12, -inf }
0x1466   :  { %v2245_v14 = vsel %vm192_vm1, %v2239_v11, -inf }
0x1467   :  { %2246 = vmax.xlane.f32.xlu0 %v2245_v14 }
0x1469   :  { %2249 = vmax.xlane.f32.xlu1 %v2248_v15 }
0x146b   :  { %2252 = vmax.xlane.f32.xlu0 %v2251_v17 }
0x147a   :  { %2288 = vrot.lane.b32.xlu1 %v5215_v47, %s4723_s26 }
0x14f2   :  { %v2244_v38 = vpop.xlane.xlu1 %2243 }
0x14f3   :  { %v2254_v3 = vsub.f32 %v2238_v57, %v2244_v38 }
0x14f4   :  { %v2247_v18 = vpop.xlane.xlu0 %2246 }
0x14f5   :  { %v2255_v35 = vsub.f32 %v2239_v11, %v2247_v18  ;;  %v2258_v36 = vmul.f32 1.442695, %v2254_v3 }
0x14f6   :  { %v2250_v4 = vpop.xlane.xlu1 %2249 }
0x14f7   :  { %v2256_v16 = vsub.f32 %v2240_v10, %v2250_v4  ;;  %v2260_v23 = vmul.f32 1.442695, %v2255_v35 }
0x14f8   :  { %v2253_v19 = vpop.xlane.xlu0 %2252 }
0x14f9   :  { %v2262_v22 = vmul.f32 1.442695, %v2256_v16  ;;  %v2257_v20 = vsub.f32 %v2241_v12, %v2253_v19 }
0x14fa   :  { %v2289_v21 = vpop.permute.xlu1 %2288 }
0x14fb   :  { %4585 = vpow2.f32 %v2262_v22  ;;  %v2264_v24 = vmul.f32 1.442695, %v2257_v20  ;;  %4240 = vmatprep.subr.bf16.mxu1 %v2289_v21 }
0x14fc   :  { %4587 = vpow2.f32 %v2258_v36  ;;  %4241 = vmatpush3.bf16.msra.mxu1 %v2289_v21 }
0x14fd   :  { %4589 = vpow2.f32 %v2264_v24 }
0x14fe   :  { %4591 = vpow2.f32 %v2260_v23 }
0x1505   :  { %v4586_v28 = vpop.eup %4585 }
0x1506   :  { %v4588_v50 = vpop.eup %4587  ;;  %v2272_v32 = vsel %vm192_vm1, %v4586_v28, 0.0 }
0x1507   :  { %v4590_v37 = vpop.eup %4589  ;;  %2273 = vadd.xlane.f32.xlu1 %v2272_v32  ;;  %v2266_v41 = vsel %vm192_vm1, %v4588_v50, 0.0 }
0x1508   :  { %v2275_v39 = vsel %vm192_vm1, %v4590_v37, 0.0  ;;  %v4592_v40 = vpop.eup %4591 }
0x1509   :  { %2276 = vadd.xlane.f32.xlu0 %v2275_v39  ;;  %v2269_v42 = vsel %vm192_vm1, %v4592_v40, 0.0 }
0x150b   :  { %2267 = vadd.xlane.f32.xlu1 %v2266_v41 }
0x150d   :  { %2270 = vadd.xlane.f32.xlu0 %v2269_v42 }
0x151c   :  { %2353 = vrot.lane.b32.xlu1 %v5215_v47, %s4717_s17 }
0x1520   :  { %2355 = vrot.lane.b32.xlu1 %v5213_v46, %s4717_s17 }
0x1523   :  { %2290 = vrot.lane.b32.xlu0 %v5213_v46, %s4723_s26  ;;  %s4749_s26 = smov 27  }
0x1524   :  { %2351 = vrot.lane.b32.xlu1 %v5213_v46, %s4714_s14 }
0x1527   :  { %2349 = vrot.lane.b32.xlu0 %v5215_v47, %s4714_s14 }
0x1594   :  { %v2274_v33 = vpop.xlane.xlu1 %2273 }
0x1596   :  { %v2277_v43 = vpop.xlane.xlu0 %2276 }
0x1597   :  { %4593 = vrcp.f32 %v2277_v43 }
0x1598   :  { %v2268_v44 = vpop.xlane.xlu1 %2267 }
0x1599   :  { %4595 = vrcp.f32 %v2268_v44 }
0x159a   :  { %4597 = vrcp.f32 %v2274_v33  ;;  %v2271_v45 = vpop.xlane.xlu0 %2270 }
0x159b   :  { %4599 = vrcp.f32 %v2271_v45 }
0x159c   :  { %v2354_v49 = vpop.permute.xlu1 %2353 }
0x159d   :  { %v2364_v34 = vsel %vm241_vm2, %v2354_v49, 0 }
0x159e   :  { %v2291_v48 = vpop.permute.xlu0 %2290 }
0x159f   :  { %4242 = vmatprep.subr.bf16.mxu1 %v2291_v48 }
0x15a0   :  { %4243 = vmatpush3.bf16.msra.mxu1 %v2291_v48  ;;  %v2356_v11 = vpop.permute.xlu1 %2355 }
0x15a1   :  { %4334 = vmatprep.subr.msk.bf16.mxu1 %vm241_vm2, %v2354_v49  ;;  %v4594_v52 = vpop.eup %4593  ;;  %v2367_v10 = vsel %vm241_vm2, %v2356_v11, 0 }
0x15a2   :  { %v2285_v61 = vmul.f32 %v4594_v52, %v4590_v37  ;;  %v2350_v57 = vpop.permute.xlu0 %2349 }
0x15a3   :  { %v4596_v53 = vpop.eup %4595 }
0x15a4   :  { %v4598_v54 = vpop.eup %4597  ;;  %v2282_v62 = vmul.f32 %v4596_v53, %v4588_v50  ;;  %v2352_v14 = vpop.permute.xlu1 %2351 }
0x15a5   :  { %v4600_v58 = vpop.eup %4599  ;;  %v2284_v63 = vmul.f32 %v4598_v54, %v4586_v28 }
0x15a6   :  { %v2283_v59 = vmul.f32 %v4600_v58, %v4592_v40 }
0x15a7   :  { %v2287_v7 = vpack.c.bf16 %v2285_v61, %v2284_v63 }
0x15a8   :  { %v2286_v6 = vpack.c.bf16 %v2283_v59, %v2282_v62 }
0x15aa   :  { %4244 = vmatprep.mubr.msk.bf16.mxu1 %vm192_vm1, %v2286_v6 }
0x15ab   :  { %4245 = vmatmul.mubr.msk.bf16.vlgmr.msra.gmra.mrb[48].mxu1 %vm192_vm1, %v2287_v7 }
0x15ac   :  { %4249 = vmatpush3.bf16.xpose.msra.mxu1 %v2364_v34  ;;  %4252 = vmatprep.mubr.msk.bf16.mxu1 %vm241_vm2, %v2350_v57 }
0x15ad   :  { %4335 = vmatprep.subr.msk.bf16.mxu1 %vm241_vm2, %v2356_v11 }
0x15b4   :  { %4251 = vmatpush3.bf16.xpose.msra.mxu1 %v2367_v10 }
0x15bb   :  { %4253 = vmatmul.mubr.msk.bf16.vlgmr.msra.gmra.mrb[52].mxu1 %vm241_vm2, %v2352_v14 }
0x167e   :  { %v5272_v12 = vpop.f32.mrb[48].mxu1 }
0x167f   :  { %v5274_v15 = vpop.f32.mrb[49].mxu1 }
0x1680   :  { %v5276_v17 = vpop.f32.mrb[50].mxu1 }
0x1681   :  { %v5278_v38 = vpop.f32.mrb[51].mxu1 }
0x168e   :  { %v4254_v3 = vpop.f32.mrb[52].mxu1 }
0x168f   :  { %v2403_v18 = vpop.f32.mrb[53].mxu1  ;;  %v2420_v4 = vmul.f32 0.35355338, %v4254_v3 }
0x1690   :  { %v2418_v35 = vmul.f32 0.35355338, %v2403_v18  ;;  %v4255_v16 = vpop.f32.mrb[54].mxu1 }
0x1691   :  { %v2406_v36 = vpop.f32.mrb[55].mxu1  ;;  %v2421_v20 = vmul.f32 0.35355338, %v4255_v16  ;;  %v2424_v24 = vadd.f32 %v2420_v4, %v5236_v2 }
0x1692   :  { %v2419_v19 = vmul.f32 0.35355338, %v2406_v36  ;;  %v2422_v22 = vadd.f32 %v2418_v35, %v5232_v60 }
0x1693   :  { %v2432_v50 = vsel %vm192_vm1, %v2424_v24, -inf  ;;  %v2425_v32 = vadd.f32 %v2421_v20, %v5239_v8 }
0x1694   :  { %v2426_v21 = vsel %vm192_vm1, %v2422_v22, -inf  ;;  %v2423_v23 = vadd.f32 %v2419_v19, %v5234_v1 }
0x1695   :  { %2427 = vmax.xlane.f32.xlu0 %v2426_v21  ;;  %v2435_v37 = vsel %vm192_vm1, %v2425_v32, -inf }
0x1696   :  { %v2429_v28 = vsel %vm192_vm1, %v2423_v23, -inf }
0x1697   :  { %2430 = vmax.xlane.f32.xlu1 %v2429_v28 }
0x1699   :  { %2433 = vmax.xlane.f32.xlu0 %v2432_v50 }
0x169d   :  { %2436 = vmax.xlane.f32.xlu0 %v2435_v37 }
0x16a8   :  { %2472 = vrot.lane.b32.xlu1 %v5215_v47, %s4722_s25 }
0x1722   :  { %v2428_v39 = vpop.xlane.xlu0 %2427 }
0x1723   :  { %v2438_v41 = vsub.f32 %v2422_v22, %v2428_v39 }
0x1724   :  { %v2431_v40 = vpop.xlane.xlu1 %2430 }
0x1725   :  { %v2442_v44 = vmul.f32 1.442695, %v2438_v41  ;;  %v2439_v45 = vsub.f32 %v2423_v23, %v2431_v40 }
0x1726   :  { %v2434_v42 = vpop.xlane.xlu0 %2433 }
0x1727   :  { %v2440_v33 = vsub.f32 %v2424_v24, %v2434_v42  ;;  %v2444_v53 = vmul.f32 1.442695, %v2439_v45 }
0x1728   :  { %v2473_v43 = vpop.permute.xlu1 %2472 }
0x1729   :  { %v2446_v48 = vmul.f32 1.442695, %v2440_v33  ;;  %4256 = vmatprep.subr.bf16.mxu0 %v2473_v43 }
0x172a   :  { %v2437_v49 = vpop.xlane.xlu0 %2436  ;;  %4257 = vmatpush3.bf16.msra.mxu0 %v2473_v43 }
0x172b   :  { %4601 = vpow2.f32 %v2446_v48  ;;  %v2441_v52 = vsub.f32 %v2425_v32, %v2437_v49 }
0x172c   :  { %4603 = vpow2.f32 %v2442_v44 }
0x172d   :  { %v2448_v54 = vmul.f32 1.442695, %v2441_v52 }
0x172f   :  { %4605 = vpow2.f32 %v2448_v54 }
0x1730   :  { %4607 = vpow2.f32 %v2444_v53 }
0x1735   :  { %v4602_v58 = vpop.eup %4601 }
0x1736   :  { %v2456_v61 = vsel %vm192_vm1, %v4602_v58, 0.0  ;;  %v4604_v62 = vpop.eup %4603 }
0x1737   :  { %2457 = vadd.xlane.f32.xlu1 %v2456_v61  ;;  %v2450_v6 = vsel %vm192_vm1, %v4604_v62, 0.0 }
0x1739   :  { %v4606_v59 = vpop.eup %4605 }
0x173a   :  { %v2459_v63 = vsel %vm192_vm1, %v4606_v59, 0.0  ;;  %v4608_v7 = vpop.eup %4607 }
0x173b   :  { %2460 = vadd.xlane.f32.xlu0 %v2459_v63  ;;  %2451 = vadd.xlane.f32.xlu1 %v2450_v6  ;;  %v2453_v57 = vsel %vm192_vm1, %v4608_v7, 0.0 }
0x173f   :  { %2454 = vadd.xlane.f32.xlu0 %v2453_v57 }
0x174c   :  { %2537 = vrot.lane.b32.xlu1 %v5215_v47, %s4716_s16 }
0x1750   :  { %2539 = vrot.lane.b32.xlu1 %v5213_v46, %s4716_s16 }
0x1754   :  { %2535 = vrot.lane.b32.xlu1 %v5213_v46, %s4719_s19 }
0x1755   :  { %2474 = vrot.lane.b32.xlu0 %v5213_v46, %s4722_s25 }
0x1759   :  { %2533 = vrot.lane.b32.xlu0 %v5215_v47, %s4719_s19 }
0x17c4   :  { %v2458_v34 = vpop.xlane.xlu1 %2457 }
0x17c8   :  { %v2461_v11 = vpop.xlane.xlu0 %2460  ;;  %v2452_v10 = vpop.xlane.xlu1 %2451 }
0x17c9   :  { %4609 = vrcp.f32 %v2461_v11 }
0x17ca   :  { %4611 = vrcp.f32 %v2452_v10 }
0x17cb   :  { %4613 = vrcp.f32 %v2458_v34 }
0x17cc   :  { %v2455_v14 = vpop.xlane.xlu0 %2454  ;;  %v2538_v18 = vpop.permute.xlu1 %2537 }
0x17cd   :  { %4615 = vrcp.f32 %v2455_v14  ;;  %v2548_v28 = vsel %vm241_vm2, %v2538_v18, 0 }
0x17d0   :  { %v2475_v3 = vpop.permute.xlu0 %2474  ;;  %v2540_v32 = vpop.permute.xlu1 %2539 }
0x17d1   :  { %4258 = vmatprep.subr.bf16.mxu0 %v2475_v3  ;;  %v2551_v37 = vsel %vm241_vm2, %v2540_v32, 0 }
0x17d2   :  { %4259 = vmatpush3.bf16.msra.mxu0 %v2475_v3 }
0x17d3   :  { %4336 = vmatprep.subr.msk.bf16.mxu0 %vm241_vm2, %v2538_v18  ;;  %v4610_v4 = vpop.eup %4609 }
0x17d4   :  { %v4612_v35 = vpop.eup %4611  ;;  %v2469_v19 = vmul.f32 %v4610_v4, %v4606_v59  ;;  %v2534_v50 = vpop.permute.xlu0 %2533 }
0x17d5   :  { %v4614_v16 = vpop.eup %4613  ;;  %v2466_v22 = vmul.f32 %v4612_v35, %v4604_v62  ;;  %v2536_v39 = vpop.permute.xlu1 %2535 }
0x17d6   :  { %v2468_v21 = vmul.f32 %v4614_v16, %v4602_v58 }
0x17d7   :  { %v4616_v36 = vpop.eup %4615 }
0x17d8   :  { %v2467_v20 = vmul.f32 %v4616_v36, %v4608_v7  ;;  %v2471_v24 = vpack.c.bf16 %v2469_v19, %v2468_v21 }
0x17da   :  { %v2470_v23 = vpack.c.bf16 %v2467_v20, %v2466_v22 }
0x17dc   :  { %4260 = vmatprep.mubr.msk.bf16.mxu0 %vm192_vm1, %v2470_v23 }
0x17dd   :  { %4261 = vmatmul.mubr.msk.bf16.vlgmr.msra.gmra.mrb[60].mxu0 %vm192_vm1, %v2471_v24 }
0x17de   :  { %4265 = vmatpush3.bf16.xpose.msra.mxu0 %v2548_v28  ;;  %4268 = vmatprep.mubr.msk.bf16.mxu0 %vm241_vm2, %v2534_v50 }
0x17df   :  { %4337 = vmatprep.subr.msk.bf16.mxu0 %vm241_vm2, %v2540_v32 }
0x17e6   :  { %4267 = vmatpush3.bf16.xpose.msra.mxu0 %v2551_v37 }
0x17ed   :  { %4269 = vmatmul.mubr.msk.bf16.vlgmr.msra.gmra.mrb[64].mxu0 %vm241_vm2, %v2536_v39 }
0x18b0   :  { %v5312_v40 = vpop.f32.mrb[60].mxu0 }
0x18b1   :  { %v5314_v41 = vpop.f32.mrb[61].mxu0 }
0x18b2   :  { %v5316_v42 = vpop.f32.mrb[62].mxu0 }
0x18b3   :  { %v4434_v33 = vpack.i.bf16 %v5316_v42, %v5312_v40  ;;  %v5320_v43 = vpop.f32.mrb[63].mxu0 }
0x18b4   :  { %v4429_v44 = vpack.i.bf16 %v5320_v43, %v5314_v41 }
0x18c0   :  { %v4270_v45 = vpop.f32.mrb[64].mxu0 }
0x18c1   :  { %v2587_v48 = vpop.f32.mrb[65].mxu0  ;;  %v2604_v49 = vmul.f32 0.35355338, %v4270_v45 }
0x18c2   :  { %v2602_v52 = vmul.f32 0.35355338, %v2587_v48  ;;  %v4271_v53 = vpop.f32.mrb[66].mxu0 }
0x18c3   :  { %v2590_v54 = vpop.f32.mrb[67].mxu0  ;;  %v2608_v62 = vadd.f32 %v2604_v49, %v5236_v2  ;;  %v2605_v59 = vmul.f32 0.35355338, %v4271_v53 }
0x18c4   :  { %v2606_v58 = vadd.f32 %v2602_v52, %v5232_v60  ;;  %v2603_v61 = vmul.f32 0.35355338, %v2590_v54 }
0x18c5   :  { %v2609_v57 = vadd.f32 %v2605_v59, %v5239_v8  ;;  %v2616_v34 = vsel %vm192_vm1, %v2608_v62, -inf }
0x18c6   :  { %v2607_v63 = vadd.f32 %v2603_v61, %v5234_v1  ;;  %v2610_v6 = vsel %vm192_vm1, %v2606_v58, -inf }
0x18c7   :  { %2611 = vmax.xlane.f32.xlu0 %v2610_v6  ;;  %v2619_v11 = vsel %vm192_vm1, %v2609_v57, -inf }
0x18c8   :  { %v2613_v7 = vsel %vm192_vm1, %v2607_v63, -inf }
0x18c9   :  { %2614 = vmax.xlane.f32.xlu1 %v2613_v7 }
0x18cb   :  { %2617 = vmax.xlane.f32.xlu0 %v2616_v34 }
0x18cf   :  { %2620 = vmax.xlane.f32.xlu0 %v2619_v11 }
0x18da   :  { %2656 = vrot.lane.b32.xlu1 %v5215_v47, %s4724_s27 }
0x1954   :  { %v2612_v10 = vpop.xlane.xlu0 %2611 }
0x1955   :  { %v2622_v3 = vsub.f32 %v2606_v58, %v2612_v10 }
0x1956   :  { %v2615_v14 = vpop.xlane.xlu1 %2614 }
0x1957   :  { %v2626_v16 = vmul.f32 1.442695, %v2622_v3  ;;  %v2623_v36 = vsub.f32 %v2607_v63, %v2615_v14 }
0x1958   :  { %v2618_v18 = vpop.xlane.xlu0 %2617 }
0x1959   :  { %v2624_v4 = vsub.f32 %v2608_v62, %v2618_v18  ;;  %v2628_v21 = vmul.f32 1.442695, %v2623_v36 }
0x195a   :  { %v2657_v35 = vpop.permute.xlu1 %2656 }
0x195b   :  { %v2630_v19 = vmul.f32 1.442695, %v2624_v4  ;;  %4272 = vmatprep.subr.bf16.mxu1 %v2657_v35 }
0x195c   :  { %v2621_v22 = vpop.xlane.xlu0 %2620  ;;  %4273 = vmatpush3.bf16.msra.mxu1 %v2657_v35 }
0x195d   :  { %4617 = vpow2.f32 %v2630_v19  ;;  %v2625_v20 = vsub.f32 %v2609_v57, %v2621_v22 }
0x195e   :  { %4619 = vpow2.f32 %v2626_v16 }
0x195f   :  { %v2632_v23 = vmul.f32 1.442695, %v2625_v20 }
0x1961   :  { %4621 = vpow2.f32 %v2632_v23 }
0x1962   :  { %4623 = vpow2.f32 %v2628_v21 }
0x1967   :  { %v4618_v24 = vpop.eup %4617 }
0x1968   :  { %v2640_v28 = vsel %vm192_vm1, %v4618_v24, 0.0  ;;  %v4620_v50 = vpop.eup %4619 }
0x1969   :  { %2641 = vadd.xlane.f32.xlu1 %v2640_v28  ;;  %v2634_v39 = vsel %vm192_vm1, %v4620_v50, 0.0 }
0x196b   :  { %v4622_v32 = vpop.eup %4621 }
0x196c   :  { %v2643_v37 = vsel %vm192_vm1, %v4622_v32, 0.0  ;;  %v4624_v45 = vpop.eup %4623 }
0x196d   :  { %2644 = vadd.xlane.f32.xlu0 %v2643_v37  ;;  %2635 = vadd.xlane.f32.xlu1 %v2634_v39  ;;  %v2637_v48 = vsel %vm192_vm1, %v4624_v45, 0.0 }
0x1971   :  { %2638 = vadd.xlane.f32.xlu0 %v2637_v48 }
0x197e   :  { %2721 = vrot.lane.b32.xlu1 %v5215_v47, %s4718_s18 }
0x1982   :  { %2723 = vrot.lane.b32.xlu1 %v5213_v46, %s4718_s18  ;;  %s4748_s18 = smov 25  }
0x1983   :  { %s3825_s25 = sld [smem:[%s5649_s0 + %s4748_s18]]   ;;  %s4757_s18 = smov 30  }
0x1986   :  { %2719 = vrot.lane.b32.xlu1 %v5213_v46, %s4720_s20 }
0x1987   :  { %2658 = vrot.lane.b32.xlu0 %v5213_v46, %s4724_s27 }
0x198b   :  { %2717 = vrot.lane.b32.xlu0 %v5215_v47, %s4720_s20 }
0x19f6   :  { %v2642_v49 = vpop.xlane.xlu1 %2641 }
0x19fa   :  { %v2645_v52 = vpop.xlane.xlu0 %2644  ;;  %v2636_v53 = vpop.xlane.xlu1 %2635 }
0x19fb   :  { %4625 = vrcp.f32 %v2645_v52 }
0x19fc   :  { %4627 = vrcp.f32 %v2636_v53 }
0x19fd   :  { %4629 = vrcp.f32 %v2642_v49 }
0x19fe   :  { %v2639_v54 = vpop.xlane.xlu0 %2638  ;;  %v2722_v61 = vpop.permute.xlu1 %2721 }
0x19ff   :  { %4631 = vrcp.f32 %v2639_v54  ;;  %v2732_v3 = vsel %vm241_vm2, %v2722_v61, 0 }
0x1a02   :  { %v2659_v58 = vpop.permute.xlu0 %2658  ;;  %v2724_v4 = vpop.permute.xlu1 %2723 }
0x1a03   :  { %4274 = vmatprep.subr.bf16.mxu1 %v2659_v58  ;;  %v2735_v35 = vsel %vm241_vm2, %v2724_v4, 0 }
0x1a04   :  { %4275 = vmatpush3.bf16.msra.mxu1 %v2659_v58 }
0x1a05   :  { %4338 = vmatprep.subr.msk.bf16.mxu1 %vm241_vm2, %v2722_v61  ;;  %v4626_v62 = vpop.eup %4625 }
0x1a06   :  { %v4628_v59 = vpop.eup %4627  ;;  %v2653_v7 = vmul.f32 %v4626_v62, %v4622_v32  ;;  %v2718_v18 = vpop.permute.xlu0 %2717 }
0x1a07   :  { %v4630_v63 = vpop.eup %4629  ;;  %v2650_v57 = vmul.f32 %v4628_v59, %v4620_v50  ;;  %v2720_v16 = vpop.permute.xlu1 %2719 }
0x1a08   :  { %v2652_v11 = vmul.f32 %v4630_v63, %v4618_v24 }
0x1a09   :  { %v4632_v6 = vpop.eup %4631 }
0x1a0a   :  { %v2651_v34 = vmul.f32 %v4632_v6, %v4624_v45  ;;  %v2655_v14 = vpack.c.bf16 %v2653_v7, %v2652_v11 }
0x1a0c   :  { %v2654_v10 = vpack.c.bf16 %v2651_v34, %v2650_v57 }
0x1a0e   :  { %4276 = vmatprep.mubr.msk.bf16.mxu1 %vm192_vm1, %v2654_v10 }
0x1a0f   :  { %4277 = vmatmul.mubr.msk.bf16.vlgmr.msra.gmra.mrb[56].mxu1 %vm192_vm1, %v2655_v14 }
0x1a10   :  { %4281 = vmatpush3.bf16.xpose.msra.mxu1 %v2732_v3  ;;  %4284 = vmatprep.mubr.msk.bf16.mxu1 %vm241_vm2, %v2718_v18 }
0x1a11   :  { %4339 = vmatprep.subr.msk.bf16.mxu1 %vm241_vm2, %v2724_v4 }
0x1a18   :  { %4283 = vmatpush3.bf16.xpose.msra.mxu1 %v2735_v35 }
0x1a1f   :  { %4285 = vmatmul.mubr.msk.bf16.vlgmr.msra.gmra.mrb[60].mxu1 %vm241_vm2, %v2720_v16 }
0x1ae2   :  { %v4278_v36 = vpop.f32.mrb[56].mxu1 }
0x1ae3   :  { %v2702_v19 = vpop.f32.mrb[57].mxu1 }
0x1ae4   :  { %v4279_v22 = vpop.f32.mrb[58].mxu1 }
0x1ae5   :  { %v4444_v20 = vpack.i.bf16 %v4279_v22, %v4278_v36  ;;  %v2705_v21 = vpop.f32.mrb[59].mxu1 }
0x1ae6   :  { %v4439_v23 = vpack.i.bf16 %v2705_v21, %v2702_v19 }
0x1af2   :  { %v4286_v24 = vpop.f32.mrb[60].mxu1 }
0x1af3   :  { %v2771_v28 = vpop.f32.mrb[61].mxu1  ;;  %v2788_v50 = vmul.f32 0.35355338, %v4286_v24 }
0x1af4   :  { %v2786_v32 = vmul.f32 0.35355338, %v2771_v28  ;;  %v4287_v37 = vpop.f32.mrb[62].mxu1 }
0x1af5   :  { %v2774_v39 = vpop.f32.mrb[63].mxu1  ;;  %v2792_v49 = vadd.f32 %v2788_v50, %v5236_v2  ;;  %v2789_v52 = vmul.f32 0.35355338, %v4287_v37 }
0x1af6   :  { %v2790_v45 = vadd.f32 %v2786_v32, %v5232_v60  ;;  %v2787_v48 = vmul.f32 0.35355338, %v2774_v39  ;;  %v4487_v39 = vld [vmem:[%s4894_s2] sm:$0xff]  }
0x1af7   :  { %v2793_v61 = vadd.f32 %v2789_v52, %v5239_v8  ;;  %v2800_v62 = vsel %vm192_vm1, %v2792_v49, -inf }
0x1af8   :  { %v2791_v53 = vadd.f32 %v2787_v48, %v5234_v1  ;;  %v2794_v54 = vsel %vm192_vm1, %v2790_v45, -inf }
0x1af9   :  { %2795 = vmax.xlane.f32.xlu0 %v2794_v54  ;;  %v2803_v59 = vsel %vm192_vm1, %v2793_v61, -inf }
0x1afa   :  { %v2797_v58 = vsel %vm192_vm1, %v2791_v53, -inf }
0x1afb   :  { %2798 = vmax.xlane.f32.xlu1 %v2797_v58 }
0x1afd   :  { %2801 = vmax.xlane.f32.xlu0 %v2800_v62 }
0x1b01   :  { %2804 = vmax.xlane.f32.xlu0 %v2803_v59 }
0x1b86   :  { %v2796_v60 = vpop.xlane.xlu0 %2795 }
0x1b87   :  { %v2806_v63 = vsub.f32 %v2790_v45, %v2796_v60  ;;  %v4488_v45 = vld [vmem:[%s4894_s2 + $0x8] sm:$0xff]   ;;  %s4750_s2 = smov 26  }
0x1b88   :  { %v2799_v2 = vpop.xlane.xlu1 %2798  ;;  %s3826_s9 = sld [smem:[%s5649_s0 + %s4750_s2]]   ;;  %s4759_s2 = smov 118  }
0x1b89   :  { %v2810_v1 = vmul.f32 1.442695, %v2806_v63  ;;  %v2807_v57 = vsub.f32 %v2791_v53, %v2799_v2 }
0x1b8a   :  { %v2802_v6 = vpop.xlane.xlu0 %2801 }
0x1b8b   :  { %v2808_v7 = vsub.f32 %v2792_v49, %v2802_v6  ;;  %v2812_v14 = vmul.f32 1.442695, %v2807_v57 }
0x1b8d   :  { %v2814_v34 = vmul.f32 1.442695, %v2808_v7 }
0x1b8e   :  { %v2805_v11 = vpop.xlane.xlu0 %2804 }
0x1b8f   :  { %4633 = vpow2.f32 %v2814_v34  ;;  %v2809_v10 = vsub.f32 %v2793_v61, %v2805_v11 }
0x1b90   :  { %4635 = vpow2.f32 %v2810_v1 }
0x1b91   :  { %v2816_v8 = vmul.f32 1.442695, %v2809_v10 }
0x1b93   :  { %4637 = vpow2.f32 %v2816_v8 }
0x1b94   :  { %4639 = vpow2.f32 %v2812_v14 }
0x1b99   :  { %v4634_v3 = vpop.eup %4633 }
0x1b9a   :  { %v2824_v18 = vsel %vm192_vm1, %v4634_v3, 0.0  ;;  %v4636_v4 = vpop.eup %4635 }
0x1b9b   :  { %2825 = vadd.xlane.f32.xlu1 %v2824_v18  ;;  %v2818_v36 = vsel %vm192_vm1, %v4636_v4, 0.0 }
0x1b9d   :  { %v4638_v35 = vpop.eup %4637 }
0x1b9e   :  { %v2827_v16 = vsel %vm192_vm1, %v4638_v35, 0.0  ;;  %v4640_v19 = vpop.eup %4639 }
0x1b9f   :  { %2828 = vadd.xlane.f32.xlu0 %v2827_v16  ;;  %2819 = vadd.xlane.f32.xlu1 %v2818_v36  ;;  %v2821_v22 = vsel %vm192_vm1, %v4640_v19, 0.0 }
0x1ba3   :  { %2822 = vadd.xlane.f32.xlu0 %v2821_v22 }
0x1bb0   :  { %2840 = vrot.lane.b32.xlu1 %v5215_v47, %s4725_s28 }
0x1bb4   :  { %4430 = vrot.lane.b32.xlu1 %v4429_v44, %s4711_s3 }
0x1bb8   :  { %4435 = vrot.lane.b32.xlu1 %v4434_v33, %s4711_s3  ;;  %s4747_s3 = smov 28  }
0x1bb9   :  { %2842 = vrot.lane.b32.xlu0 %v5213_v46, %s4725_s28  ;;  %s3828_s17 = sld [smem:[%s5649_s0 + %s4747_s3]]   ;;  %s4756_s3 = smov 31  }
0x1bbc   :  { %4445 = vrot.lane.b32.xlu1 %v4444_v20, %s4728_s8 }
0x1bbd   :  { %4440 = vrot.lane.b32.xlu0 %v4439_v23, %s4728_s8  ;;  %s4760_s8 = smov 122  }
0x1c28   :  { %v2826_v21 = vpop.xlane.xlu1 %2825 }
0x1c2c   :  { %v2829_v24 = vpop.xlane.xlu0 %2828  ;;  %v2820_v47 = vpop.xlane.xlu1 %2819 }
0x1c2d   :  { %4641 = vrcp.f32 %v2829_v24 }
0x1c2e   :  { %4643 = vrcp.f32 %v2820_v47 }
0x1c2f   :  { %4645 = vrcp.f32 %v2826_v21 }
0x1c30   :  { %v2823_v41 = vpop.xlane.xlu0 %2822  ;;  %v2841_v43 = vpop.permute.xlu1 %2840 }
0x1c31   :  { %4647 = vrcp.f32 %v2823_v41  ;;  %4288 = vmatprep.subr.bf16.mxu0 %v2841_v43 }
0x1c32   :  { %4289 = vmatpush3.bf16.msra.mxu0 %v2841_v43 }
0x1c34   :  { %v2843_v40 = vpop.permute.xlu0 %2842  ;;  %v4431_v61 = vpop.permute.xlu1 %4430 }
0x1c35   :  { %4290 = vmatprep.subr.bf16.mxu0 %v2843_v40  ;;  %v4433_v60 = vunpack.i.h.bf16 %v4431_v61  ;;  %v4432_v63 = vunpack.i.l.bf16 %v4431_v61 }
0x1c36   :  { %4291 = vmatpush3.bf16.msra.mxu0 %v2843_v40  ;;  %v5409_v40 = vld [vmem:[%s3828_s17] sm:$0xff]  ;;  %s3831_s17 = sld [smem:[%s5649_s0 + %s4756_s3]]  }
0x1c37   :  { %v4642_v46 = vpop.eup %4641  ;;  %4296 = vmatprep.subr.bf16.mxu0 %v4487_v39  ;;  %v2950_v10 = vsel %vm241_vm2, %v5278_v38, %v4433_v60  ;;  %v2949_v14 = vsel %vm241_vm2, %v5274_v15, %v4432_v63 }
0x1c38   :  { %v4644_v42 = vpop.eup %4643  ;;  %v2837_v20 = vmul.f32 %v4642_v46, %v4638_v35  ;;  %v4436_v62 = vpop.permute.xlu1 %4435  ;;  %v2966_v46 = vrot.slane %v5409_v40, %v4922_v13 }
0x1c39   :  { %v4646_v33 = vpop.eup %4645  ;;  %v2834_v23 = vmul.f32 %v4644_v42, %v4636_v4  ;;  %v4441_v2 = vpop.permute.xlu0 %4440  ;;  %v4438_v6 = vunpack.i.h.bf16 %v4436_v62  ;;  %v4437_v7 = vunpack.i.l.bf16 %v4436_v62 }
0x1c3a   :  { %v2836_v50 = vmul.f32 %v4646_v33, %v4634_v3  ;;  %v4443_v34 = vunpack.i.h.bf16 %v4441_v2  ;;  %v4442_v11 = vunpack.i.l.bf16 %v4441_v2 }
0x1c3b   :  { %v4648_v44 = vpop.eup %4647  ;;  %v2952_v3 = vsel %vm241_vm2, %v5276_v17, %v4438_v6  ;;  %v2951_v18 = vsel %vm241_vm2, %v5272_v12, %v4437_v7 }
0x1c3c   :  { %v2835_v28 = vmul.f32 %v4648_v44, %v4640_v19  ;;  %v2839_v37 = vpack.c.bf16 %v2837_v20, %v2836_v50  ;;  %v4446_v59 = vpop.permute.xlu1 %4445  ;;  %v2953_v38 = vsel %vm293_vm3, %v2949_v14, %v4442_v11  ;;  %v2954_v15 = vsel %vm293_vm3, %v2950_v10, %v4443_v34 }
0x1c3d   :  { %v4448_v1 = vunpack.i.h.bf16 %v4446_v59  ;;  %v4447_v57 = vunpack.i.l.bf16 %v4446_v59 }
0x1c3e   :  { %v2838_v32 = vpack.c.bf16 %v2835_v28, %v2834_v23 }
0x1c3f   :  { %v2955_v36 = vsel %vm293_vm3, %v2951_v18, %v4447_v57  ;;  %v2956_v19 = vsel %vm293_vm3, %v2952_v3, %v4448_v1  ;;  %v4489_v3 = vld [vmem:[%s3825_s25] sm:$0xff]   ;;  %v4490_v18 = vld [vmem:[%s3825_s25 + $0x8] sm:$0xff]   ;;  %s3830_s25 = sld [smem:[%s5649_s0 + %s4757_s18]]  }
0x1c40   :  { %4292 = vmatprep.mubr.msk.bf16.mxu0 %vm192_vm1, %v2838_v32  ;;  %4304 = vmatprep.subr.bf16.mxu1 %v4489_v3 }
0x1c41   :  { %4293 = vmatmul.mubr.msk.bf16.vlgmr.msra.gmra.mrb[68].mxu0 %vm192_vm1, %v2839_v37  ;;  %4305 = vmatpush3.bf16.msra.mxu1 %v4489_v3 }
0x1c42   :  { %4297 = vmatpush3.bf16.msra.mxu0 %v4487_v39  ;;  %4306 = vmatprep.subr.bf16.mxu1 %v4490_v18 }
0x1c43   :  { %4298 = vmatprep.subr.bf16.mxu0 %v4488_v45 }
0x1c45   :  { %4307 = vmatpush3.bf16.msra.mxu1 %v4490_v18 }
0x1c46   :  { %4299 = vmatpush3.bf16.msra.mxu0 %v4488_v45 }
0x1d14   :  { %v4294_v48 = vpop.f32.mrb[68].mxu0 }
0x1d15   :  { %v2886_v49 = vpop.f32.mrb[69].mxu0 }
0x1d16   :  { %v4295_v52 = vpop.f32.mrb[70].mxu0 }
0x1d17   :  { %v4454_v53 = vpack.i.bf16 %v4295_v52, %v4294_v48  ;;  %v2889_v54 = vpop.f32.mrb[71].mxu0 }
0x1d18   :  { %v4449_v58 = vpack.i.bf16 %v2889_v54, %v2886_v49 }
0x1d19   :  { %4455 = vrot.lane.b32.xlu1 %v4454_v53, %s4726_s29 }
0x1d1a   :  { %4450 = vrot.lane.b32.xlu0 %v4449_v58, %s4726_s29  ;;  %s3827_s29 = sld [smem:[%s5649_s0 + %s4749_s26]]   ;;  %s4758_s26 = smov 34  }
0x1d8b   :  { %v4456_v8 = vpop.permute.xlu1 %4455 }
0x1d8c   :  { %v4458_v4 = vunpack.i.h.bf16 %v4456_v8  ;;  %v4457_v35 = vunpack.i.l.bf16 %v4456_v8  ;;  %v4451_v16 = vpop.permute.xlu0 %4450 }
0x1d8d   :  { %v4453_v22 = vunpack.i.h.bf16 %v4451_v16  ;;  %v4452_v21 = vunpack.i.l.bf16 %v4451_v16 }
0x1d8e   :  { %v2959_v24 = vsel %vm767_vm4, %v2955_v36, %v4457_v35  ;;  %v2960_v17 = vsel %vm767_vm4, %v2956_v19, %v4458_v4 }
0x1d8f   :  { %v2962_v47 = vpack.c.bf16 %v2960_v17, %v2959_v24  ;;  %v2957_v12 = vsel %vm767_vm4, %v2953_v38, %v4452_v21  ;;  %v2958_v41 = vsel %vm767_vm4, %v2954_v15, %v4453_v22  ;;  %vm3575_vm4 = vcmask 25600  }
0x1d90   :  { %v2961_v43 = vpack.c.bf16 %v2958_v41, %v2957_v12  ;;  %v3093_v12 = vrot.slane %v5409_v40, %v4944_v25 }
0x1d92   :  { %4300 = vmatprep.mubr.msk.bf16.mxu0 %vm192_vm1, %v2961_v43 }
0x1d93   :  { %4301 = vmatmul.mubr.msk.bf16.vlgmr.msra.gmra.mrb[72].mxu0 %vm192_vm1, %v2962_v47 }
0x1e66   :  { %v4302_v42 = vpop.f32.mrb[72].mxu0 }
0x1e67   :  { %v3019_v33 = vpop.f32.mrb[73].mxu0  ;;  %v3028_v44 = vadd.f32 %v4302_v42, %v2966_v46 }
0x1e68   :  { %v3020_v20 = vadd.f32 %v3019_v33, %v2966_v46  ;;  %v4303_v23 = vpop.f32.mrb[74].mxu0 }
0x1e69   :  { %v3022_v28 = vpop.f32.mrb[75].mxu0  ;;  %v3036_v37 = vadd.f32 %v3028_v44, %v5202_v30  ;;  %v3031_v39 = vadd.f32 %v4303_v23, %v2966_v46  ;;  %v3101_v44 = vrot.slane %v5409_v40, %v4949_v29 }
0x1e6a   :  { %v3034_v50 = vadd.f32 %v3020_v20, %v5196_v26  ;;  %v3023_v32 = vadd.f32 %v3022_v28, %v2966_v46 }
0x1e6b   :  { %v3037_v52 = vadd.f32 %v3031_v39, %v5204_v31  ;;  %v3044_v53 = vsel %vm192_vm1, %v3036_v37, 0.0 }
0x1e6c   :  { %v3035_v45 = vadd.f32 %v3023_v32, %v5198_v27  ;;  %v3038_v48 = vsel %vm192_vm1, %v3034_v50, 0.0 }
0x1e6d   :  { %3039 = vadd.xlane.f32.xlu0 %v3038_v48  ;;  %v3047_v54 = vsel %vm192_vm1, %v3037_v52, 0.0 }
0x1e6e   :  { %v3041_v49 = vsel %vm192_vm1, %v3035_v45, 0.0 }
0x1e6f   :  { %3042 = vadd.xlane.f32.xlu1 %v3041_v49 }
0x1e71   :  { %3045 = vadd.xlane.f32.xlu0 %v3044_v53 }
0x1e75   :  { %3048 = vadd.xlane.f32.xlu0 %v3047_v54  ;;  %v4491_v54 = vld [vmem:[%s3827_s29] sm:$0xff]  }
0x1e76   :  { %4312 = vmatprep.subr.bf16.mxu0 %v4491_v54 }
0x1e77   :  { %4313 = vmatpush3.bf16.msra.mxu0 %v4491_v54  ;;  %v3222_v54 = vrot.slane %v5409_v40, %v5120_v51 }
0x1efa   :  { %v3040_v26 = vpop.xlane.xlu0 %3039 }
0x1efb   :  { %v3050_v58 = vmul.f32 0.03125, %v3040_v26  ;;  %v4492_v26 = vld [vmem:[%s3827_s29 + $0x8] sm:$0xff]  }
0x1efc   :  { %v3043_v30 = vpop.xlane.xlu1 %3042  ;;  %4314 = vmatprep.subr.bf16.mxu0 %v4492_v26 }
0x1efd   :  { %v3054_v61 = vsub.f32 %v3034_v50, %v3050_v58  ;;  %v3051_v62 = vmul.f32 0.03125, %v3043_v30  ;;  %4315 = vmatpush3.bf16.msra.mxu0 %v4492_v26  ;;  %v4493_v58 = vld [vmem:[%s3827_s29 + $0x10] sm:$0xff]   ;;  %v4494_v30 = vld [vmem:[%s3827_s29 + $0x18] sm:$0xff]   ;;  %s5502_s29 = sld [smem:[%s5649_s0 + %s4758_s26]]  }
0x1efe   :  { %v3046_v27 = vpop.xlane.xlu0 %3045  ;;  %4316 = vmatprep.subr.bf16.mxu0 %v4493_v58 }
0x1eff   :  { %v3055_v59 = vsub.f32 %v3035_v45, %v3051_v62  ;;  %v3052_v60 = vmul.f32 0.03125, %v3046_v27  ;;  %v3058_v63 = vmul.f32 %v3054_v61, %v3054_v61 }
0x1f01   :  { %v3056_v2 = vsub.f32 %v3036_v37, %v3052_v60  ;;  %v3062_v6 = vsel %vm192_vm1, %v3058_v63, 0.0  ;;  %v3059_v7 = vmul.f32 %v3055_v59, %v3055_v59  ;;  %4317 = vmatpush3.bf16.msra.mxu0 %v4493_v58 }
0x1f02   :  { %3063 = vadd.xlane.f32.xlu1 %v3062_v6  ;;  %v3049_v31 = vpop.xlane.xlu0 %3048  ;;  %4318 = vmatprep.subr.bf16.mxu0 %v4494_v30 }
0x1f03   :  { %v3053_v1 = vmul.f32 0.03125, %v3049_v31  ;;  %v3065_v57 = vsel %vm192_vm1, %v3059_v7, 0.0  ;;  %v3060_v34 = vmul.f32 %v3056_v2, %v3056_v2 }
0x1f04   :  { %3066 = vadd.xlane.f32.xlu0 %v3065_v57 }
0x1f05   :  { %v3057_v11 = vsub.f32 %v3037_v52, %v3053_v1  ;;  %v3068_v10 = vsel %vm192_vm1, %v3060_v34, 0.0  ;;  %4319 = vmatpush3.bf16.msra.mxu0 %v4494_v30 }
0x1f06   :  { %3069 = vadd.xlane.f32.xlu1 %v3068_v10 }
0x1f07   :  { %v3061_v14 = vmul.f32 %v3057_v11, %v3057_v11 }
0x1f09   :  { %v3071_v8 = vsel %vm192_vm1, %v3061_v14, 0.0 }
0x1f0a   :  { %3072 = vadd.xlane.f32.xlu0 %v3071_v8 }
0x1f8f   :  { %v3064_v4 = vpop.xlane.xlu1 %3063 }
0x1f90   :  { %v3074_v35 = vmul.f32 0.03125, %v3064_v4 }
0x1f91   :  { %v3067_v16 = vpop.xlane.xlu0 %3066 }
0x1f92   :  { %v3078_v36 = vadd.f32 1e-12, %v3074_v35  ;;  %v3075_v19 = vmul.f32 0.03125, %v3067_v16 }
0x1f93   :  { %v3070_v22 = vpop.xlane.xlu1 %3069 }
0x1f94   :  { %4649 = vrsqrt.f32 %v3078_v36  ;;  %v3079_v21 = vadd.f32 1e-12, %v3075_v19  ;;  %v3076_v38 = vmul.f32 0.03125, %v3070_v22 }
0x1f96   :  { %4651 = vrsqrt.f32 %v3079_v21  ;;  %v3080_v15 = vadd.f32 1e-12, %v3076_v38 }
0x1f97   :  { %v3073_v24 = vpop.xlane.xlu0 %3072 }
0x1f98   :  { %4653 = vrsqrt.f32 %v3080_v15  ;;  %v3077_v17 = vmul.f32 0.03125, %v3073_v24 }
0x1f9a   :  { %v3081_v47 = vadd.f32 1e-12, %v3077_v17 }
0x1f9c   :  { %4655 = vrsqrt.f32 %v3081_v47 }
0x1f9e   :  { %v4650_v41 = vpop.eup %4649 }
0x1f9f   :  { %v3086_v43 = vmul.f32 %v4650_v41, %v3054_v61  ;;  %v3913_v61 = vld [vmem:[%s3826_s9] ss:$0 sm:$0xff]  ;;  %s4762_s9 = smov 106  }
0x1fa0   :  { %v4652_v46 = vpop.eup %4651 }
0x1fa1   :  { %v3087_v42 = vmul.f32 %v4652_v46, %v3055_v59  ;;  %v3094_v33 = vmul.f32 %v3093_v12, %v3086_v43 }
0x1fa2   :  { %v4654_v20 = vpop.eup %4653 }
0x1fa3   :  { %v3088_v23 = vmul.f32 %v4654_v20, %v3056_v2  ;;  %v3095_v28 = vmul.f32 %v3093_v12, %v3087_v42  ;;  %v5432_v50 = vadd.f32 %v3101_v44, %v3094_v33 }
0x1fa5   :  { %v5434_v32 = vadd.f32 %v3101_v44, %v3095_v28  ;;  %v3096_v39 = vmul.f32 %v3093_v12, %v3088_v23 }
0x1fa6   :  { %v4656_v37 = vpop.eup %4655 }
0x1fa7   :  { %v3089_v45 = vmul.f32 %v4656_v37, %v3057_v11  ;;  %v3106_v48 = vpack.c.bf16 %v5434_v32, %v5432_v50  ;;  %v5439_v52 = vadd.f32 %v3101_v44, %v3096_v39 }
0x1fa9   :  { %v3097_v49 = vmul.f32 %v3093_v12, %v3089_v45  ;;  %4308 = vmatprep.mubr.msk.bf16.mxu1 %vm192_vm1, %v3106_v48 }
0x1fab   :  { %v5441_v53 = vadd.f32 %v3101_v44, %v3097_v49 }
0x1fad   :  { %v3107_v29 = vpack.c.bf16 %v5441_v53, %v5439_v52 }
0x1faf   :  { %4309 = vmatmul.mubr.msk.bf16.vlgmr.msra.gmra.mrb[64].mxu1 %vm192_vm1, %v3107_v29 }
0x2082   :  { %v4310_v62 = vpop.f32.mrb[64].mxu1 }
0x2083   :  { %v3175_v27 = vadd.f32 %v4310_v62, %v3913_v61  ;;  %v3166_v59 = vpop.f32.mrb[65].mxu1 }
0x2084   :  { %v3167_v60 = vadd.f32 %v3913_v61, %v3166_v59  ;;  %v4311_v63 = vpop.f32.mrb[66].mxu1 }
0x2085   :  { %v3183_v2 = vmul.f32 %v3175_v27, %v3175_v27  ;;  %v3178_v6 = vadd.f32 %v4311_v63, %v3913_v61  ;;  %v3169_v7 = vpop.f32.mrb[67].mxu1 }
0x2086   :  { %v3181_v31 = vmul.f32 %v3167_v60, %v3167_v60  ;;  %v3170_v1 = vadd.f32 %v3913_v61, %v3169_v7 }
0x2087   :  { %v3187_v57 = vmul.f32 %v3183_v2, %v3175_v27  ;;  %v3184_v34 = vmul.f32 %v3178_v6, %v3178_v6 }
0x2088   :  { %v3185_v11 = vmul.f32 %v3181_v31, %v3167_v60  ;;  %v3182_v10 = vmul.f32 %v3170_v1, %v3170_v1 }
0x2089   :  { %v3191_v14 = vmul.f32 0.044715, %v3187_v57  ;;  %v3188_v8 = vmul.f32 %v3184_v34, %v3178_v6 }
0x208a   :  { %v3189_v3 = vmul.f32 0.044715, %v3185_v11  ;;  %v3186_v18 = vmul.f32 %v3182_v10, %v3170_v1 }
0x208b   :  { %v3195_v4 = vadd.f32 %v3191_v14, %v3175_v27  ;;  %v3192_v35 = vmul.f32 0.044715, %v3188_v8 }
0x208c   :  { %v3193_v16 = vadd.f32 %v3189_v3, %v3167_v60  ;;  %v3190_v36 = vmul.f32 0.044715, %v3186_v18 }
0x208d   :  { %v3199_v19 = vmul.f32 0.7978846, %v3195_v4  ;;  %v3196_v22 = vadd.f32 %v3192_v35, %v3178_v6 }
0x208e   :  { %v3197_v21 = vmul.f32 0.7978846, %v3193_v16  ;;  %v3194_v38 = vadd.f32 %v3190_v36, %v3170_v1 }
0x208f   :  { %4657 = vtanh.f32 %v3199_v19  ;;  %v3200_v15 = vmul.f32 0.7978846, %v3196_v22 }
0x2090   :  { %4659 = vtanh.f32 %v3197_v21  ;;  %v3198_v24 = vmul.f32 0.7978846, %v3194_v38 }
0x2091   :  { %4661 = vtanh.f32 %v3200_v15 }
0x2092   :  { %4663 = vtanh.f32 %v3198_v24  ;;  %v4495_v24 = vld [vmem:[%s3829_s22] sm:$0xff]  }
0x2093   :  { %4324 = vmatprep.subr.bf16.mxu1 %v4495_v24 }
0x2094   :  { %4325 = vmatpush3.bf16.msra.mxu1 %v4495_v24 }
0x2099   :  { %v4658_v17 = vpop.eup %4657 }
0x209a   :  { %v4660_v47 = vpop.eup %4659  ;;  %v3207_v12 = vadd.f32 1.0, %v4658_v17  ;;  %v4496_v17 = vld [vmem:[%s3829_s22 + $0x8] sm:$0xff]   ;;  %s4768_s22 = smov 35  }
0x209b   :  { %v4662_v41 = vpop.eup %4661  ;;  %v3205_v43 = vadd.f32 1.0, %v4660_v47  ;;  %4326 = vmatprep.subr.bf16.mxu1 %v4496_v17  ;;  %v4752_v47 = vmov 1  }
0x209c   :  { %v4664_v46 = vpop.eup %4663  ;;  %v3211_v42 = vmul.f32 0.5, %v3207_v12  ;;  %v3208_v33 = vadd.f32 1.0, %v4662_v41  ;;  %4327 = vmatpush3.bf16.msra.mxu1 %v4496_v17  ;;  %4460 = vset.pattern.permute.xlu0 %v4752_v47  ;;  %v4753_v12 = vmov 0   ;;  %v5477_v41 = vld [vmem:[%s3832_s30] sm:$0x3] }
0x209d   :  { %v3209_v44 = vmul.f32 0.5, %v3205_v43  ;;  %v3206_v20 = vadd.f32 1.0, %v4664_v46  ;;  %4459 = vset.pattern.permute.xlu1 %v4753_v12  ;;  %v5481_v43 = vld [vmem:[%s3833_s5] sm:$0x3] }
0x209e   :  { %v3212_v23 = vmul.f32 0.5, %v3208_v33  ;;  %v3215_v37 = vmul.f32 %v3211_v42, %v3175_v27 }
0x209f   :  { %v3210_v28 = vmul.f32 0.5, %v3206_v20  ;;  %v3213_v45 = vmul.f32 %v3209_v44, %v3167_v60 }
0x20a0   :  { %v3216_v39 = vmul.f32 %v3212_v23, %v3178_v6 }
0x20a1   :  { %v3214_v48 = vmul.f32 %v3210_v28, %v3170_v1 }
0x20a2   :  { %v3218_v49 = vpack.c.bf16 %v3216_v39, %v3215_v37 }
0x20a3   :  { %v3217_v29 = vpack.c.bf16 %v3214_v48, %v3213_v45 }
0x20a5   :  { %4320 = vmatprep.mubr.msk.bf16.mxu0 %vm982_vm5, %v3217_v29  ;;  %v3361_v29 = vrot.slane %v5409_v40, %v5180_v5 }
0x20a6   :  { %4321 = vmatmul.mubr.msk.bf16.vlgmr.msra.gmra.mrb[76].mxu0 %vm982_vm5, %v3218_v49 }
0x2179   :  { %v4322_v26 = vpop.f32.mrb[76].mxu0 }
0x217a   :  { %v3287_v58 = vpop.f32.mrb[77].mxu0  ;;  %v3296_v30 = vadd.f32 %v4322_v26, %v3222_v54 }
0x217b   :  { %v3288_v61 = vadd.f32 %v3287_v58, %v3222_v54  ;;  %v4323_v62 = vpop.f32.mrb[78].mxu0 }
0x217c   :  { %v3290_v59 = vpop.f32.mrb[79].mxu0  ;;  %v3299_v63 = vadd.f32 %v4323_v62, %v3222_v54  ;;  %v3304_v2 = vadd.f32 %v3296_v30, %v5439_v52  ;;  %v3369_v62 = vrot.slane %v5409_v40, %v5186_v9  ;;  %v5497_v9 = vld [vmem:[%s3831_s17] sm:$0x3] }
0x217d   :  { %v3302_v27 = vadd.f32 %v3288_v61, %v5432_v50  ;;  %v3291_v60 = vadd.f32 %v3290_v59, %v3222_v54  ;;  %v3542_v40 = vrot.slane %v5497_v9, %v4944_v25  ;;  %vm3509_vm2 = vcmp.eq.s32.totalorder %v5497_v9, 16 }
0x217e   :  { %v3305_v31 = vadd.f32 %v3299_v63, %v5441_v53  ;;  %v3312_v1 = vsel %vm192_vm1, %v3304_v2, 0.0 }
0x217f   :  { %v3303_v6 = vadd.f32 %v3291_v60, %v5434_v32  ;;  %v3306_v7 = vsel %vm192_vm1, %v3302_v27, 0.0  ;;  %vm3543_vm6 = vcmp.eq.s32.totalorder %v4919_v56, %v3542_v40 }
0x2180   :  { %3307 = vadd.xlane.f32.xlu1 %v3306_v7  ;;  %v3315_v57 = vsel %vm192_vm1, %v3305_v31, 0.0 }
0x2181   :  { %v3309_v51 = vsel %vm192_vm1, %v3303_v6, 0.0 }
0x2182   :  { %3310 = vadd.xlane.f32.xlu0 %v3309_v51 }
0x2184   :  { %3313 = vadd.xlane.f32.xlu1 %v3312_v1 }
0x2186   :  { %3316 = vadd.xlane.f32.xlu0 %v3315_v57 }
0x220d   :  { %v3308_v50 = vpop.xlane.xlu1 %3307 }
0x220e   :  { %v3318_v34 = vmul.f32 0.03125, %v3308_v50 }
0x220f   :  { %v3311_v11 = vpop.xlane.xlu0 %3310 }
0x2210   :  { %v3322_v52 = vsub.f32 %v3302_v27, %v3318_v34  ;;  %v3319_v10 = vmul.f32 0.03125, %v3311_v11  ;;  %v3495_v34 = vrot.slane %v5497_v9, %v4922_v13  ;;  %v3924_v11 = vld [vmem:[%s3830_s25] ss:$0 sm:$0xff] }
0x2211   :  { %v3314_v32 = vpop.xlane.xlu1 %3313 }
0x2212   :  { %v3323_v14 = vsub.f32 %v3303_v6, %v3319_v10  ;;  %v3320_v8 = vmul.f32 0.03125, %v3314_v32  ;;  %v3326_v3 = vmul.f32 %v3322_v52, %v3322_v52  ;;  %vm3496_vm8 = vcmp.eq.s32.totalorder %v4919_v56, %v3495_v34 }
0x2213   :  { %v3317_v18 = vpop.xlane.xlu0 %3316 }
0x2214   :  { %v3324_v53 = vsub.f32 %v3304_v2, %v3320_v8  ;;  %v3321_v4 = vmul.f32 0.03125, %v3317_v18  ;;  %v3330_v35 = vsel %vm192_vm1, %v3326_v3, 0.0  ;;  %v3327_v16 = vmul.f32 %v3323_v14, %v3323_v14 }
0x2215   :  { %3331 = vadd.xlane.f32.xlu1 %v3330_v35 }
0x2216   :  { %v3325_v36 = vsub.f32 %v3305_v31, %v3321_v4  ;;  %v3333_v19 = vsel %vm192_vm1, %v3327_v16, 0.0  ;;  %v3328_v22 = vmul.f32 %v3324_v53, %v3324_v53 }
0x2217   :  { %3334 = vadd.xlane.f32.xlu0 %v3333_v19 }
0x2218   :  { %v3336_v21 = vsel %vm192_vm1, %v3328_v22, 0.0  ;;  %v3329_v38 = vmul.f32 %v3325_v36, %v3325_v36 }
0x2219   :  { %3337 = vadd.xlane.f32.xlu1 %v3336_v21 }
0x221a   :  { %v3339_v15 = vsel %vm192_vm1, %v3329_v38, 0.0 }
0x221b   :  { %3340 = vadd.xlane.f32.xlu0 %v3339_v15 }
0x222a   :  { %3585 = vperm.xlu1 %4459, %v5477_v41  }
0x222e   :  { %3615 = vperm.xlu1 %4459, %v5481_v43  }
0x2231   :  { %3663 = vperm.xlu0 %4460, %v5477_v41  }
0x2235   :  { %3692 = vperm.xlu0 %4460, %v5481_v43  }
0x22a2   :  { %v3332_v46 = vpop.xlane.xlu1 %3331 }
0x22a3   :  { %v3342_v42 = vmul.f32 0.03125, %v3332_v46 }
0x22a4   :  { %v3335_v33 = vpop.xlane.xlu0 %3334 }
0x22a5   :  { %v3346_v44 = vadd.f32 1e-12, %v3342_v42  ;;  %v3343_v20 = vmul.f32 0.03125, %v3335_v33 }
0x22a6   :  { %v3338_v23 = vpop.xlane.xlu1 %3337 }
0x22a7   :  { %4665 = vrsqrt.f32 %v3346_v44  ;;  %v3347_v28 = vadd.f32 1e-12, %v3343_v20  ;;  %v3344_v37 = vmul.f32 0.03125, %v3338_v23 }
0x22a8   :  { %v3341_v39 = vpop.xlane.xlu0 %3340 }
0x22a9   :  { %4667 = vrsqrt.f32 %v3347_v28  ;;  %v3348_v45 = vadd.f32 1e-12, %v3344_v37  ;;  %v3345_v48 = vmul.f32 0.03125, %v3341_v39 }
0x22ab   :  { %4669 = vrsqrt.f32 %v3348_v45  ;;  %v3349_v49 = vadd.f32 1e-12, %v3345_v48 }
0x22ad   :  { %4671 = vrsqrt.f32 %v3349_v49 }
0x22b1   :  { %v4666_v54 = vpop.eup %4665 }
0x22b2   :  { %v3354_v26 = vmul.f32 %v4666_v54, %v3322_v52  ;;  %v3491_v52 = vadd.s32 8, %v4919_v56 }
0x22b3   :  { %v4668_v58 = vpop.eup %4667 }
0x22b4   :  { %v3355_v30 = vmul.f32 %v4668_v58, %v3323_v14  ;;  %v3362_v61 = vmul.f32 %v3361_v29, %v3354_v26  ;;  %vm3544_vm10 = vcmp.eq.s32.totalorder %v3491_v52, %v3542_v40  ;;  %vm3497_vm11 = vcmp.eq.s32.totalorder %v3491_v52, %v3495_v34 }
0x22b5   :  { %v4670_v59 = vpop.eup %4669 }
0x22b6   :  { %v3356_v27 = vmul.f32 %v4670_v59, %v3324_v53  ;;  %v3363_v63 = vmul.f32 %v3361_v29, %v3355_v30  ;;  %v3370_v7 = vadd.f32 %v3369_v62, %v3362_v61 }
0x22b7   :  { %v4672_v60 = vpop.eup %4671 }
0x22b8   :  { %v3364_v2 = vmul.f32 %v3361_v29, %v3356_v27  ;;  %v3357_v6 = vmul.f32 %v4672_v60, %v3325_v36  ;;  %v3371_v31 = vadd.f32 %v3369_v62, %v3363_v63 }
0x22ba   :  { %v3365_v51 = vmul.f32 %v3361_v29, %v3357_v6  ;;  %v3374_v1 = vpack.c.bf16 %v3371_v31, %v3370_v7  ;;  %v3372_v5 = vadd.f32 %v3369_v62, %v3364_v2 }
0x22bc   :  { %4328 = vmatprep.mubr.msk.bf16.mxu1 %vm192_vm1, %v3374_v1  ;;  %v3373_v57 = vadd.f32 %v3369_v62, %v3365_v51 }
0x22be   :  { %v3375_v50 = vpack.c.bf16 %v3373_v57, %v3372_v5 }
0x22c0   :  { %4329 = vmatmul.mubr.msk.bf16.vlgmr.msra.gmra.mrb[68].mxu1 %vm192_vm1, %v3375_v50  ;;  %vm3741_vm1 = vcmask 238800  }
0x2393   :  { %v4330_v10 = vpop.f32.mrb[68].mxu1 }
0x2394   :  { %v3448_v32 = vadd.f32 %v4330_v10, %v3924_v11  ;;  %v3439_v14 = vpop.f32.mrb[69].mxu1 }
0x2395   :  { %v3440_v8 = vadd.f32 %v3924_v11, %v3439_v14  ;;  %v4331_v3 = vpop.f32.mrb[70].mxu1 }
0x2396   :  { %3456 = vst [vmem:[%s5502_s29 + $0x10] sm:$0xff] %v3448_v32  ;;  %v3561_v25 = vrot.slane %v3448_v32, 7  ;;  %v3451_v13 = vadd.f32 %v4331_v3, %v3924_v11  ;;  %v3545_v18 = vsel %vm3543_vm6, %v3448_v32, 0.0  ;;  %v3442_v53 = vpop.f32.mrb[71].mxu1  ;;  %v3512_v4 = vsel %vm3461_vm7, %v3448_v32, -inf }
0x2397   :  { %3454 = vst [vmem:[%s5502_s29] sm:$0xff] %v3440_v8  ;;  %v3547_v35 = vsel %vm3461_vm7, %v3545_v18, 0.0  ;;  %v3443_v16 = vadd.f32 %v3924_v11, %v3442_v53  ;;  %v3498_v36 = vsel %vm3496_vm8, %v3440_v8, 0.0  ;;  %v3462_v21 = vsel %vm3461_vm7, %v3440_v8, -inf }
0x2398   :  { %v5516_v56 = vsel %vm3558_vm9, %v3440_v8, %v3561_v25  ;;  %3457 = vst [vmem:[%s5502_s29 + $0x18] sm:$0xff] %v3451_v13  ;;  %v3513_v19 = vsel %vm3461_vm7, %v3451_v13, -inf  ;;  %v3546_v22 = vsel %vm3544_vm10, %v3451_v13, 0.0  ;;  %v3500_v46 = vsel %vm3461_vm7, %v3498_v36, 0.0 }
0x2399   :  { %v3514_v38 = vmax.f32 %v3512_v4, %v3513_v19  ;;  %v3548_v15 = vsel %vm3461_vm7, %v3546_v22, 0.0  ;;  %3455 = vst [vmem:[%s5502_s29 + $0x8] sm:$0xff] %v3443_v16  ;;  %v3463_v24 = vsel %vm3461_vm7, %v3443_v16, -inf  ;;  %v3499_v17 = vsel %vm3497_vm11, %v3443_v16, 0.0  ;;  %3666 = vrot.lane.b32.xlu1 %v5516_v56, %s4759_s2  ;;  %3589 = vrot.lane.b32.xlu0 %v5516_v56, %s4760_s8 }
0x239a   :  { %v5528_v47 = vadd.f32 %v3548_v15, %v3547_v35  ;;  %v3464_v12 = vmax.f32 %v3462_v21, %v3463_v24  ;;  %v3501_v42 = vsel %vm3461_vm7, %v3499_v17, 0.0  ;;  %v3598_v11 = vsel %vm3597_vm12, %v5516_v56, -inf }
0x239b   :  { %v3515_v33 = vrot.slane %v3514_v38, 4  ;;  %v5532_v44 = vadd.f32 %v3501_v42, %v3500_v46  ;;  %v3565_v52 = vsel %vm3564_vm13, %v5516_v56, -inf  ;;  %v3646_v25 = vsel %vm3645_vm14, %v5516_v56, -inf }
0x239c   :  { %v3465_v20 = vrot.slane %v3464_v12, 4  ;;  %v3550_v3 = vrot.slane %v5528_v47, 4  ;;  %v3675_v19 = vsel %vm3674_vm0, %v5516_v56, -inf  ;;  %v3742_v24 = vsel %vm3741_vm1, %v5516_v56, -inf }
0x239d   :  { %v3516_v23 = vmax.f32 %v3514_v38, %v3515_v33  ;;  %3618 = vrot.lane.b32.xlu0 %v5516_v56, %s4761_s7  ;;  %v3503_v4 = vrot.slane %v5532_v44, 4  ;;  %vm3626_vm8 = vcmp.gt.s32.totalorder %v5497_v9, 0  ;;  %vm3787_vm12 = vcmask 7168  }
0x239e   :  { %v3466_v28 = vmax.f32 %v3464_v12, %v3465_v20  ;;  %v3551_v36 = vadd.f32 %v3550_v3, %v5528_v47  ;;  %vm3789_vm13 = vcmask 15360   ;;  %vm3791_vm14 = vcmask 17408  }
0x239f   :  { %v3517_v37 = vrot.slane %v3516_v23, 2  ;;  %v3504_v38 = vadd.f32 %v3503_v4, %v5532_v44 }
0x23a0   :  { %v3467_v39 = vrot.slane %v3466_v28, 2  ;;  %v3552_v17 = vrot.slane %v3551_v36, 2 }
0x23a1   :  { %v3518_v45 = vmax.f32 %v3516_v23, %v3517_v37  ;;  %v3505_v12 = vrot.slane %v3504_v38, 2 }
0x23a2   :  { %v3468_v48 = vmax.f32 %v3466_v28, %v3467_v39  ;;  %v3553_v46 = vadd.f32 %v3552_v17, %v3551_v36 }
0x23a3   :  { %v3519_v49 = vrot.slane %v3518_v45, 1  ;;  %v3506_v42 = vadd.f32 %v3505_v12, %v3504_v38  ;;  %v4766_v12 = vmov 2  }
0x23a4   :  { %v3469_v29 = vrot.slane %v3468_v48, 1  ;;  %v3554_v33 = vrot.slane %v3553_v46, 1  ;;  %4462 = vset.pattern.permute.xlu0 %v4766_v12  ;;  %4461 = vset.pattern.permute.xlu1 %v4766_v12 }
0x23a5   :  { %v5536_v54 = vmax.f32 %v3518_v45, %v3519_v49  ;;  %v3507_v20 = vrot.slane %v3506_v42, 1 }
0x23a6   :  { %v5538_v26 = vmax.f32 %v3468_v48, %v3469_v29  ;;  %v3555_v45 = vadd.f32 %v3554_v33, %v3553_v46 }
0x23a7   :  { %v3521_v58 = vsub.f32 %v3448_v32, %v5536_v54  ;;  %v3522_v30 = vsub.f32 %v3451_v13, %v5536_v54  ;;  %v3713_v13 = vsel %vm3712_vm15, %v5516_v56, -inf  ;;  %v3508_v48 = vadd.f32 %v3507_v20, %v3506_v42 }
0x23a8   :  { %v3471_v61 = vsub.f32 %v3440_v8, %v5538_v26  ;;  %v3472_v62 = vsub.f32 %v3443_v16, %v5538_v26 }
0x23a9   :  { %v3523_v59 = vmul.f32 1.442695, %v3521_v58  ;;  %v3525_v27 = vmul.f32 1.442695, %v3522_v30 }
0x23aa   :  { %v3473_v63 = vmul.f32 1.442695, %v3471_v61  ;;  %v3475_v60 = vmul.f32 1.442695, %v3472_v62  ;;  %v3586_v62 = vpop.permute.xlu1 %3585 }
0x23ab   :  { %4673 = vpow2.f32 %v3523_v59 }
0x23ac   :  { %4675 = vpow2.f32 %v3525_v27 }
0x23ad   :  { %4677 = vpow2.f32 %v3473_v63 }
0x23ae   :  { %4679 = vpow2.f32 %v3475_v60  ;;  %v3616_v27 = vpop.permute.xlu1 %3615 }
0x23b5   :  { %v4674_v2 = vpop.eup %4673 }
0x23b6   :  { %v4676_v6 = vpop.eup %4675  ;;  %v3527_v7 = vsel %vm3461_vm7, %v4674_v2, 0.0 }
0x23b7   :  { %v4678_v31 = vpop.eup %4677  ;;  %v3528_v51 = vsel %vm3461_vm7, %v4676_v6, 0.0 }
0x23b8   :  { %v4680_v1 = vpop.eup %4679  ;;  %v3477_v5 = vsel %vm3461_vm7, %v4678_v31, 0.0  ;;  %v3529_v57 = vadd.f32 %v3528_v51, %v3527_v7 }
0x23b9   :  { %v3478_v50 = vsel %vm3461_vm7, %v4680_v1, 0.0 }
0x23ba   :  { %v3479_v40 = vadd.f32 %v3478_v50, %v3477_v5  ;;  %v3530_v34 = vrot.slane %v3529_v57, 4 }
0x23bc   :  { %3599 = vmax.xlane.f32.xlu0 %v3598_v11  ;;  %v3480_v10 = vrot.slane %v3479_v40, 4  ;;  %v3531_v32 = vadd.f32 %v3530_v34, %v3529_v57 }
0x23bd   :  { %3566 = vmax.xlane.f32.xlu1 %v3565_v52 }
0x23be   :  { %v3481_v14 = vadd.f32 %v3480_v10, %v3479_v40  ;;  %v3532_v8 = vrot.slane %v3531_v32, 2 }
0x23c0   :  { %3647 = vmax.xlane.f32.xlu0 %v3646_v25  ;;  %v3482_v18 = vrot.slane %v3481_v14, 2  ;;  %v3533_v53 = vadd.f32 %v3532_v8, %v3531_v32 }
0x23c1   :  { %3714 = vmax.xlane.f32.xlu1 %v3713_v13 }
0x23c2   :  { %v3483_v35 = vadd.f32 %v3482_v18, %v3481_v14  ;;  %v3534_v16 = vrot.slane %v3533_v53, 1 }
0x23c4   :  { %3676 = vmax.xlane.f32.xlu0 %v3675_v19  ;;  %v3484_v22 = vrot.slane %v3483_v35, 1  ;;  %v3535_v21 = vadd.f32 %v3534_v16, %v3533_v53 }
0x23c6   :  { %v3485_v15 = vadd.f32 %v3484_v22, %v3483_v35  ;;  %4681 = vlog2.f32 %v3535_v21 }
0x23c8   :  { %3743 = vmax.xlane.f32.xlu0 %v3742_v24  ;;  %4683 = vlog2.f32 %v3485_v15 }
0x23d0   :  { %v4682_v47 = vpop.eup %4681 }
0x23d1   :  { %v3537_v23 = vmul.f32 0.6931472, %v4682_v47 }
0x23d2   :  { %v4684_v28 = vpop.eup %4683 }
0x23d3   :  { %v3487_v37 = vmul.f32 0.6931472, %v4684_v28  ;;  %v3538_v39 = vadd.f32 %v3537_v23, %v5536_v54  ;;  %v3664_v54 = vpop.permute.xlu0 %3663 }
0x23d5   :  { %v3488_v44 = vadd.f32 %v3487_v37, %v5538_v26  ;;  %v3556_v49 = vsub.f32 %v3538_v39, %v3555_v45  ;;  %v5569_v26 = vand.u32 127, %v771_v55 }
0x23d7   :  { %v3510_v29 = vsub.f32 %v3488_v44, %v3508_v48  ;;  %v3557_v58 = vsel %vm3509_vm2, 0.0, %v3556_v49  ;;  %v3693_v59 = vpop.permute.xlu0 %3692  ;;  %vm3587_vm3 = vcmp.eq.s32.totalorder %v5569_v26, %v3586_v62  ;;  %vm3617_vm5 = vcmp.eq.s32.totalorder %v5569_v26, %v3616_v27 }
0x23d8   :  { %vm3665_vm6 = vcmp.eq.s32.totalorder %v5569_v26, %v3664_v54  ;;  %vm3694_vm7 = vcmp.eq.s32.totalorder %v5569_v26, %v3693_v59 }
0x23d9   :  { %v3511_v30 = vsel %vm3509_vm2, 0.0, %v3510_v29 }
0x23da   :  { %v5562_v61 = vsel %vm3558_vm9, %v3511_v30, %v3557_v58  ;;  %vm3636_vm9 = vcmp.eq.s32.totalorder %v5477_v41, 3 }
0x23de   :  { %3695 = vrot.lane.b32.xlu0 %v5516_v56, %s4762_s9 }
0x23e2   :  { %3630 = vrot.lane.b32.xlu0 %v5562_v61, %s4763_s10 }
0x240b   :  { %v3590_v63 = vpop.permute.xlu0 %3589  ;;  %v3667_v6 = vpop.permute.xlu1 %3666 }
0x240c   :  { %v3592_v60 = vsel %vm3587_vm3, %v3590_v63, 0.0  ;;  %v3669_v51 = vsel %vm3665_vm6, %v3667_v6, 0.0 }
0x240d   :  { %v3593_v2 = vsel %vm3575_vm4, %v3592_v60, 0.0  ;;  %v3670_v1 = vsel %vm3575_vm4, %v3669_v51, 0.0 }
0x240e   :  { %3594 = vadd.xlane.f32.xlu1 %v3593_v2 }
0x240f   :  { %v3619_v7 = vpop.permute.xlu0 %3618 }
0x2410   :  { %v3621_v31 = vsel %vm3617_vm5, %v3619_v7, 0.0 }
0x2411   :  { %v3622_v55 = vsel %vm3575_vm4, %v3621_v31, 0.0 }
0x2412   :  { %3623 = vadd.xlane.f32.xlu1 %v3622_v55 }
0x2416   :  { %3671 = vadd.xlane.f32.xlu1 %v3670_v1  ;;  %v3930_v1 = vsel %vm3636_vm9, 1.0, %v4710_v0 }
0x2449   :  { %v5577_v5 = vpop.xlane.xlu0 %3599 }
0x244a   :  { %v5579_v57 = vpop.xlane.xlu1 %3566  ;;  %v3601_v50 = vsub.f32 %v5516_v56, %v5577_v5 }
0x244b   :  { %v3568_v40 = vsub.f32 %v5516_v56, %v5579_v57 }
0x244c   :  { %v3602_v10 = vmul.f32 1.442695, %v3601_v50 }
0x244d   :  { %v3569_v34 = vmul.f32 1.442695, %v3568_v40  ;;  %v5585_v11 = vpop.xlane.xlu0 %3647 }
0x244e   :  { %v5587_v52 = vpop.xlane.xlu1 %3714  ;;  %v3649_v4 = vsub.f32 %v5516_v56, %v5585_v11 }
0x244f   :  { %4685 = vpow2.f32 %v3569_v34  ;;  %v3716_v32 = vsub.f32 %v5516_v56, %v5587_v52 }
0x2450   :  { %4687 = vpow2.f32 %v3602_v10  ;;  %v3650_v19 = vmul.f32 1.442695, %v3649_v4 }
0x2451   :  { %v5591_v14 = vpop.xlane.xlu0 %3676  ;;  %v3717_v8 = vmul.f32 1.442695, %v3716_v32 }
0x2452   :  { %v3678_v22 = vsub.f32 %v5516_v56, %v5591_v14 }
0x2453   :  { %4689 = vpow2.f32 %v3717_v8 }
0x2454   :  { %v3679_v38 = vmul.f32 1.442695, %v3678_v22 }
0x2455   :  { %v5593_v3 = vpop.xlane.xlu0 %3743 }
0x2456   :  { %v3745_v25 = vsub.f32 %v5516_v56, %v5593_v3 }
0x2458   :  { %v3746_v13 = vmul.f32 1.442695, %v3745_v25 }
0x2459   :  { %v4686_v18 = vpop.eup %4685  ;;  %v3696_v53 = vpop.permute.xlu0 %3695 }
0x245a   :  { %4691 = vpow2.f32 %v3746_v13  ;;  %v3698_v35 = vsel %vm3694_vm7, %v3696_v53, 0.0  ;;  %3572 = vrot.lane.b32.xlu0 %v4686_v18, %s4760_s8  ;;  %v4688_v36 = vpop.eup %4687 }
0x245b   :  { %v3699_v16 = vsel %vm3575_vm4, %v3698_v35, 0.0  ;;  %4693 = vpow2.f32 %v3650_v19 }
0x245c   :  { %3700 = vadd.xlane.f32.xlu1 %v3699_v16  ;;  %4695 = vpow2.f32 %v3679_v38 }
0x245d   :  { %v4690_v21 = vpop.eup %4689  ;;  %v3631_v46 = vpop.permute.xlu0 %3630 }
0x245e   :  { %3605 = vrot.lane.b32.xlu0 %v4688_v36, %s4761_s7  ;;  %v3633_v27 = vadd.f32 %v3631_v46, %v5562_v61 }
0x2462   :  { %3720 = vrot.lane.b32.xlu0 %v4690_v21, %s4764_s11 }
0x2464   :  { %v4692_v15 = vpop.eup %4691 }
0x2465   :  { %v4694_v24 = vpop.eup %4693 }
0x2466   :  { %3749 = vrot.lane.b32.xlu0 %v4692_v15, %s4765_s13  ;;  %v4696_v17 = vpop.eup %4695 }
0x246d   :  { %3653 = vrot.lane.b32.xlu1 %v4694_v24, %s4759_s2 }
0x2471   :  { %3682 = vrot.lane.b32.xlu1 %v4696_v17, %s4762_s9 }
0x249b   :  { %v3595_v23 = vpop.xlane.xlu1 %3594 }
0x249f   :  { %v3624_v28 = vpop.xlane.xlu1 %3623 }
0x24a3   :  { %v5610_v37 = vpop.xlane.xlu1 %3671 }
0x24cc   :  { %v3573_v42 = vpop.permute.xlu0 %3572 }
0x24cd   :  { %v3576_v33 = vsel %vm3575_vm4, %v3573_v42, 0.0 }
0x24ce   :  { %3577 = vadd.xlane.f32.xlu1 %v3576_v33 }
0x24d0   :  { %v3606_v47 = vpop.permute.xlu0 %3605 }
0x24d1   :  { %v3608_v20 = vsel %vm3575_vm4, %v3606_v47, 0.0 }
0x24d2   :  { %3609 = vadd.xlane.f32.xlu1 %v3608_v20 }
0x24d4   :  { %v3721_v29 = vpop.permute.xlu0 %3720 }
0x24d5   :  { %v3723_v58 = vsel %vm3575_vm4, %v3721_v29, 0.0 }
0x24d8   :  { %v3750_v30 = vpop.permute.xlu0 %3749 }
0x24d9   :  { %v3752_v54 = vsel %vm3575_vm4, %v3750_v30, 0.0 }
0x24e9   :  { %v5612_v39 = vpop.xlane.xlu1 %3700 }
0x24ed   :  { %v3654_v45 = vpop.permute.xlu1 %3653 }
0x24ee   :  { %v3656_v44 = vsel %vm3575_vm4, %v3654_v45, 0.0 }
0x24ef   :  { %3657 = vadd.xlane.f32.xlu0 %v3656_v44 }
0x24f1   :  { %v3683_v48 = vpop.permute.xlu1 %3682 }
0x24f2   :  { %v3685_v49 = vsel %vm3575_vm4, %v3683_v48, 0.0 }
0x24f3   :  { %3686 = vadd.xlane.f32.xlu1 %v3685_v49 }
0x24f7   :  { %3724 = vadd.xlane.f32.xlu1 %v3723_v58 }
0x2505   :  { %3762 = vrot.lane.b32.xlu0 %v5516_v56, %s4765_s13 }
0x2508   :  { %3759 = vperm.xlu1 %4461, %v5481_v43   ;;  %v3634_v43 = vmul.f32 0.5, %v3633_v27 }
0x2509   :  { %3730 = vperm.xlu0 %4462, %v5477_v41  }
0x250d   :  { %3733 = vrot.lane.b32.xlu0 %v5516_v56, %s4764_s11  ;;  %v3929_v56 = vsel %vm3626_vm8, 1.0, %v4710_v0 }
0x250e   :  { %v3635_v55 = vmul.f32 %v3929_v56, %v3634_v43 }
0x2510   :  { %v3641_v40 = vmul.f32 0.1, %v3635_v55 }
0x252c   :  { %3753 = vadd.xlane.f32.xlu0 %v3752_v54 }
0x255b   :  { %v3578_v62 = vpop.xlane.xlu1 %3577 }
0x255c   :  { %4697 = vlog2.f32 %v3578_v62 }
0x255f   :  { %v3610_v59 = vpop.xlane.xlu1 %3609 }
0x2560   :  { %4699 = vlog2.f32 %v3610_v59 }
0x2566   :  { %v4698_v63 = vpop.eup %4697 }
0x2567   :  { %v3580_v60 = vmul.f32 0.6931472, %v4698_v63 }
0x2569   :  { %v3581_v2 = vadd.f32 %v3580_v60, %v5579_v57 }
0x256a   :  { %v4700_v6 = vpop.eup %4699 }
0x256b   :  { %v3596_v7 = vsub.f32 %v3581_v2, %v3595_v23  ;;  %v3612_v31 = vmul.f32 0.6931472, %v4700_v6 }
0x256d   :  { %v3613_v51 = vadd.f32 %v3612_v31, %v5577_v5  ;;  %v3640_v61 = vmul.f32 0.8, %v3596_v7 }
0x256f   :  { %v3625_v50 = vsub.f32 %v3613_v51, %v3624_v28  ;;  %v3642_v34 = vadd.f32 %v3641_v40, %v3640_v61 }
0x2571   :  { %v3639_v9 = vmul.f32 %v3930_v1, %v3625_v50 }
0x2573   :  { %v3643_v10 = vmul.f32 0.1, %v3639_v9 }
0x2575   :  { %v5630_v32 = vadd.f32 %v3643_v10, %v3642_v34 }
0x257c   :  { %v3658_v57 = vpop.xlane.xlu0 %3657 }
0x2580   :  { %v3687_v8 = vpop.xlane.xlu1 %3686  ;;  %v3763_v25 = vpop.permute.xlu0 %3762 }
0x2581   :  { %4701 = vlog2.f32 %v3687_v8 }
0x2582   :  { %4703 = vlog2.f32 %v3658_v57 }
0x2584   :  { %v3725_v41 = vpop.xlane.xlu1 %3724 }
0x2588   :  { %v3731_v13 = vpop.permute.xlu0 %3730  ;;  %v3760_v18 = vpop.permute.xlu1 %3759 }
0x2589   :  { %vm3761_vm10 = vcmp.eq.s32.totalorder %v5569_v26, %v3760_v18  ;;  %vm3732_vm11 = vcmp.eq.s32.totalorder %v5569_v26, %v3731_v13 }
0x258a   :  { %v3765_v0 = vsel %vm3761_vm10, %v3763_v25, 0.0 }
0x258b   :  { %v3766_v5 = vsel %vm3575_vm4, %v3765_v0, 0.0  ;;  %v4702_v4 = vpop.eup %4701 }
0x258c   :  { %v3734_v53 = vpop.permute.xlu0 %3733  ;;  %3767 = vadd.xlane.f32.xlu0 %v3766_v5  ;;  %v3689_v36 = vmul.f32 0.6931472, %v4702_v4  ;;  %v4704_v15 = vpop.eup %4703 }
0x258d   :  { %v3736_v35 = vsel %vm3732_vm11, %v3734_v53, 0.0  ;;  %v3660_v24 = vmul.f32 0.6931472, %v4704_v15 }
0x258e   :  { %v3737_v16 = vsel %vm3575_vm4, %v3736_v35, 0.0  ;;  %v3690_v19 = vadd.f32 %v3689_v36, %v5591_v14 }
0x258f   :  { %3738 = vadd.xlane.f32.xlu1 %v3737_v16  ;;  %v3661_v17 = vadd.f32 %v3660_v24, %v5585_v11 }
0x2590   :  { %v3702_v22 = vsub.f32 %v3690_v19, %v5612_v39 }
0x2591   :  { %v3673_v42 = vsub.f32 %v3661_v17, %v5610_v37 }
0x2592   :  { %v3703_v21 = vmul.f32 %v3930_v1, %v3702_v22 }
0x2593   :  { %v3704_v14 = vmul.f32 0.8, %v3673_v42 }
0x2594   :  { %v3706_v38 = vmul.f32 0.1, %v3703_v21 }
0x2595   :  { %v3705_v28 = vadd.f32 %v3704_v14, %v3641_v40 }
0x25a2   :  { %3708 = vrot.lane.b32.xlu0 %v3706_v38, %s4721_s21  ;;  %s4767_s21 = smov 126  }
0x25b9   :  { %v3754_v26 = vpop.xlane.xlu0 %3753 }
0x25ba   :  { %4705 = vlog2.f32 %v3754_v26 }
0x25bb   :  { %4707 = vlog2.f32 %v3725_v41 }
0x25c4   :  { %v4706_v12 = vpop.eup %4705 }
0x25c5   :  { %v3756_v46 = vmul.f32 0.6931472, %v4706_v12  ;;  %v4708_v11 = vpop.eup %4707 }
0x25c6   :  { %v3727_v48 = vmul.f32 0.6931472, %v4708_v11 }
0x25c7   :  { %v3757_v33 = vadd.f32 %v3756_v46, %v5593_v3 }
0x25c8   :  { %v3728_v37 = vadd.f32 %v3727_v48, %v5587_v52 }
0x2619   :  { %v3768_v47 = vpop.xlane.xlu0 %3767 }
0x261a   :  { %v3769_v20 = vsub.f32 %v3757_v33, %v3768_v47 }
0x261c   :  { %v3770_v23 = vmul.f32 %v3930_v1, %v3769_v20  ;;  %v3739_v49 = vpop.xlane.xlu1 %3738 }
0x261d   :  { %v3709_v39 = vpop.permute.xlu0 %3708  ;;  %v3740_v29 = vsub.f32 %v3728_v37, %v3739_v49 }
0x261e   :  { %v3773_v45 = vmul.f32 0.1, %v3770_v23  ;;  %v3711_v44 = vadd.f32 %v3709_v39, %v3705_v28 }
0x261f   :  { %v3771_v3 = vmul.f32 0.8, %v3740_v29 }
0x2620   :  { %3775 = vrot.lane.b32.xlu0 %v3773_v45, %s4732_s6  ;;  %3780 = vrot.lane.b32.xlu1 %v3711_v44, %s4763_s10  ;;  %s3835_s6 = sld [smem:[%s5649_s0 + %s4768_s22]]  }
0x2621   :  { %v3772_v58 = vadd.f32 %v3771_v3, %v3641_v40 }
0x2692   :  { %v3776_v30 = vpop.permute.xlu0 %3775  ;;  %v3781_v62 = vpop.permute.xlu1 %3780 }
0x2693   :  { %v3778_v54 = vadd.f32 %v3776_v30, %v3772_v58  ;;  %v3788_v59 = vsel %vm3787_vm12, %v5630_v32, %v3781_v62 }
0x2695   :  { %3784 = vrot.lane.b32.xlu1 %v3778_v54, %s4767_s21 }
0x2707   :  { %v3785_v27 = vpop.permute.xlu1 %3784 }
0x2708   :  { %v3790_v52 = vsel %vm3789_vm13, %v3788_v59, %v3785_v27 }
0x2709   :  { %3792 = vst.msk [vmem:[%s3835_s6] sm:$0x3] %vm3791_vm14, %v3790_v52 }

</bundles_post_ra>
